<compile_context>
chip_gen: v7x
topology: tpu7x:2x2x1
jax: 0.10.0
libtpu: 0.0.40
codegen_flags: <defaults>
</compile_context>

<pallas_src>
import jax
import jax.numpy as jnp
from jax import lax
from jax.experimental import pallas as pl
from jax.experimental.pallas import tpu as pltpu

VOCAB_SIZE = 50
EMBED_DIM = 20      # must match the hard-coded LSTM input_size in the module
E_PAD = 32          # embed dim zero-padded for aligned MXU contraction
HIDDEN = 32         # hard-coded LSTM hidden_size in the module
NUM_CLASS = 4
C_PAD = 8           # class dim padded to the f32 sublane width


def _lstm_fc_kernel(emb_ref, wih_ref, whh_ref, b_ref, wfc_ref, bfc_ref,
                    out_ref, xp_ref):
    """Pre-projected single-layer LSTM + final Linear, batch-on-lanes layout.

    emb_ref : (T, E_PAD, Bt) bf16  embedded tokens, time-major, batch on lanes
    wih_ref : (4H, E_PAD)    bf16  input->gates weight (zero-padded over E)
    whh_ref : (4H, H)        bf16  hidden->gates weight
    b_ref   : (4H, 1)        f32   b_ih + b_hh
    wfc_ref : (C_PAD, H)     f32   fc weight, classes zero-padded
    bfc_ref : (C_PAD, 1)     f32   fc bias, zero-padded
    out_ref : (C_PAD, Bt)    f32   padded logits (batch on lanes)
    xp_ref  : (T, 4H, Bt)    f32   VMEM scratch: pre-projected gate inputs
    """
    T, _, Bt = emb_ref.shape
    H = whh_ref.shape[1]

    # ---- Hoisted weight/bias loads (few vregs each).
    wih = wih_ref[...]            # (4H, E_PAD) bf16
    whh = whh_ref[...]            # (4H, H)     bf16
    bias = b_ref[...]             # (4H, 1)     f32

    unroll = True if T <= 16 else 8

    # ---- Hoisted input projection for ALL timesteps (off the serial chain).
    # Written per-timestep so live matmul temporaries stay bounded regardless
    # of T; bias folded in here so the recurrence never re-adds it.
    def proj(t, carry):
        e_t = emb_ref[t]                                     # (E_PAD, Bt) bf16
        xp_ref[t] = (jnp.dot(wih, e_t, preferred_element_type=jnp.float32)
                     + bias)
        return carry

    lax.fori_loop(0, T, proj, 0, unroll=unroll)

    # ---- Sequential recurrence.  Per-step work: one tiny bf16 MXU matmul,
    # packed 128-lane VPU/EUP ops, free sublane gate slices.
    def sigmoid(x):
        return 0.5 * jnp.tanh(0.5 * x) + 0.5   # exact; single EUP op

    def step(t, carry):
        h, c = carry                                          # (H, Bt) f32
        gates = xp_ref[t] + jnp.dot(whh, h.astype(jnp.bfloat16),
                                    preferred_element_type=jnp.float32)
        # PyTorch gate order: i, f, g, o (sublane slices, multiples of 8)
        i_g = sigmoid(gates[0 * H:1 * H, :])
        f_g = sigmoid(gates[1 * H:2 * H, :])
        g_g = jnp.tanh(gates[2 * H:3 * H, :])
        o_g = sigmoid(gates[3 * H:4 * H, :])
        c_new = f_g * c + i_g * g_g
        h_new = o_g * jnp.tanh(c_new)
        return (h_new, c_new)

    h0 = jnp.zeros((H, Bt), jnp.float32)
    c0 = jnp.zeros((H, Bt), jnp.float32)
    h_last, _ = lax.fori_loop(0, T, step, (h0, c0), unroll=unroll)

    # ---- Final Linear on the last hidden state (batch stays on lanes).
    out_ref[...] = (jnp.dot(wfc_ref[...], h_last,
                            preferred_element_type=jnp.float32)
                    + bfc_ref[...])


def init_params(key):
    k_emb, k_wih, k_whh, k_bih, k_bhh, k_fc = jax.random.split(key, 6)
    initrange = 0.5
    lstm_rng = 1.0 / jnp.sqrt(float(HIDDEN))
    return {
        # nn.Embedding weight ~ U(-0.5, 0.5) per init_weights()
        "embedding": jax.random.uniform(
            k_emb, (VOCAB_SIZE, EMBED_DIM), jnp.float32, -initrange, initrange),
        # nn.LSTM default init ~ U(-1/sqrt(H), 1/sqrt(H)); gate order i,f,g,o
        "w_ih": jax.random.uniform(
            k_wih, (4 * HIDDEN, EMBED_DIM), jnp.float32, -lstm_rng, lstm_rng),
        "w_hh": jax.random.uniform(
            k_whh, (4 * HIDDEN, HIDDEN), jnp.float32, -lstm_rng, lstm_rng),
        "b_ih": jax.random.uniform(
            k_bih, (4 * HIDDEN,), jnp.float32, -lstm_rng, lstm_rng),
        "b_hh": jax.random.uniform(
            k_bhh, (4 * HIDDEN,), jnp.float32, -lstm_rng, lstm_rng),
        # fc: weight ~ U(-0.5, 0.5), bias zero per init_weights()
        "w_fc": jax.random.uniform(
            k_fc, (NUM_CLASS, HIDDEN), jnp.float32, -initrange, initrange),
        "b_fc": jnp.zeros((NUM_CLASS,), jnp.float32),
    }


def _batch_tiling(B):
    """Pick (B_pad, b_tile).  Batch lives on the lane dim, so multi-tile
    blocks must be multiples of 128; single-tile blocks may equal B_pad."""
    if B <= 128:
        b_pad = max(8, ((B + 7) // 8) * 8)
        return b_pad, b_pad
    b_pad = ((B + 127) // 128) * 128
    return b_pad, 128


def text_classification_forward(text, params):
    B, T = text.shape
    B_pad, b_tile = _batch_tiling(B)
    num_tiles = B_pad // b_tile

    # Time-major gather then swap to (T, E_PAD, B_pad) so batch sits on lanes
    # inside the kernel.  bf16 ship format halves the T-scaling emb block.
    ids_tm = text.T.astype(jnp.int32)
    if B_pad != B:
        ids_tm = jnp.pad(ids_tm, ((0, 0), (0, B_pad - B)))
    emb_pad = jnp.pad(params["embedding"].astype(jnp.float32),
                      ((0, 0), (0, E_PAD - EMBED_DIM)))
    emb_teb = jnp.transpose(
        jnp.take(emb_pad, ids_tm, axis=0), (0, 2, 1)).astype(jnp.bfloat16)

    w_ih_pad = jnp.pad(params["w_ih"],
                       ((0, 0), (0, E_PAD - EMBED_DIM))).astype(jnp.bfloat16)
    w_hh_bf = params["w_hh"].astype(jnp.bfloat16)                 # (4H, H)
    bias = (params["b_ih"] + params["b_hh"]).astype(jnp.float32)[:, None]
    w_fc_pad = jnp.pad(params["w_fc"].astype(jnp.float32),
                       ((0, C_PAD - NUM_CLASS), (0, 0)))          # (C_PAD, H)
    b_fc_pad = jnp.pad(params["b_fc"].astype(jnp.float32),
                       (0, C_PAD - NUM_CLASS))[:, None]           # (C_PAD, 1)

    # VMEM budget: double-buffered bf16 emb block + f32 xp scratch (+headroom).
    lanes = max(b_tile, 128)   # lane dim is physically padded to 128
    emb_block_bytes = T * E_PAD * lanes * 2
    xp_bytes = T * 4 * HIDDEN * lanes * 4
    footprint = 2 * emb_block_bytes + xp_bytes + (1 << 20)
    vmem_limit = int(min(64 << 20, max(32 << 20, footprint + (4 << 20))))

    grid_spec = pltpu.PrefetchScalarGridSpec(
        num_scalar_prefetch=0,
        grid=(num_tiles,),
        in_specs=[
            pl.BlockSpec((T, E_PAD, b_tile), lambda b: (0, 0, b)),
            pl.BlockSpec((4 * HIDDEN, E_PAD), lambda b: (0, 0)),
            pl.BlockSpec((4 * HIDDEN, HIDDEN), lambda b: (0, 0)),
            pl.BlockSpec((4 * HIDDEN, 1), lambda b: (0, 0)),
            pl.BlockSpec((C_PAD, HIDDEN), lambda b: (0, 0)),
            pl.BlockSpec((C_PAD, 1), lambda b: (0, 0)),
        ],
        out_specs=pl.BlockSpec((C_PAD, b_tile), lambda b: (0, b)),
        scratch_shapes=[pltpu.VMEM((T, 4 * HIDDEN, b_tile), jnp.float32)],
    )

    out_pad = pl.pallas_call(
        _lstm_fc_kernel,
        out_shape=jax.ShapeDtypeStruct((C_PAD, B_pad), jnp.float32),
        grid_spec=grid_spec,
        compiler_params=pltpu.CompilerParams(
            dimension_semantics=("parallel",),
            vmem_limit_bytes=vmem_limit),
    )(emb_teb, w_ih_pad, w_hh_bf, bias, w_fc_pad, b_fc_pad)

    return out_pad[:NUM_CLASS, :B].T


def reference_forward(text, params):
    """Pure-JAX f32 reference mirroring PyTorch LSTM semantics."""
    emb = jnp.take(params["embedding"], text, axis=0)
    B, T, _ = emb.shape
    H = HIDDEN
    h = jnp.zeros((B, H), jnp.float32)
    c = jnp.zeros((B, H), jnp.float32)
    for t in range(T):
        gates = (emb[:, t, :] @ params["w_ih"].T + params["b_ih"]
                 + h @ params["w_hh"].T + params["b_hh"])
        i_g = jax.nn.sigmoid(gates[:, 0 * H:1 * H])
        f_g = jax.nn.sigmoid(gates[:, 1 * H:2 * H])
        g_g = jnp.tanh(gates[:, 2 * H:3 * H])
        o_g = jax.nn.sigmoid(gates[:, 3 * H:4 * H])
        c = f_g * c + i_g * g_g
        h = o_g * jnp.tanh(c)
    return h @ params["w_fc"].T + params["b_fc"]


if __name__ == "__main__":
    root = jax.random.PRNGKey(0)
    pkey, dkey = jax.random.split(root)
    params = init_params(pkey)

    B, T = 2, 8
    text = jax.random.randint(dkey, (B, T), 0, VOCAB_SIZE, dtype=jnp.int32)

    out = text_classification_forward(text, params)
    out = jax.block_until_ready(out)

    ref = reference_forward(text, params)
    assert out.shape == (B, NUM_CLASS), out.shape
    # bf16 MXU operands (per perf review) -> tolerance loosened from 1e-4.
    assert jnp.allclose(out, ref, atol=1e-2, rtol=1e-2), (out, ref)

    print("KERNEL_OK")
</pallas_src>

<mosaic_0001>
module attributes {stable_mosaic.version = 11 : i64} {
  func.func @_lstm_fc_kernel(%arg0: i32, %arg1: memref<8x32x8xbf16, #tpu.memory_space<vmem>>, %arg2: memref<128x32xbf16, #tpu.memory_space<vmem>>, %arg3: memref<128x32xbf16, #tpu.memory_space<vmem>>, %arg4: memref<128x1xf32, #tpu.memory_space<vmem>>, %arg5: memref<8x32xf32, #tpu.memory_space<vmem>>, %arg6: memref<8x1xf32, #tpu.memory_space<vmem>>, %arg7: memref<8x8xf32, #tpu.memory_space<vmem>>, %arg8: memref<8x128x8xf32, #tpu.memory_space<vmem>>) attributes {dimension_semantics = [#tpu.dimension_semantics<parallel>], iteration_bounds = array<i64: 1>, scalar_prefetch = 0 : i64, scratch_operands = 1 : i64, tpu.core_type = #tpu.core_type<tc>, window_params = [{transform_indices = @transform_0, window_bounds = array<i64: 8, 32, 8>}, {pipeline_mode = #tpu.pipeline_mode<synchronous>, transform_indices = @transform_1, window_bounds = array<i64: 128, 32>}, {pipeline_mode = #tpu.pipeline_mode<synchronous>, transform_indices = @transform_2, window_bounds = array<i64: 128, 32>}, {pipeline_mode = #tpu.pipeline_mode<synchronous>, transform_indices = @transform_3, window_bounds = array<i64: 128, 1>}, {pipeline_mode = #tpu.pipeline_mode<synchronous>, transform_indices = @transform_4, window_bounds = array<i64: 8, 32>}, {pipeline_mode = #tpu.pipeline_mode<synchronous>, transform_indices = @transform_5, window_bounds = array<i64: 8, 1>}, {transform_indices = @transform_6, window_bounds = array<i64: 8, 8>}]} {
    %c0 = arith.constant 0 : index
    %c0_0 = arith.constant 0 : index
    %0 = vector.load %arg2[%c0, %c0_0] : memref<128x32xbf16, #tpu.memory_space<vmem>>, vector<128x32xbf16>
    %c0_1 = arith.constant 0 : index
    %c0_2 = arith.constant 0 : index
    %1 = vector.load %arg3[%c0_1, %c0_2] : memref<128x32xbf16, #tpu.memory_space<vmem>>, vector<128x32xbf16>
    %c0_3 = arith.constant 0 : index
    %c0_4 = arith.constant 0 : index
    %2 = vector.load %arg4[%c0_3, %c0_4] : memref<128x1xf32, #tpu.memory_space<vmem>>, vector<128x1xf32>
    %c0_i32 = arith.constant 0 : i32
    %3 = arith.index_cast %c0_i32 : i32 to index
    %c0_5 = arith.constant 0 : index
    %c0_6 = arith.constant 0 : index
    %4 = vector.load %arg1[%3, %c0_5, %c0_6] : memref<8x32x8xbf16, #tpu.memory_space<vmem>>, vector<1x32x8xbf16>
    %5 = vector.shape_cast %4 : vector<1x32x8xbf16> to vector<32x8xbf16>
    %cst = arith.constant dense<0.000000e+00> : vector<128x8xf32>
    %6 = tpu.matmul %0, %5, %cst {dimension_numbers = #tpu.dot_dimension_numbers<[1], [0], [0], [1], [0, 0, 1, 1], [], []>} : vector<128x32xbf16>, vector<32x8xbf16>, vector<128x8xf32> -> vector<128x8xf32>
    %7 = vector.broadcast %2 : vector<128x1xf32> to vector<128x8xf32>
    %8 = arith.addf %6, %7 : vector<128x8xf32>
    %9 = arith.index_cast %c0_i32 : i32 to index
    %c0_7 = arith.constant 0 : index
    %c0_8 = arith.constant 0 : index
    %10 = vector.load %arg8[%9, %c0_7, %c0_8] : memref<8x128x8xf32, #tpu.memory_space<vmem>>, vector<1x128x8xf32>
    %11 = vector.shape_cast %10 : vector<1x128x8xf32> to vector<128x8xf32>
    %12 = vector.shape_cast %8 : vector<128x8xf32> to vector<1x128x8xf32>
    tpu.vector_store %arg8[%9, %c0_7, %c0_8], %12 {strides = array<i32>} : memref<8x128x8xf32, #tpu.memory_space<vmem>>, vector<1x128x8xf32>,
    %c1_i32 = arith.constant 1 : i32
    %13 = arith.index_cast %c1_i32 : i32 to index
    %c0_9 = arith.constant 0 : index
    %c0_10 = arith.constant 0 : index
    %14 = vector.load %arg1[%13, %c0_9, %c0_10] : memref<8x32x8xbf16, #tpu.memory_space<vmem>>, vector<1x32x8xbf16>
    %15 = vector.shape_cast %14 : vector<1x32x8xbf16> to vector<32x8xbf16>
    %cst_11 = arith.constant dense<0.000000e+00> : vector<128x8xf32>
    %16 = tpu.matmul %0, %15, %cst_11 {dimension_numbers = #tpu.dot_dimension_numbers<[1], [0], [0], [1], [0, 0, 1, 1], [], []>} : vector<128x32xbf16>, vector<32x8xbf16>, vector<128x8xf32> -> vector<128x8xf32>
    %17 = vector.broadcast %2 : vector<128x1xf32> to vector<128x8xf32>
    %18 = arith.addf %16, %17 : vector<128x8xf32>
    %19 = arith.index_cast %c1_i32 : i32 to index
    %c0_12 = arith.constant 0 : index
    %c0_13 = arith.constant 0 : index
    %20 = vector.load %arg8[%19, %c0_12, %c0_13] : memref<8x128x8xf32, #tpu.memory_space<vmem>>, vector<1x128x8xf32>
    %21 = vector.shape_cast %20 : vector<1x128x8xf32> to vector<128x8xf32>
    %22 = vector.shape_cast %18 : vector<128x8xf32> to vector<1x128x8xf32>
    tpu.vector_store %arg8[%19, %c0_12, %c0_13], %22 {strides = array<i32>} : memref<8x128x8xf32, #tpu.memory_space<vmem>>, vector<1x128x8xf32>,
    %c2_i32 = arith.constant 2 : i32
    %23 = arith.index_cast %c2_i32 : i32 to index
    %c0_14 = arith.constant 0 : index
    %c0_15 = arith.constant 0 : index
    %24 = vector.load %arg1[%23, %c0_14, %c0_15] : memref<8x32x8xbf16, #tpu.memory_space<vmem>>, vector<1x32x8xbf16>
    %25 = vector.shape_cast %24 : vector<1x32x8xbf16> to vector<32x8xbf16>
    %cst_16 = arith.constant dense<0.000000e+00> : vector<128x8xf32>
    %26 = tpu.matmul %0, %25, %cst_16 {dimension_numbers = #tpu.dot_dimension_numbers<[1], [0], [0], [1], [0, 0, 1, 1], [], []>} : vector<128x32xbf16>, vector<32x8xbf16>, vector<128x8xf32> -> vector<128x8xf32>
    %27 = vector.broadcast %2 : vector<128x1xf32> to vector<128x8xf32>
    %28 = arith.addf %26, %27 : vector<128x8xf32>
    %29 = arith.index_cast %c2_i32 : i32 to index
    %c0_17 = arith.constant 0 : index
    %c0_18 = arith.constant 0 : index
    %30 = vector.load %arg8[%29, %c0_17, %c0_18] : memref<8x128x8xf32, #tpu.memory_space<vmem>>, vector<1x128x8xf32>
    %31 = vector.shape_cast %30 : vector<1x128x8xf32> to vector<128x8xf32>
    %32 = vector.shape_cast %28 : vector<128x8xf32> to vector<1x128x8xf32>
    tpu.vector_store %arg8[%29, %c0_17, %c0_18], %32 {strides = array<i32>} : memref<8x128x8xf32, #tpu.memory_space<vmem>>, vector<1x128x8xf32>,
    %c3_i32 = arith.constant 3 : i32
    %33 = arith.index_cast %c3_i32 : i32 to index
    %c0_19 = arith.constant 0 : index
    %c0_20 = arith.constant 0 : index
    %34 = vector.load %arg1[%33, %c0_19, %c0_20] : memref<8x32x8xbf16, #tpu.memory_space<vmem>>, vector<1x32x8xbf16>
    %35 = vector.shape_cast %34 : vector<1x32x8xbf16> to vector<32x8xbf16>
    %cst_21 = arith.constant dense<0.000000e+00> : vector<128x8xf32>
    %36 = tpu.matmul %0, %35, %cst_21 {dimension_numbers = #tpu.dot_dimension_numbers<[1], [0], [0], [1], [0, 0, 1, 1], [], []>} : vector<128x32xbf16>, vector<32x8xbf16>, vector<128x8xf32> -> vector<128x8xf32>
    %37 = vector.broadcast %2 : vector<128x1xf32> to vector<128x8xf32>
    %38 = arith.addf %36, %37 : vector<128x8xf32>
    %39 = arith.index_cast %c3_i32 : i32 to index
    %c0_22 = arith.constant 0 : index
    %c0_23 = arith.constant 0 : index
    %40 = vector.load %arg8[%39, %c0_22, %c0_23] : memref<8x128x8xf32, #tpu.memory_space<vmem>>, vector<1x128x8xf32>
    %41 = vector.shape_cast %40 : vector<1x128x8xf32> to vector<128x8xf32>
    %42 = vector.shape_cast %38 : vector<128x8xf32> to vector<1x128x8xf32>
    tpu.vector_store %arg8[%39, %c0_22, %c0_23], %42 {strides = array<i32>} : memref<8x128x8xf32, #tpu.memory_space<vmem>>, vector<1x128x8xf32>,
    %c4_i32 = arith.constant 4 : i32
    %43 = arith.index_cast %c4_i32 : i32 to index
    %c0_24 = arith.constant 0 : index
    %c0_25 = arith.constant 0 : index
    %44 = vector.load %arg1[%43, %c0_24, %c0_25] : memref<8x32x8xbf16, #tpu.memory_space<vmem>>, vector<1x32x8xbf16>
    %45 = vector.shape_cast %44 : vector<1x32x8xbf16> to vector<32x8xbf16>
    %cst_26 = arith.constant dense<0.000000e+00> : vector<128x8xf32>
    %46 = tpu.matmul %0, %45, %cst_26 {dimension_numbers = #tpu.dot_dimension_numbers<[1], [0], [0], [1], [0, 0, 1, 1], [], []>} : vector<128x32xbf16>, vector<32x8xbf16>, vector<128x8xf32> -> vector<128x8xf32>
    %47 = vector.broadcast %2 : vector<128x1xf32> to vector<128x8xf32>
    %48 = arith.addf %46, %47 : vector<128x8xf32>
    %49 = arith.index_cast %c4_i32 : i32 to index
    %c0_27 = arith.constant 0 : index
    %c0_28 = arith.constant 0 : index
    %50 = vector.load %arg8[%49, %c0_27, %c0_28] : memref<8x128x8xf32, #tpu.memory_space<vmem>>, vector<1x128x8xf32>
    %51 = vector.shape_cast %50 : vector<1x128x8xf32> to vector<128x8xf32>
    %52 = vector.shape_cast %48 : vector<128x8xf32> to vector<1x128x8xf32>
    tpu.vector_store %arg8[%49, %c0_27, %c0_28], %52 {strides = array<i32>} : memref<8x128x8xf32, #tpu.memory_space<vmem>>, vector<1x128x8xf32>,
    %c5_i32 = arith.constant 5 : i32
    %53 = arith.index_cast %c5_i32 : i32 to index
    %c0_29 = arith.constant 0 : index
    %c0_30 = arith.constant 0 : index
    %54 = vector.load %arg1[%53, %c0_29, %c0_30] : memref<8x32x8xbf16, #tpu.memory_space<vmem>>, vector<1x32x8xbf16>
    %55 = vector.shape_cast %54 : vector<1x32x8xbf16> to vector<32x8xbf16>
    %cst_31 = arith.constant dense<0.000000e+00> : vector<128x8xf32>
    %56 = tpu.matmul %0, %55, %cst_31 {dimension_numbers = #tpu.dot_dimension_numbers<[1], [0], [0], [1], [0, 0, 1, 1], [], []>} : vector<128x32xbf16>, vector<32x8xbf16>, vector<128x8xf32> -> vector<128x8xf32>
    %57 = vector.broadcast %2 : vector<128x1xf32> to vector<128x8xf32>
    %58 = arith.addf %56, %57 : vector<128x8xf32>
    %59 = arith.index_cast %c5_i32 : i32 to index
    %c0_32 = arith.constant 0 : index
    %c0_33 = arith.constant 0 : index
    %60 = vector.load %arg8[%59, %c0_32, %c0_33] : memref<8x128x8xf32, #tpu.memory_space<vmem>>, vector<1x128x8xf32>
    %61 = vector.shape_cast %60 : vector<1x128x8xf32> to vector<128x8xf32>
    %62 = vector.shape_cast %58 : vector<128x8xf32> to vector<1x128x8xf32>
    tpu.vector_store %arg8[%59, %c0_32, %c0_33], %62 {strides = array<i32>} : memref<8x128x8xf32, #tpu.memory_space<vmem>>, vector<1x128x8xf32>,
    %c6_i32 = arith.constant 6 : i32
    %63 = arith.index_cast %c6_i32 : i32 to index
    %c0_34 = arith.constant 0 : index
    %c0_35 = arith.constant 0 : index
    %64 = vector.load %arg1[%63, %c0_34, %c0_35] : memref<8x32x8xbf16, #tpu.memory_space<vmem>>, vector<1x32x8xbf16>
    %65 = vector.shape_cast %64 : vector<1x32x8xbf16> to vector<32x8xbf16>
    %cst_36 = arith.constant dense<0.000000e+00> : vector<128x8xf32>
    %66 = tpu.matmul %0, %65, %cst_36 {dimension_numbers = #tpu.dot_dimension_numbers<[1], [0], [0], [1], [0, 0, 1, 1], [], []>} : vector<128x32xbf16>, vector<32x8xbf16>, vector<128x8xf32> -> vector<128x8xf32>
    %67 = vector.broadcast %2 : vector<128x1xf32> to vector<128x8xf32>
    %68 = arith.addf %66, %67 : vector<128x8xf32>
    %69 = arith.index_cast %c6_i32 : i32 to index
    %c0_37 = arith.constant 0 : index
    %c0_38 = arith.constant 0 : index
    %70 = vector.load %arg8[%69, %c0_37, %c0_38] : memref<8x128x8xf32, #tpu.memory_space<vmem>>, vector<1x128x8xf32>
    %71 = vector.shape_cast %70 : vector<1x128x8xf32> to vector<128x8xf32>
    %72 = vector.shape_cast %68 : vector<128x8xf32> to vector<1x128x8xf32>
    tpu.vector_store %arg8[%69, %c0_37, %c0_38], %72 {strides = array<i32>} : memref<8x128x8xf32, #tpu.memory_space<vmem>>, vector<1x128x8xf32>,
    %c7_i32 = arith.constant 7 : i32
    %73 = arith.index_cast %c7_i32 : i32 to index
    %c0_39 = arith.constant 0 : index
    %c0_40 = arith.constant 0 : index
    %74 = vector.load %arg1[%73, %c0_39, %c0_40] : memref<8x32x8xbf16, #tpu.memory_space<vmem>>, vector<1x32x8xbf16>
    %75 = vector.shape_cast %74 : vector<1x32x8xbf16> to vector<32x8xbf16>
    %cst_41 = arith.constant dense<0.000000e+00> : vector<128x8xf32>
    %76 = tpu.matmul %0, %75, %cst_41 {dimension_numbers = #tpu.dot_dimension_numbers<[1], [0], [0], [1], [0, 0, 1, 1], [], []>} : vector<128x32xbf16>, vector<32x8xbf16>, vector<128x8xf32> -> vector<128x8xf32>
    %77 = vector.broadcast %2 : vector<128x1xf32> to vector<128x8xf32>
    %78 = arith.addf %76, %77 : vector<128x8xf32>
    %79 = arith.index_cast %c7_i32 : i32 to index
    %c0_42 = arith.constant 0 : index
    %c0_43 = arith.constant 0 : index
    %80 = vector.load %arg8[%79, %c0_42, %c0_43] : memref<8x128x8xf32, #tpu.memory_space<vmem>>, vector<1x128x8xf32>
    %81 = vector.shape_cast %80 : vector<1x128x8xf32> to vector<128x8xf32>
    %82 = vector.shape_cast %78 : vector<128x8xf32> to vector<1x128x8xf32>
    tpu.vector_store %arg8[%79, %c0_42, %c0_43], %82 {strides = array<i32>} : memref<8x128x8xf32, #tpu.memory_space<vmem>>, vector<1x128x8xf32>,
    %c8_i32 = arith.constant 8 : i32
    %cst_44 = arith.constant 0.000000e+00 : f32
    %83 = vector.broadcast %cst_44 : f32 to vector<32x8xf32>
    %cst_45 = arith.constant 0.000000e+00 : f32
    %84 = vector.broadcast %cst_45 : f32 to vector<32x8xf32>
    %c0_i32_46 = arith.constant 0 : i32
    %85 = arith.index_cast %c0_i32_46 : i32 to index
    %c0_47 = arith.constant 0 : index
    %c0_48 = arith.constant 0 : index
    %86 = vector.load %arg8[%85, %c0_47, %c0_48] : memref<8x128x8xf32, #tpu.memory_space<vmem>>, vector<1x128x8xf32>
    %87 = vector.shape_cast %86 : vector<1x128x8xf32> to vector<128x8xf32>
    %88 = arith.truncf %83 : vector<32x8xf32> to vector<32x8xbf16>
    %cst_49 = arith.constant dense<0.000000e+00> : vector<128x8xf32>
    %89 = tpu.matmul %1, %88, %cst_49 {dimension_numbers = #tpu.dot_dimension_numbers<[1], [0], [0], [1], [0, 0, 1, 1], [], []>} : vector<128x32xbf16>, vector<32x8xbf16>, vector<128x8xf32> -> vector<128x8xf32>
    %90 = arith.addf %87, %89 : vector<128x8xf32>
    %91 = vector.extract_strided_slice %90 {offsets = [0, 0], sizes = [32, 8], strides = [1, 1]} : vector<128x8xf32> to vector<32x8xf32>
    %cst_50 = arith.constant 5.000000e-01 : f32
    %92 = vector.broadcast %cst_50 : f32 to vector<32x8xf32>
    %93 = arith.mulf %92, %91 : vector<32x8xf32>
    %94 = math.tanh %93 : vector<32x8xf32>
    %cst_51 = arith.constant 5.000000e-01 : f32
    %95 = vector.broadcast %cst_51 : f32 to vector<32x8xf32>
    %96 = arith.mulf %95, %94 : vector<32x8xf32>
    %cst_52 = arith.constant 5.000000e-01 : f32
    %97 = vector.broadcast %cst_52 : f32 to vector<32x8xf32>
    %98 = arith.addf %96, %97 : vector<32x8xf32>
    %99 = vector.extract_strided_slice %90 {offsets = [32, 0], sizes = [32, 8], strides = [1, 1]} : vector<128x8xf32> to vector<32x8xf32>
    %cst_53 = arith.constant 5.000000e-01 : f32
    %100 = vector.broadcast %cst_53 : f32 to vector<32x8xf32>
    %101 = arith.mulf %100, %99 : vector<32x8xf32>
    %102 = math.tanh %101 : vector<32x8xf32>
    %cst_54 = arith.constant 5.000000e-01 : f32
    %103 = vector.broadcast %cst_54 : f32 to vector<32x8xf32>
    %104 = arith.mulf %103, %102 : vector<32x8xf32>
    %cst_55 = arith.constant 5.000000e-01 : f32
    %105 = vector.broadcast %cst_55 : f32 to vector<32x8xf32>
    %106 = arith.addf %104, %105 : vector<32x8xf32>
    %107 = vector.extract_strided_slice %90 {offsets = [64, 0], sizes = [32, 8], strides = [1, 1]} : vector<128x8xf32> to vector<32x8xf32>
    %108 = math.tanh %107 : vector<32x8xf32>
    %109 = vector.extract_strided_slice %90 {offsets = [96, 0], sizes = [32, 8], strides = [1, 1]} : vector<128x8xf32> to vector<32x8xf32>
    %cst_56 = arith.constant 5.000000e-01 : f32
    %110 = vector.broadcast %cst_56 : f32 to vector<32x8xf32>
    %111 = arith.mulf %110, %109 : vector<32x8xf32>
    %112 = math.tanh %111 : vector<32x8xf32>
    %cst_57 = arith.constant 5.000000e-01 : f32
    %113 = vector.broadcast %cst_57 : f32 to vector<32x8xf32>
    %114 = arith.mulf %113, %112 : vector<32x8xf32>
    %cst_58 = arith.constant 5.000000e-01 : f32
    %115 = vector.broadcast %cst_58 : f32 to vector<32x8xf32>
    %116 = arith.addf %114, %115 : vector<32x8xf32>
    %117 = arith.mulf %106, %84 : vector<32x8xf32>
    %118 = arith.mulf %98, %108 : vector<32x8xf32>
    %119 = arith.addf %117, %118 : vector<32x8xf32>
    %120 = math.tanh %119 : vector<32x8xf32>
    %121 = arith.mulf %116, %120 : vector<32x8xf32>
    %c1_i32_59 = arith.constant 1 : i32
    %122 = arith.index_cast %c1_i32_59 : i32 to index
    %c0_60 = arith.constant 0 : index
    %c0_61 = arith.constant 0 : index
    %123 = vector.load %arg8[%122, %c0_60, %c0_61] : memref<8x128x8xf32, #tpu.memory_space<vmem>>, vector<1x128x8xf32>
    %124 = vector.shape_cast %123 : vector<1x128x8xf32> to vector<128x8xf32>
    %125 = arith.truncf %121 : vector<32x8xf32> to vector<32x8xbf16>
    %cst_62 = arith.constant dense<0.000000e+00> : vector<128x8xf32>
    %126 = tpu.matmul %1, %125, %cst_62 {dimension_numbers = #tpu.dot_dimension_numbers<[1], [0], [0], [1], [0, 0, 1, 1], [], []>} : vector<128x32xbf16>, vector<32x8xbf16>, vector<128x8xf32> -> vector<128x8xf32>
    %127 = arith.addf %124, %126 : vector<128x8xf32>
    %128 = vector.extract_strided_slice %127 {offsets = [0, 0], sizes = [32, 8], strides = [1, 1]} : vector<128x8xf32> to vector<32x8xf32>
    %cst_63 = arith.constant 5.000000e-01 : f32
    %129 = vector.broadcast %cst_63 : f32 to vector<32x8xf32>
    %130 = arith.mulf %129, %128 : vector<32x8xf32>
    %131 = math.tanh %130 : vector<32x8xf32>
    %cst_64 = arith.constant 5.000000e-01 : f32
    %132 = vector.broadcast %cst_64 : f32 to vector<32x8xf32>
    %133 = arith.mulf %132, %131 : vector<32x8xf32>
    %cst_65 = arith.constant 5.000000e-01 : f32
    %134 = vector.broadcast %cst_65 : f32 to vector<32x8xf32>
    %135 = arith.addf %133, %134 : vector<32x8xf32>
    %136 = vector.extract_strided_slice %127 {offsets = [32, 0], sizes = [32, 8], strides = [1, 1]} : vector<128x8xf32> to vector<32x8xf32>
    %cst_66 = arith.constant 5.000000e-01 : f32
    %137 = vector.broadcast %cst_66 : f32 to vector<32x8xf32>
    %138 = arith.mulf %137, %136 : vector<32x8xf32>
    %139 = math.tanh %138 : vector<32x8xf32>
    %cst_67 = arith.constant 5.000000e-01 : f32
    %140 = vector.broadcast %cst_67 : f32 to vector<32x8xf32>
    %141 = arith.mulf %140, %139 : vector<32x8xf32>
    %cst_68 = arith.constant 5.000000e-01 : f32
    %142 = vector.broadcast %cst_68 : f32 to vector<32x8xf32>
    %143 = arith.addf %141, %142 : vector<32x8xf32>
    %144 = vector.extract_strided_slice %127 {offsets = [64, 0], sizes = [32, 8], strides = [1, 1]} : vector<128x8xf32> to vector<32x8xf32>
    %145 = math.tanh %144 : vector<32x8xf32>
    %146 = vector.extract_strided_slice %127 {offsets = [96, 0], sizes = [32, 8], strides = [1, 1]} : vector<128x8xf32> to vector<32x8xf32>
    %cst_69 = arith.constant 5.000000e-01 : f32
    %147 = vector.broadcast %cst_69 : f32 to vector<32x8xf32>
    %148 = arith.mulf %147, %146 : vector<32x8xf32>
    %149 = math.tanh %148 : vector<32x8xf32>
    %cst_70 = arith.constant 5.000000e-01 : f32
    %150 = vector.broadcast %cst_70 : f32 to vector<32x8xf32>
    %151 = arith.mulf %150, %149 : vector<32x8xf32>
    %cst_71 = arith.constant 5.000000e-01 : f32
    %152 = vector.broadcast %cst_71 : f32 to vector<32x8xf32>
    %153 = arith.addf %151, %152 : vector<32x8xf32>
    %154 = arith.mulf %143, %119 : vector<32x8xf32>
    %155 = arith.mulf %135, %145 : vector<32x8xf32>
    %156 = arith.addf %154, %155 : vector<32x8xf32>
    %157 = math.tanh %156 : vector<32x8xf32>
    %158 = arith.mulf %153, %157 : vector<32x8xf32>
    %c2_i32_72 = arith.constant 2 : i32
    %159 = arith.index_cast %c2_i32_72 : i32 to index
    %c0_73 = arith.constant 0 : index
    %c0_74 = arith.constant 0 : index
    %160 = vector.load %arg8[%159, %c0_73, %c0_74] : memref<8x128x8xf32, #tpu.memory_space<vmem>>, vector<1x128x8xf32>
    %161 = vector.shape_cast %160 : vector<1x128x8xf32> to vector<128x8xf32>
    %162 = arith.truncf %158 : vector<32x8xf32> to vector<32x8xbf16>
    %cst_75 = arith.constant dense<0.000000e+00> : vector<128x8xf32>
    %163 = tpu.matmul %1, %162, %cst_75 {dimension_numbers = #tpu.dot_dimension_numbers<[1], [0], [0], [1], [0, 0, 1, 1], [], []>} : vector<128x32xbf16>, vector<32x8xbf16>, vector<128x8xf32> -> vector<128x8xf32>
    %164 = arith.addf %161, %163 : vector<128x8xf32>
    %165 = vector.extract_strided_slice %164 {offsets = [0, 0], sizes = [32, 8], strides = [1, 1]} : vector<128x8xf32> to vector<32x8xf32>
    %cst_76 = arith.constant 5.000000e-01 : f32
    %166 = vector.broadcast %cst_76 : f32 to vector<32x8xf32>
    %167 = arith.mulf %166, %165 : vector<32x8xf32>
    %168 = math.tanh %167 : vector<32x8xf32>
    %cst_77 = arith.constant 5.000000e-01 : f32
    %169 = vector.broadcast %cst_77 : f32 to vector<32x8xf32>
    %170 = arith.mulf %169, %168 : vector<32x8xf32>
    %cst_78 = arith.constant 5.000000e-01 : f32
    %171 = vector.broadcast %cst_78 : f32 to vector<32x8xf32>
    %172 = arith.addf %170, %171 : vector<32x8xf32>
    %173 = vector.extract_strided_slice %164 {offsets = [32, 0], sizes = [32, 8], strides = [1, 1]} : vector<128x8xf32> to vector<32x8xf32>
    %cst_79 = arith.constant 5.000000e-01 : f32
    %174 = vector.broadcast %cst_79 : f32 to vector<32x8xf32>
    %175 = arith.mulf %174, %173 : vector<32x8xf32>
    %176 = math.tanh %175 : vector<32x8xf32>
    %cst_80 = arith.constant 5.000000e-01 : f32
    %177 = vector.broadcast %cst_80 : f32 to vector<32x8xf32>
    %178 = arith.mulf %177, %176 : vector<32x8xf32>
    %cst_81 = arith.constant 5.000000e-01 : f32
    %179 = vector.broadcast %cst_81 : f32 to vector<32x8xf32>
    %180 = arith.addf %178, %179 : vector<32x8xf32>
    %181 = vector.extract_strided_slice %164 {offsets = [64, 0], sizes = [32, 8], strides = [1, 1]} : vector<128x8xf32> to vector<32x8xf32>
    %182 = math.tanh %181 : vector<32x8xf32>
    %183 = vector.extract_strided_slice %164 {offsets = [96, 0], sizes = [32, 8], strides = [1, 1]} : vector<128x8xf32> to vector<32x8xf32>
    %cst_82 = arith.constant 5.000000e-01 : f32
    %184 = vector.broadcast %cst_82 : f32 to vector<32x8xf32>
    %185 = arith.mulf %184, %183 : vector<32x8xf32>
    %186 = math.tanh %185 : vector<32x8xf32>
    %cst_83 = arith.constant 5.000000e-01 : f32
    %187 = vector.broadcast %cst_83 : f32 to vector<32x8xf32>
    %188 = arith.mulf %187, %186 : vector<32x8xf32>
    %cst_84 = arith.constant 5.000000e-01 : f32
    %189 = vector.broadcast %cst_84 : f32 to vector<32x8xf32>
    %190 = arith.addf %188, %189 : vector<32x8xf32>
    %191 = arith.mulf %180, %156 : vector<32x8xf32>
    %192 = arith.mulf %172, %182 : vector<32x8xf32>
    %193 = arith.addf %191, %192 : vector<32x8xf32>
    %194 = math.tanh %193 : vector<32x8xf32>
    %195 = arith.mulf %190, %194 : vector<32x8xf32>
    %c3_i32_85 = arith.constant 3 : i32
    %196 = arith.index_cast %c3_i32_85 : i32 to index
    %c0_86 = arith.constant 0 : index
    %c0_87 = arith.constant 0 : index
    %197 = vector.load %arg8[%196, %c0_86, %c0_87] : memref<8x128x8xf32, #tpu.memory_space<vmem>>, vector<1x128x8xf32>
    %198 = vector.shape_cast %197 : vector<1x128x8xf32> to vector<128x8xf32>
    %199 = arith.truncf %195 : vector<32x8xf32> to vector<32x8xbf16>
    %cst_88 = arith.constant dense<0.000000e+00> : vector<128x8xf32>
    %200 = tpu.matmul %1, %199, %cst_88 {dimension_numbers = #tpu.dot_dimension_numbers<[1], [0], [0], [1], [0, 0, 1, 1], [], []>} : vector<128x32xbf16>, vector<32x8xbf16>, vector<128x8xf32> -> vector<128x8xf32>
    %201 = arith.addf %198, %200 : vector<128x8xf32>
    %202 = vector.extract_strided_slice %201 {offsets = [0, 0], sizes = [32, 8], strides = [1, 1]} : vector<128x8xf32> to vector<32x8xf32>
    %cst_89 = arith.constant 5.000000e-01 : f32
    %203 = vector.broadcast %cst_89 : f32 to vector<32x8xf32>
    %204 = arith.mulf %203, %202 : vector<32x8xf32>
    %205 = math.tanh %204 : vector<32x8xf32>
    %cst_90 = arith.constant 5.000000e-01 : f32
    %206 = vector.broadcast %cst_90 : f32 to vector<32x8xf32>
    %207 = arith.mulf %206, %205 : vector<32x8xf32>
    %cst_91 = arith.constant 5.000000e-01 : f32
    %208 = vector.broadcast %cst_91 : f32 to vector<32x8xf32>
    %209 = arith.addf %207, %208 : vector<32x8xf32>
    %210 = vector.extract_strided_slice %201 {offsets = [32, 0], sizes = [32, 8], strides = [1, 1]} : vector<128x8xf32> to vector<32x8xf32>
    %cst_92 = arith.constant 5.000000e-01 : f32
    %211 = vector.broadcast %cst_92 : f32 to vector<32x8xf32>
    %212 = arith.mulf %211, %210 : vector<32x8xf32>
    %213 = math.tanh %212 : vector<32x8xf32>
    %cst_93 = arith.constant 5.000000e-01 : f32
    %214 = vector.broadcast %cst_93 : f32 to vector<32x8xf32>
    %215 = arith.mulf %214, %213 : vector<32x8xf32>
    %cst_94 = arith.constant 5.000000e-01 : f32
    %216 = vector.broadcast %cst_94 : f32 to vector<32x8xf32>
    %217 = arith.addf %215, %216 : vector<32x8xf32>
    %218 = vector.extract_strided_slice %201 {offsets = [64, 0], sizes = [32, 8], strides = [1, 1]} : vector<128x8xf32> to vector<32x8xf32>
    %219 = math.tanh %218 : vector<32x8xf32>
    %220 = vector.extract_strided_slice %201 {offsets = [96, 0], sizes = [32, 8], strides = [1, 1]} : vector<128x8xf32> to vector<32x8xf32>
    %cst_95 = arith.constant 5.000000e-01 : f32
    %221 = vector.broadcast %cst_95 : f32 to vector<32x8xf32>
    %222 = arith.mulf %221, %220 : vector<32x8xf32>
    %223 = math.tanh %222 : vector<32x8xf32>
    %cst_96 = arith.constant 5.000000e-01 : f32
    %224 = vector.broadcast %cst_96 : f32 to vector<32x8xf32>
    %225 = arith.mulf %224, %223 : vector<32x8xf32>
    %cst_97 = arith.constant 5.000000e-01 : f32
    %226 = vector.broadcast %cst_97 : f32 to vector<32x8xf32>
    %227 = arith.addf %225, %226 : vector<32x8xf32>
    %228 = arith.mulf %217, %193 : vector<32x8xf32>
    %229 = arith.mulf %209, %219 : vector<32x8xf32>
    %230 = arith.addf %228, %229 : vector<32x8xf32>
    %231 = math.tanh %230 : vector<32x8xf32>
    %232 = arith.mulf %227, %231 : vector<32x8xf32>
    %c4_i32_98 = arith.constant 4 : i32
    %233 = arith.index_cast %c4_i32_98 : i32 to index
    %c0_99 = arith.constant 0 : index
    %c0_100 = arith.constant 0 : index
    %234 = vector.load %arg8[%233, %c0_99, %c0_100] : memref<8x128x8xf32, #tpu.memory_space<vmem>>, vector<1x128x8xf32>
    %235 = vector.shape_cast %234 : vector<1x128x8xf32> to vector<128x8xf32>
    %236 = arith.truncf %232 : vector<32x8xf32> to vector<32x8xbf16>
    %cst_101 = arith.constant dense<0.000000e+00> : vector<128x8xf32>
    %237 = tpu.matmul %1, %236, %cst_101 {dimension_numbers = #tpu.dot_dimension_numbers<[1], [0], [0], [1], [0, 0, 1, 1], [], []>} : vector<128x32xbf16>, vector<32x8xbf16>, vector<128x8xf32> -> vector<128x8xf32>
    %238 = arith.addf %235, %237 : vector<128x8xf32>
    %239 = vector.extract_strided_slice %238 {offsets = [0, 0], sizes = [32, 8], strides = [1, 1]} : vector<128x8xf32> to vector<32x8xf32>
    %cst_102 = arith.constant 5.000000e-01 : f32
    %240 = vector.broadcast %cst_102 : f32 to vector<32x8xf32>
    %241 = arith.mulf %240, %239 : vector<32x8xf32>
    %242 = math.tanh %241 : vector<32x8xf32>
    %cst_103 = arith.constant 5.000000e-01 : f32
    %243 = vector.broadcast %cst_103 : f32 to vector<32x8xf32>
    %244 = arith.mulf %243, %242 : vector<32x8xf32>
    %cst_104 = arith.constant 5.000000e-01 : f32
    %245 = vector.broadcast %cst_104 : f32 to vector<32x8xf32>
    %246 = arith.addf %244, %245 : vector<32x8xf32>
    %247 = vector.extract_strided_slice %238 {offsets = [32, 0], sizes = [32, 8], strides = [1, 1]} : vector<128x8xf32> to vector<32x8xf32>
    %cst_105 = arith.constant 5.000000e-01 : f32
    %248 = vector.broadcast %cst_105 : f32 to vector<32x8xf32>
    %249 = arith.mulf %248, %247 : vector<32x8xf32>
    %250 = math.tanh %249 : vector<32x8xf32>
    %cst_106 = arith.constant 5.000000e-01 : f32
    %251 = vector.broadcast %cst_106 : f32 to vector<32x8xf32>
    %252 = arith.mulf %251, %250 : vector<32x8xf32>
    %cst_107 = arith.constant 5.000000e-01 : f32
    %253 = vector.broadcast %cst_107 : f32 to vector<32x8xf32>
    %254 = arith.addf %252, %253 : vector<32x8xf32>
    %255 = vector.extract_strided_slice %238 {offsets = [64, 0], sizes = [32, 8], strides = [1, 1]} : vector<128x8xf32> to vector<32x8xf32>
    %256 = math.tanh %255 : vector<32x8xf32>
    %257 = vector.extract_strided_slice %238 {offsets = [96, 0], sizes = [32, 8], strides = [1, 1]} : vector<128x8xf32> to vector<32x8xf32>
    %cst_108 = arith.constant 5.000000e-01 : f32
    %258 = vector.broadcast %cst_108 : f32 to vector<32x8xf32>
    %259 = arith.mulf %258, %257 : vector<32x8xf32>
    %260 = math.tanh %259 : vector<32x8xf32>
    %cst_109 = arith.constant 5.000000e-01 : f32
    %261 = vector.broadcast %cst_109 : f32 to vector<32x8xf32>
    %262 = arith.mulf %261, %260 : vector<32x8xf32>
    %cst_110 = arith.constant 5.000000e-01 : f32
    %263 = vector.broadcast %cst_110 : f32 to vector<32x8xf32>
    %264 = arith.addf %262, %263 : vector<32x8xf32>
    %265 = arith.mulf %254, %230 : vector<32x8xf32>
    %266 = arith.mulf %246, %256 : vector<32x8xf32>
    %267 = arith.addf %265, %266 : vector<32x8xf32>
    %268 = math.tanh %267 : vector<32x8xf32>
    %269 = arith.mulf %264, %268 : vector<32x8xf32>
    %c5_i32_111 = arith.constant 5 : i32
    %270 = arith.index_cast %c5_i32_111 : i32 to index
    %c0_112 = arith.constant 0 : index
    %c0_113 = arith.constant 0 : index
    %271 = vector.load %arg8[%270, %c0_112, %c0_113] : memref<8x128x8xf32, #tpu.memory_space<vmem>>, vector<1x128x8xf32>
    %272 = vector.shape_cast %271 : vector<1x128x8xf32> to vector<128x8xf32>
    %273 = arith.truncf %269 : vector<32x8xf32> to vector<32x8xbf16>
    %cst_114 = arith.constant dense<0.000000e+00> : vector<128x8xf32>
    %274 = tpu.matmul %1, %273, %cst_114 {dimension_numbers = #tpu.dot_dimension_numbers<[1], [0], [0], [1], [0, 0, 1, 1], [], []>} : vector<128x32xbf16>, vector<32x8xbf16>, vector<128x8xf32> -> vector<128x8xf32>
    %275 = arith.addf %272, %274 : vector<128x8xf32>
    %276 = vector.extract_strided_slice %275 {offsets = [0, 0], sizes = [32, 8], strides = [1, 1]} : vector<128x8xf32> to vector<32x8xf32>
    %cst_115 = arith.constant 5.000000e-01 : f32
    %277 = vector.broadcast %cst_115 : f32 to vector<32x8xf32>
    %278 = arith.mulf %277, %276 : vector<32x8xf32>
    %279 = math.tanh %278 : vector<32x8xf32>
    %cst_116 = arith.constant 5.000000e-01 : f32
    %280 = vector.broadcast %cst_116 : f32 to vector<32x8xf32>
    %281 = arith.mulf %280, %279 : vector<32x8xf32>
    %cst_117 = arith.constant 5.000000e-01 : f32
    %282 = vector.broadcast %cst_117 : f32 to vector<32x8xf32>
    %283 = arith.addf %281, %282 : vector<32x8xf32>
    %284 = vector.extract_strided_slice %275 {offsets = [32, 0], sizes = [32, 8], strides = [1, 1]} : vector<128x8xf32> to vector<32x8xf32>
    %cst_118 = arith.constant 5.000000e-01 : f32
    %285 = vector.broadcast %cst_118 : f32 to vector<32x8xf32>
    %286 = arith.mulf %285, %284 : vector<32x8xf32>
    %287 = math.tanh %286 : vector<32x8xf32>
    %cst_119 = arith.constant 5.000000e-01 : f32
    %288 = vector.broadcast %cst_119 : f32 to vector<32x8xf32>
    %289 = arith.mulf %288, %287 : vector<32x8xf32>
    %cst_120 = arith.constant 5.000000e-01 : f32
    %290 = vector.broadcast %cst_120 : f32 to vector<32x8xf32>
    %291 = arith.addf %289, %290 : vector<32x8xf32>
    %292 = vector.extract_strided_slice %275 {offsets = [64, 0], sizes = [32, 8], strides = [1, 1]} : vector<128x8xf32> to vector<32x8xf32>
    %293 = math.tanh %292 : vector<32x8xf32>
    %294 = vector.extract_strided_slice %275 {offsets = [96, 0], sizes = [32, 8], strides = [1, 1]} : vector<128x8xf32> to vector<32x8xf32>
    %cst_121 = arith.constant 5.000000e-01 : f32
    %295 = vector.broadcast %cst_121 : f32 to vector<32x8xf32>
    %296 = arith.mulf %295, %294 : vector<32x8xf32>
    %297 = math.tanh %296 : vector<32x8xf32>
    %cst_122 = arith.constant 5.000000e-01 : f32
    %298 = vector.broadcast %cst_122 : f32 to vector<32x8xf32>
    %299 = arith.mulf %298, %297 : vector<32x8xf32>
    %cst_123 = arith.constant 5.000000e-01 : f32
    %300 = vector.broadcast %cst_123 : f32 to vector<32x8xf32>
    %301 = arith.addf %299, %300 : vector<32x8xf32>
    %302 = arith.mulf %291, %267 : vector<32x8xf32>
    %303 = arith.mulf %283, %293 : vector<32x8xf32>
    %304 = arith.addf %302, %303 : vector<32x8xf32>
    %305 = math.tanh %304 : vector<32x8xf32>
    %306 = arith.mulf %301, %305 : vector<32x8xf32>
    %c6_i32_124 = arith.constant 6 : i32
    %307 = arith.index_cast %c6_i32_124 : i32 to index
    %c0_125 = arith.constant 0 : index
    %c0_126 = arith.constant 0 : index
    %308 = vector.load %arg8[%307, %c0_125, %c0_126] : memref<8x128x8xf32, #tpu.memory_space<vmem>>, vector<1x128x8xf32>
    %309 = vector.shape_cast %308 : vector<1x128x8xf32> to vector<128x8xf32>
    %310 = arith.truncf %306 : vector<32x8xf32> to vector<32x8xbf16>
    %cst_127 = arith.constant dense<0.000000e+00> : vector<128x8xf32>
    %311 = tpu.matmul %1, %310, %cst_127 {dimension_numbers = #tpu.dot_dimension_numbers<[1], [0], [0], [1], [0, 0, 1, 1], [], []>} : vector<128x32xbf16>, vector<32x8xbf16>, vector<128x8xf32> -> vector<128x8xf32>
    %312 = arith.addf %309, %311 : vector<128x8xf32>
    %313 = vector.extract_strided_slice %312 {offsets = [0, 0], sizes = [32, 8], strides = [1, 1]} : vector<128x8xf32> to vector<32x8xf32>
    %cst_128 = arith.constant 5.000000e-01 : f32
    %314 = vector.broadcast %cst_128 : f32 to vector<32x8xf32>
    %315 = arith.mulf %314, %313 : vector<32x8xf32>
    %316 = math.tanh %315 : vector<32x8xf32>
    %cst_129 = arith.constant 5.000000e-01 : f32
    %317 = vector.broadcast %cst_129 : f32 to vector<32x8xf32>
    %318 = arith.mulf %317, %316 : vector<32x8xf32>
    %cst_130 = arith.constant 5.000000e-01 : f32
    %319 = vector.broadcast %cst_130 : f32 to vector<32x8xf32>
    %320 = arith.addf %318, %319 : vector<32x8xf32>
    %321 = vector.extract_strided_slice %312 {offsets = [32, 0], sizes = [32, 8], strides = [1, 1]} : vector<128x8xf32> to vector<32x8xf32>
    %cst_131 = arith.constant 5.000000e-01 : f32
    %322 = vector.broadcast %cst_131 : f32 to vector<32x8xf32>
    %323 = arith.mulf %322, %321 : vector<32x8xf32>
    %324 = math.tanh %323 : vector<32x8xf32>
    %cst_132 = arith.constant 5.000000e-01 : f32
    %325 = vector.broadcast %cst_132 : f32 to vector<32x8xf32>
    %326 = arith.mulf %325, %324 : vector<32x8xf32>
    %cst_133 = arith.constant 5.000000e-01 : f32
    %327 = vector.broadcast %cst_133 : f32 to vector<32x8xf32>
    %328 = arith.addf %326, %327 : vector<32x8xf32>
    %329 = vector.extract_strided_slice %312 {offsets = [64, 0], sizes = [32, 8], strides = [1, 1]} : vector<128x8xf32> to vector<32x8xf32>
    %330 = math.tanh %329 : vector<32x8xf32>
    %331 = vector.extract_strided_slice %312 {offsets = [96, 0], sizes = [32, 8], strides = [1, 1]} : vector<128x8xf32> to vector<32x8xf32>
    %cst_134 = arith.constant 5.000000e-01 : f32
    %332 = vector.broadcast %cst_134 : f32 to vector<32x8xf32>
    %333 = arith.mulf %332, %331 : vector<32x8xf32>
    %334 = math.tanh %333 : vector<32x8xf32>
    %cst_135 = arith.constant 5.000000e-01 : f32
    %335 = vector.broadcast %cst_135 : f32 to vector<32x8xf32>
    %336 = arith.mulf %335, %334 : vector<32x8xf32>
    %cst_136 = arith.constant 5.000000e-01 : f32
    %337 = vector.broadcast %cst_136 : f32 to vector<32x8xf32>
    %338 = arith.addf %336, %337 : vector<32x8xf32>
    %339 = arith.mulf %328, %304 : vector<32x8xf32>
    %340 = arith.mulf %320, %330 : vector<32x8xf32>
    %341 = arith.addf %339, %340 : vector<32x8xf32>
    %342 = math.tanh %341 : vector<32x8xf32>
    %343 = arith.mulf %338, %342 : vector<32x8xf32>
    %c7_i32_137 = arith.constant 7 : i32
    %344 = arith.index_cast %c7_i32_137 : i32 to index
    %c0_138 = arith.constant 0 : index
    %c0_139 = arith.constant 0 : index
    %345 = vector.load %arg8[%344, %c0_138, %c0_139] : memref<8x128x8xf32, #tpu.memory_space<vmem>>, vector<1x128x8xf32>
    %346 = vector.shape_cast %345 : vector<1x128x8xf32> to vector<128x8xf32>
    %347 = arith.truncf %343 : vector<32x8xf32> to vector<32x8xbf16>
    %cst_140 = arith.constant dense<0.000000e+00> : vector<128x8xf32>
    %348 = tpu.matmul %1, %347, %cst_140 {dimension_numbers = #tpu.dot_dimension_numbers<[1], [0], [0], [1], [0, 0, 1, 1], [], []>} : vector<128x32xbf16>, vector<32x8xbf16>, vector<128x8xf32> -> vector<128x8xf32>
    %349 = arith.addf %346, %348 : vector<128x8xf32>
    %350 = vector.extract_strided_slice %349 {offsets = [0, 0], sizes = [32, 8], strides = [1, 1]} : vector<128x8xf32> to vector<32x8xf32>
    %cst_141 = arith.constant 5.000000e-01 : f32
    %351 = vector.broadcast %cst_141 : f32 to vector<32x8xf32>
    %352 = arith.mulf %351, %350 : vector<32x8xf32>
    %353 = math.tanh %352 : vector<32x8xf32>
    %cst_142 = arith.constant 5.000000e-01 : f32
    %354 = vector.broadcast %cst_142 : f32 to vector<32x8xf32>
    %355 = arith.mulf %354, %353 : vector<32x8xf32>
    %cst_143 = arith.constant 5.000000e-01 : f32
    %356 = vector.broadcast %cst_143 : f32 to vector<32x8xf32>
    %357 = arith.addf %355, %356 : vector<32x8xf32>
    %358 = vector.extract_strided_slice %349 {offsets = [32, 0], sizes = [32, 8], strides = [1, 1]} : vector<128x8xf32> to vector<32x8xf32>
    %cst_144 = arith.constant 5.000000e-01 : f32
    %359 = vector.broadcast %cst_144 : f32 to vector<32x8xf32>
    %360 = arith.mulf %359, %358 : vector<32x8xf32>
    %361 = math.tanh %360 : vector<32x8xf32>
    %cst_145 = arith.constant 5.000000e-01 : f32
    %362 = vector.broadcast %cst_145 : f32 to vector<32x8xf32>
    %363 = arith.mulf %362, %361 : vector<32x8xf32>
    %cst_146 = arith.constant 5.000000e-01 : f32
    %364 = vector.broadcast %cst_146 : f32 to vector<32x8xf32>
    %365 = arith.addf %363, %364 : vector<32x8xf32>
    %366 = vector.extract_strided_slice %349 {offsets = [64, 0], sizes = [32, 8], strides = [1, 1]} : vector<128x8xf32> to vector<32x8xf32>
    %367 = math.tanh %366 : vector<32x8xf32>
    %368 = vector.extract_strided_slice %349 {offsets = [96, 0], sizes = [32, 8], strides = [1, 1]} : vector<128x8xf32> to vector<32x8xf32>
    %cst_147 = arith.constant 5.000000e-01 : f32
    %369 = vector.broadcast %cst_147 : f32 to vector<32x8xf32>
    %370 = arith.mulf %369, %368 : vector<32x8xf32>
    %371 = math.tanh %370 : vector<32x8xf32>
    %cst_148 = arith.constant 5.000000e-01 : f32
    %372 = vector.broadcast %cst_148 : f32 to vector<32x8xf32>
    %373 = arith.mulf %372, %371 : vector<32x8xf32>
    %cst_149 = arith.constant 5.000000e-01 : f32
    %374 = vector.broadcast %cst_149 : f32 to vector<32x8xf32>
    %375 = arith.addf %373, %374 : vector<32x8xf32>
    %376 = arith.mulf %365, %341 : vector<32x8xf32>
    %377 = arith.mulf %357, %367 : vector<32x8xf32>
    %378 = arith.addf %376, %377 : vector<32x8xf32>
    %379 = math.tanh %378 : vector<32x8xf32>
    %380 = arith.mulf %375, %379 : vector<32x8xf32>
    %c8_i32_150 = arith.constant 8 : i32
    %c0_151 = arith.constant 0 : index
    %c0_152 = arith.constant 0 : index
    %381 = vector.load %arg5[%c0_151, %c0_152] : memref<8x32xf32, #tpu.memory_space<vmem>>, vector<8x32xf32>
    %cst_153 = arith.constant dense<0.000000e+00> : vector<8x8xf32>
    %382 = tpu.matmul %381, %380, %cst_153 {dimension_numbers = #tpu.dot_dimension_numbers<[1], [0], [0], [1], [0, 0, 1, 1], [], []>} : vector<8x32xf32>, vector<32x8xf32>, vector<8x8xf32> -> vector<8x8xf32>
    %c0_154 = arith.constant 0 : index
    %c0_155 = arith.constant 0 : index
    %383 = vector.load %arg6[%c0_154, %c0_155] : memref<8x1xf32, #tpu.memory_space<vmem>>, vector<8x1xf32>
    %384 = vector.broadcast %383 : vector<8x1xf32> to vector<8x8xf32>
    %385 = arith.addf %382, %384 : vector<8x8xf32>
    %c0_156 = arith.constant 0 : index
    %c0_157 = arith.constant 0 : index
    %386 = vector.load %arg7[%c0_156, %c0_157] : memref<8x8xf32, #tpu.memory_space<vmem>>, vector<8x8xf32>
    tpu.vector_store %arg7[%c0_156, %c0_157], %385 {strides = array<i32>} : memref<8x8xf32, #tpu.memory_space<vmem>>, vector<8x8xf32>,
    return
  }
  func.func @transform_0(%arg0: i32) -> (i32, i32, i32) {
    %c0_i32 = arith.constant 0 : i32
    %c0_i32_0 = arith.constant 0 : i32
    %c0_i32_1 = arith.constant 0 : i32
    return %c0_i32, %c0_i32_0, %arg0 : i32, i32, i32
  }
  func.func @transform_1(%arg0: i32) -> (i32, i32) {
    %c0_i32 = arith.constant 0 : i32
    %c0_i32_0 = arith.constant 0 : i32
    %c0_i32_1 = arith.constant 0 : i32
    return %c0_i32, %c0_i32_0 : i32, i32
  }
  func.func @transform_2(%arg0: i32) -> (i32, i32) {
    %c0_i32 = arith.constant 0 : i32
    %c0_i32_0 = arith.constant 0 : i32
    %c0_i32_1 = arith.constant 0 : i32
    return %c0_i32, %c0_i32_0 : i32, i32
  }
  func.func @transform_3(%arg0: i32) -> (i32, i32) {
    %c0_i32 = arith.constant 0 : i32
    %c0_i32_0 = arith.constant 0 : i32
    %c0_i32_1 = arith.constant 0 : i32
    return %c0_i32, %c0_i32_0 : i32, i32
  }
  func.func @transform_4(%arg0: i32) -> (i32, i32) {
    %c0_i32 = arith.constant 0 : i32
    %c0_i32_0 = arith.constant 0 : i32
    %c0_i32_1 = arith.constant 0 : i32
    return %c0_i32, %c0_i32_0 : i32, i32
  }
  func.func @transform_5(%arg0: i32) -> (i32, i32) {
    %c0_i32 = arith.constant 0 : i32
    %c0_i32_0 = arith.constant 0 : i32
    %c0_i32_1 = arith.constant 0 : i32
    return %c0_i32, %c0_i32_0 : i32, i32
  }
  func.func @transform_6(%arg0: i32) -> (i32, i32) {
    %c0_i32 = arith.constant 0 : i32
    %c0_i32_0 = arith.constant 0 : i32
    return %c0_i32, %arg0 : i32, i32
  }
}

</mosaic_0001>

<bundles_post_ra>
// kernel: tpu_custom_call.1
= control target key start
LH: loop header
LB: loop body
LE: loop exit
PB: predicated region body
PF: predicated region fallthrough
CT: control target
= control target key end

     0   :  { %v4133_v3 = vmov 0   ;;  %vm209_vm0 = vcmask 261120   ;;  %s5082_s0 = inlined_call_operand.vmem [shape: bf16[8,32,8], index: 0, kind: input, shape index: {}]   ;;  %s5083_s1 = inlined_call_operand.vmem [shape: bf16[128,32], index: 1, kind: input, shape index: {}]   ;;  %s5084_s2 = inlined_call_operand.vmem [shape: bf16[128,32], index: 2, kind: input, shape index: {}]   ;;  %s5085_s3 = inlined_call_operand.vmem [shape: f32[128,1], index: 3, kind: input, shape index: {}]   ;;  %s5086_s4 = inlined_call_operand.vmem [shape: f32[8,32], index: 4, kind: input, shape index: {}]   ;;  %s5087_s5 = inlined_call_operand.vmem [shape: f32[8,1], index: 5, kind: input, shape index: {}]   ;;  %s5088_s6 = inlined_call_operand.hbm [shape: f32[8,8], index: 6, kind: output, shape index: {}]  }
   0x1   :  { %v3741_v0 = vld [vmem:[%s5082_s0] sm:$0xff]   ;;  %v3742_v1 = vld [vmem:[%s5082_s0 + $0x10] sm:$0xff]   ;;  %v3743_v2 = vld [vmem:[%s5082_s0 + $0x8] sm:$0xff]   ;;  %3739 = vset.pattern.permute.xlu0 %v4133_v3  ;;  %3740 = vset.pattern.permute.xlu1 %v4133_v3 }
   0x2   :  { %3399 = vmatprep.subr.bf16.mxu0 %v3741_v0  ;;  %3419 = vmatprep.subr.bf16.mxu1 %v3742_v1  ;;  %v3744_v4 = vld [vmem:[%s5082_s0 + $0x18] sm:$0xff]   ;;  %v4189_v5 = vld [vmem:[%s5083_s1] sm:$0xff]   ;;  %v4199_v6 = vld [vmem:[%s5083_s1 + $0x8] sm:$0xff]  }
   0x3   :  { %3400 = vmatpush3.bf16.msra.mxu0 %v3741_v0  ;;  %3420 = vmatpush3.bf16.msra.mxu1 %v3742_v1  ;;  %v4204_v7 = vld [vmem:[%s5083_s1 + $0x10] sm:$0xff]   ;;  %v4217_v8 = vld [vmem:[%s5083_s1 + $0x18] sm:$0xff]   ;;  %v3753_v9 = vld [vmem:[%s5082_s0 + $0x20] sm:$0xff]  }
   0x4   :  { %3401 = vmatprep.subr.bf16.mxu0 %v3743_v2  ;;  %3421 = vmatprep.subr.bf16.mxu1 %v3744_v4  ;;  %v4225_v10 = vld [vmem:[%s5083_s1 + $0x20] sm:$0xff]   ;;  %v3754_v11 = vld [vmem:[%s5082_s0 + $0x30] sm:$0xff]   ;;  %v3755_v12 = vld [vmem:[%s5082_s0 + $0x28] sm:$0xff]  }
   0x5   :  { %3403 = vmatprep.mubr.msk.bf16.mxu0 %vm209_vm0, %v4189_v5  ;;  %3423 = vmatprep.mubr.msk.bf16.mxu1 %vm209_vm0, %v4189_v5  ;;  %v3756_v13 = vld [vmem:[%s5082_s0 + $0x38] sm:$0xff]   ;;  %v3757_v14 = vld [vmem:[%s5082_s0 + $0x40] sm:$0xff]   ;;  %v3758_v15 = vld [vmem:[%s5082_s0 + $0x50] sm:$0xff]  }
   0x6   :  { %v57_v16 = vld [vmem:[%s5085_s3] sm:$0xff]  ;;  %v4259_v18 = vld [vmem:[%s5083_s1 + $0x28] sm:$0xff]   ;;  %v4264_v19 = vld [vmem:[%s5083_s1 + $0x30] sm:$0xff]  }
   0x7   :  { %3402 = vmatpush3.bf16.msra.mxu0 %v3743_v2  ;;  %3422 = vmatpush3.bf16.msra.mxu1 %v3744_v4  ;;  %v61_v17 = vld [vmem:[%s5085_s3 + $0x20] sm:$0xff]  ;;  %v58_v20 = vld [vmem:[%s5085_s3 + $0x8] sm:$0xff]  ;;  %v59_v22 = vld [vmem:[%s5085_s3 + $0x10] sm:$0xff] }
   0x8   :  { %3439 = vmatprep.subr.bf16.mxu0 %v3753_v9  ;;  %3459 = vmatprep.subr.bf16.mxu1 %v3754_v11  ;;  %v62_v21 = vld [vmem:[%s5085_s3 + $0x28] sm:$0xff]  ;;  %v60_v23 = vld [vmem:[%s5085_s3 + $0x18] sm:$0xff]  ;;  %v63_v25 = vld [vmem:[%s5085_s3 + $0x30] sm:$0xff] }
   0x9   :  { %79 = vperm.xlu0 %3739, %v57_v16   ;;  %99 = vperm.xlu1 %3740, %v61_v17   ;;  %v4289_v24 = vld [vmem:[%s5083_s1 + $0x38] sm:$0xff]   ;;  %v65_v27 = vld [vmem:[%s5085_s3 + $0x40] sm:$0xff]  ;;  %v66_v28 = vld [vmem:[%s5085_s3 + $0x48] sm:$0xff] }
   0xa   :  { %3404 = vmatmul.mubr.msk.bf16.vlgmr.msra.gmra.mrb[0].mxu0 %vm209_vm0, %v4199_v6  ;;  %3424 = vmatmul.mubr.msk.bf16.vlgmr.msra.gmra.mrb[0].mxu1 %vm209_vm0, %v4199_v6  ;;  %v64_v26 = vld [vmem:[%s5085_s3 + $0x38] sm:$0xff] }
   0xb   :  { %3407 = vmatprep.mubr.msk.bf16.mxu0 %vm209_vm0, %v4204_v7  ;;  %3427 = vmatprep.mubr.msk.bf16.mxu1 %vm209_vm0, %v4204_v7 }
   0xc   :  { %3440 = vmatpush3.bf16.msra.mxu0 %v3753_v9  ;;  %3460 = vmatpush3.bf16.msra.mxu1 %v3754_v11 }
   0xd   :  { %3441 = vmatprep.subr.bf16.mxu0 %v3755_v12  ;;  %3461 = vmatprep.subr.bf16.mxu1 %v3756_v13 }
   0xe   :  { %84 = vperm.xlu0 %3739, %v58_v20   ;;  %104 = vperm.xlu1 %3740, %v62_v21  }
  0x10   :  { %3442 = vmatpush3.bf16.msra.mxu0 %v3755_v12  ;;  %3462 = vmatpush3.bf16.msra.mxu1 %v3756_v13 }
  0x11   :  { %3479 = vmatprep.subr.bf16.mxu0 %v3757_v14  ;;  %3499 = vmatprep.subr.bf16.mxu1 %v3758_v15 }
  0x12   :  { %3408 = vmatmul.mubr.msk.bf16.gmra.mrb[4].mxu0 %vm209_vm0, %v4217_v8  ;;  %3428 = vmatmul.mubr.msk.bf16.gmra.mrb[4].mxu1 %vm209_vm0, %v4217_v8 }
  0x13   :  { %3411 = vmatprep.mubr.msk.bf16.mxu0 %vm209_vm0, %v4225_v10  ;;  %3431 = vmatprep.mubr.msk.bf16.mxu1 %vm209_vm0, %v4225_v10 }
  0x14   :  { %89 = vperm.xlu0 %3739, %v59_v22   ;;  %94 = vperm.xlu1 %3740, %v60_v23  }
  0x18   :  { %109 = vperm.xlu0 %3739, %v63_v25   ;;  %114 = vperm.xlu1 %3740, %v64_v26  }
  0x1a   :  { %3412 = vmatmul.mubr.msk.bf16.gmra.mrb[8].mxu0 %vm209_vm0, %v4259_v18  ;;  %3432 = vmatmul.mubr.msk.bf16.gmra.mrb[8].mxu1 %vm209_vm0, %v4259_v18 }
  0x1b   :  { %3415 = vmatprep.mubr.msk.bf16.mxu0 %vm209_vm0, %v4264_v19  ;;  %3435 = vmatprep.mubr.msk.bf16.mxu1 %vm209_vm0, %v4264_v19 }
  0x22   :  { %3416 = vmatmul.mubr.msk.bf16.gmra.mrb[12].mxu0 %vm209_vm0, %v4289_v24  ;;  %3436 = vmatmul.mubr.msk.bf16.gmra.mrb[12].mxu1 %vm209_vm0, %v4289_v24 }
  0x23   :  { %3443 = vmatprep.mubr.msk.bf16.mxu0 %vm209_vm0, %v4189_v5  ;;  %3463 = vmatprep.mubr.msk.bf16.mxu1 %vm209_vm0, %v4189_v5 }
  0x24   :  { %11 = vsyncpa [#allocation4], 0  ;;  %119 = vperm.xlu0 %3739, %v65_v27   ;;  %v67_v29 = vld [vmem:[%s5085_s3 + $0x50] sm:$0xff]  ;;  %124 = vperm.xlu1 %3740, %v66_v28   ;;  %v3759_v30 = vld [vmem:[%s5082_s0 + $0x48] sm:$0xff]   ;;  %vm331_vm1 = vcmask 64512   ;;  %vm4135_vm2 = vmmov 0  }
  0x25   :  { %v3760_v31 = vld [vmem:[%s5082_s0 + $0x58] sm:$0xff]   ;;  %v69_v33 = vld [vmem:[%s5085_s3 + $0x60] sm:$0xff]  ;;  %v3762_v35 = vld [vmem:[%s5082_s0 + $0x70] sm:$0xff]   ;;  %s4137_s23 = smov [#allocation3]  }
  0x26   :  { %v68_v32 = vld [vmem:[%s5085_s3 + $0x58] sm:$0xff]  ;;  %v3761_v34 = vld [vmem:[%s5082_s0 + $0x60] sm:$0xff]   ;;  %v70_v36 = vld [vmem:[%s5085_s3 + $0x68] sm:$0xff]  ;;  %s3038_s24 = sshll.u32 %s4137_s23, 4  ;;  %s3039_s24 = int_to_ptr.vmem [resolvable:$true] %s3038_s24 }
  0x27   :  { %v71_v37 = vld [vmem:[%s5085_s3 + $0x70] sm:$0xff]  ;;  %v72_v38 = vld [vmem:[%s5085_s3 + $0x78] sm:$0xff]  ;;  %v2952_v39 = vld [vmem:[%s5087_s5] sm:$0xff]  ;;  %s4109_s1 = scalar_lea.vmem %s3039_s24, 128  ;;  %p4114_p1 = scmp.lt.s32.totalorder %s3039_s24, %s3039_s24 }
  0x28   :  { %129 = vperm.xlu0 %3739, %v67_v29   ;;  %134 = vperm.xlu1 %3740, %v68_v32   ;;  %v3763_v40 = vld [vmem:[%s5082_s0 + $0x68] sm:$0xff]   ;;  %v3764_v41 = vld [vmem:[%s5082_s0 + $0x78] sm:$0xff]   ;;  %v3765_v42 = vld [vmem:[%s5084_s2] sm:$0xff]   ;;  %p4110_p0 = scmp.ne.s32.totalorder %s3039_s24, %s4109_s1  ;;  %p4115_p2 = scmp.lt.s32.totalorder %s4109_s1, %s4109_s1 }
  0x29   :  { %v3766_v43 = vld [vmem:[%s5084_s2 + $0x8] sm:$0xff]   ;;  %v3767_v44 = vld [vmem:[%s5084_s2 + $0x10] sm:$0xff]   ;;  %v3768_v45 = vld [vmem:[%s5084_s2 + $0x18] sm:$0xff]  }
  0x2a   :  { %3444 = vmatmul.mubr.msk.bf16.vlgmr.msra.gmra.mrb[16].mxu0 %vm209_vm0, %v4199_v6  ;;  %3464 = vmatmul.mubr.msk.bf16.vlgmr.msra.gmra.mrb[16].mxu1 %vm209_vm0, %v4199_v6  ;;  %v3769_v46 = vld [vmem:[%s5084_s2 + $0x20] sm:$0xff]   ;;  %v3770_v47 = vld [vmem:[%s5084_s2 + $0x28] sm:$0xff]   ;;  %v3771_v48 = vld [vmem:[%s5084_s2 + $0x30] sm:$0xff]   ;;  %p4116_p3 = por %p4115_p2, %p4114_p1 }
  0x2b   :  { %3447 = vmatprep.mubr.msk.bf16.mxu0 %vm209_vm0, %v4204_v7  ;;  %3467 = vmatprep.mubr.msk.bf16.mxu1 %vm209_vm0, %v4204_v7  ;;  %v3772_v49 = vld [vmem:[%s5084_s2 + $0x38] sm:$0xff]  }
  0x2c   :  { %3480 = vmatpush3.bf16.msra.mxu0 %v3757_v14  ;;  %3500 = vmatpush3.bf16.msra.mxu1 %v3758_v15  ;;  %p4117_p4 = pnand %p4116_p3, %p4110_p0 }
  0x2d   :  { %3481 = vmatprep.subr.bf16.mxu0 %v3759_v30  ;;  %3501 = vmatprep.subr.bf16.mxu1 %v3760_v31 }
  0x2e   :  { %139 = vperm.xlu0 %3739, %v69_v33   ;;  %144 = vperm.xlu1 %3740, %v70_v36  }
  0x30   :  { %3482 = vmatpush3.bf16.msra.mxu0 %v3759_v30  ;;  %3502 = vmatpush3.bf16.msra.mxu1 %v3760_v31 }
  0x31   :  { %3519 = vmatprep.subr.bf16.mxu0 %v3761_v34  ;;  %3539 = vmatprep.subr.bf16.mxu1 %v3762_v35 }
  0x32   :  { %3448 = vmatmul.mubr.msk.bf16.gmra.mrb[20].mxu0 %vm209_vm0, %v4217_v8  ;;  %3468 = vmatmul.mubr.msk.bf16.gmra.mrb[20].mxu1 %vm209_vm0, %v4217_v8 }
  0x33   :  { %3451 = vmatprep.mubr.msk.bf16.mxu0 %vm209_vm0, %v4225_v10  ;;  %3471 = vmatprep.mubr.msk.bf16.mxu1 %vm209_vm0, %v4225_v10 }
  0x34   :  { %149 = vperm.xlu0 %3739, %v71_v37   ;;  %154 = vperm.xlu1 %3740, %v72_v38  }
  0x38   :  { %2955 = vperm.xlu0 %3739, %v2952_v39  }
  0x3a   :  { %3452 = vmatmul.mubr.msk.bf16.gmra.mrb[24].mxu0 %vm209_vm0, %v4259_v18  ;;  %3472 = vmatmul.mubr.msk.bf16.gmra.mrb[24].mxu1 %vm209_vm0, %v4259_v18 }
  0x3b   :  { %3455 = vmatprep.mubr.msk.bf16.mxu0 %vm209_vm0, %v4264_v19  ;;  %3475 = vmatprep.mubr.msk.bf16.mxu1 %vm209_vm0, %v4264_v19 }
  0x42   :  { %3456 = vmatmul.mubr.msk.bf16.gmra.mrb[28].mxu0 %vm209_vm0, %v4289_v24  ;;  %3476 = vmatmul.mubr.msk.bf16.gmra.mrb[28].mxu1 %vm209_vm0, %v4289_v24 }
  0x43   :  { %3483 = vmatprep.mubr.msk.bf16.mxu0 %vm209_vm0, %v4189_v5  ;;  %3503 = vmatprep.mubr.msk.bf16.mxu1 %vm209_vm0, %v4189_v5 }
  0x4a   :  { %3484 = vmatmul.mubr.msk.bf16.vlgmr.msra.gmra.mrb[32].mxu0 %vm209_vm0, %v4199_v6  ;;  %3504 = vmatmul.mubr.msk.bf16.vlgmr.msra.gmra.mrb[32].mxu1 %vm209_vm0, %v4199_v6 }
  0x4b   :  { %3487 = vmatprep.mubr.msk.bf16.mxu0 %vm209_vm0, %v4204_v7  ;;  %3507 = vmatprep.mubr.msk.bf16.mxu1 %vm209_vm0, %v4204_v7 }
  0x4c   :  { %3520 = vmatpush3.bf16.msra.mxu0 %v3761_v34  ;;  %3540 = vmatpush3.bf16.msra.mxu1 %v3762_v35 }
  0x4d   :  { %3521 = vmatprep.subr.bf16.mxu0 %v3763_v40  ;;  %3541 = vmatprep.subr.bf16.mxu1 %v3764_v41 }
  0x50   :  { %3522 = vmatpush3.bf16.msra.mxu0 %v3763_v40  ;;  %3542 = vmatpush3.bf16.msra.mxu1 %v3764_v41 }
  0x51   :  { %3559 = vmatprep.subr.bf16.mxu0 %v4133_v3 }
  0x52   :  { %3488 = vmatmul.mubr.msk.bf16.gmra.mrb[36].mxu0 %vm209_vm0, %v4217_v8  ;;  %3508 = vmatmul.mubr.msk.bf16.gmra.mrb[36].mxu1 %vm209_vm0, %v4217_v8 }
  0x53   :  { %3491 = vmatprep.mubr.msk.bf16.mxu0 %vm209_vm0, %v4225_v10  ;;  %3511 = vmatprep.mubr.msk.bf16.mxu1 %vm209_vm0, %v4225_v10 }
  0x5a   :  { %3492 = vmatmul.mubr.msk.bf16.gmra.mrb[40].mxu0 %vm209_vm0, %v4259_v18  ;;  %3512 = vmatmul.mubr.msk.bf16.gmra.mrb[40].mxu1 %vm209_vm0, %v4259_v18 }
  0x5b   :  { %3495 = vmatprep.mubr.msk.bf16.mxu0 %vm209_vm0, %v4264_v19  ;;  %3515 = vmatprep.mubr.msk.bf16.mxu1 %vm209_vm0, %v4264_v19 }
  0x62   :  { %3496 = vmatmul.mubr.msk.bf16.gmra.mrb[44].mxu0 %vm209_vm0, %v4289_v24  ;;  %3516 = vmatmul.mubr.msk.bf16.gmra.mrb[44].mxu1 %vm209_vm0, %v4289_v24 }
  0x63   :  { %3523 = vmatprep.mubr.msk.bf16.mxu0 %vm209_vm0, %v4189_v5  ;;  %3543 = vmatprep.mubr.msk.bf16.mxu1 %vm209_vm0, %v4189_v5 }
  0x6a   :  { %3524 = vmatmul.mubr.msk.bf16.vlgmr.msra.gmra.mrb[48].mxu0 %vm209_vm0, %v4199_v6  ;;  %3544 = vmatmul.mubr.msk.bf16.vlgmr.msra.gmra.mrb[48].mxu1 %vm209_vm0, %v4199_v6 }
  0x6b   :  { %3527 = vmatprep.mubr.msk.bf16.mxu0 %vm209_vm0, %v4204_v7  ;;  %3547 = vmatprep.mubr.msk.bf16.mxu1 %vm209_vm0, %v4204_v7 }
  0x6c   :  { %3560 = vmatpush3.bf16.msra.mxu0 %v4133_v3 }
  0x72   :  { %3528 = vmatmul.mubr.msk.bf16.gmra.mrb[52].mxu0 %vm209_vm0, %v4217_v8  ;;  %3548 = vmatmul.mubr.msk.bf16.gmra.mrb[52].mxu1 %vm209_vm0, %v4217_v8 }
  0x73   :  { %3531 = vmatprep.mubr.msk.bf16.mxu0 %vm209_vm0, %v4225_v10  ;;  %3551 = vmatprep.mubr.msk.bf16.mxu1 %vm209_vm0, %v4225_v10 }
  0x7a   :  { %3532 = vmatmul.mubr.msk.bf16.gmra.mrb[56].mxu0 %vm209_vm0, %v4259_v18  ;;  %3552 = vmatmul.mubr.msk.bf16.gmra.mrb[56].mxu1 %vm209_vm0, %v4259_v18 }
  0x7b   :  { %3535 = vmatprep.mubr.msk.bf16.mxu0 %vm209_vm0, %v4264_v19  ;;  %3555 = vmatprep.mubr.msk.bf16.mxu1 %vm209_vm0, %v4264_v19 }
  0x82   :  { %3536 = vmatmul.mubr.msk.bf16.gmra.mrb[60].mxu0 %vm209_vm0, %v4289_v24  ;;  %3556 = vmatmul.mubr.msk.bf16.gmra.mrb[60].mxu1 %vm209_vm0, %v4289_v24 }
  0x83   :  { %3561 = vmatprep.mubr.msk.bf16.mxu0 %vm209_vm0, %v3765_v42  ;;  %3581 = vmatprep.mubr.msk.bf16.mxu1 %vm209_vm0, %v3765_v42 }
  0x88   :  { %v4478_v50 = vpop.permute.xlu0 %79  ;;  %v4480_v51 = vpop.permute.xlu1 %99 }
  0x8a   :  { %3562 = vmatmul.mubr.msk.bf16.vlgmr.msra.gmra.mrb[64].mxu0 %vm209_vm0, %v3766_v43 }
  0x8b   :  { %3565 = vmatprep.mubr.msk.bf16.mxu0 %vm209_vm0, %v3767_v44 }
  0x8d   :  { %v4482_v52 = vpop.permute.xlu0 %84  ;;  %v4484_v53 = vpop.permute.xlu1 %104 }
  0x92   :  { %3566 = vmatmul.mubr.msk.bf16.gmra.mrb[68].mxu0 %vm209_vm0, %v3768_v45 }
  0x93   :  { %3569 = vmatprep.mubr.msk.bf16.mxu0 %vm209_vm0, %v3769_v46  ;;  %v4486_v54 = vpop.permute.xlu0 %89  ;;  %v4488_v55 = vpop.permute.xlu1 %94 }
  0x97   :  { %v4490_v56 = vpop.permute.xlu0 %109  ;;  %v4492_v57 = vpop.permute.xlu1 %114 }
  0x9a   :  { %3570 = vmatmul.mubr.msk.bf16.gmra.mrb[72].mxu0 %vm209_vm0, %v3770_v47 }
  0x9b   :  { %3573 = vmatprep.mubr.msk.bf16.mxu0 %vm209_vm0, %v3771_v48 }
  0xa2   :  { %3574 = vmatmul.mubr.msk.bf16.gmra.mrb[76].mxu0 %vm209_vm0, %v3772_v49 }
  0xa3   :  { %3601 = vmatprep.mubr.msk.bf16.mxu0 %vm209_vm0, %v3765_v42  ;;  %v4494_v58 = vpop.permute.xlu0 %119  ;;  %v4496_v60 = vpop.permute.xlu1 %124 }
  0xa7   :  { %v4513_v12 = vpop.permute.xlu0 %129  ;;  %v4516_v14 = vpop.permute.xlu1 %134 }
  0xad   :  { %v4533_v30 = vpop.permute.xlu0 %139  ;;  %v4536_v32 = vpop.permute.xlu1 %144 }
  0xb3   :  { %v4552_v48 = vpop.permute.xlu0 %149 }
  0xdd   :  { %v3405_v59 = vpop.f32.mrb[0].mxu0  ;;  %v3425_v63 = vpop.f32.mrb[0].mxu1 }
  0xde   :  { %v277_v61 = vadd.f32 %v3405_v59, %v4486_v54  ;;  %v268_v62 = vpop.f32.mrb[1].mxu0  ;;  %v408_v2 = vadd.f32 %v3425_v63, %v4486_v54  ;;  %v399_v3 = vpop.f32.mrb[1].mxu1 }
  0xdf   :  { %v269_v0 = vadd.f32 %v268_v62, %v4478_v50  ;;  %v3406_v1 = vpop.f32.mrb[2].mxu0  ;;  %v400_v6 = vadd.f32 %v399_v3, %v4478_v50  ;;  %v3426_v7 = vpop.f32.mrb[2].mxu1 }
  0xe0   :  { %334 = vst.msk [vmem:[#allocation2 + $0x10] sm:$0xff] %vm331_vm1, %v277_v61  ;;  %v280_v4 = vadd.f32 %v3406_v1, %v4488_v55  ;;  %v271_v5 = vpop.f32.mrb[3].mxu0  ;;  %465 = vst.msk [vmem:[#allocation2 + $0x90] sm:$0xff] %vm331_vm1, %v408_v2  ;;  %v411_v9 = vadd.f32 %v3426_v7, %v4488_v55  ;;  %v402_v10 = vpop.f32.mrb[3].mxu1 }
  0xe1   :  { %332 = vst.msk [vmem:[#allocation2] sm:$0xff] %vm331_vm1, %v269_v0  ;;  %v272_v8 = vadd.f32 %v271_v5, %v4482_v52  ;;  %463 = vst.msk [vmem:[#allocation2 + $0x80] sm:$0xff] %vm331_vm1, %v400_v6  ;;  %v403_v11 = vadd.f32 %v402_v10, %v4482_v52  ;;  %v4556_v59 = vpop.permute.xlu1 %154 }
  0xe2   :  { %335 = vst.msk [vmem:[#allocation2 + $0x18] sm:$0xff] %vm331_vm1, %v280_v4  ;;  %466 = vst.msk [vmem:[#allocation2 + $0x98] sm:$0xff] %vm331_vm1, %v411_v9 }
  0xe3   :  { %333 = vst.msk [vmem:[#allocation2 + $0x8] sm:$0xff] %vm331_vm1, %v272_v8  ;;  %464 = vst.msk [vmem:[#allocation2 + $0x88] sm:$0xff] %vm331_vm1, %v403_v11 }
  0xe5   :  { %v3409_v13 = vpop.f32.mrb[4].mxu0  ;;  %v3429_v17 = vpop.f32.mrb[4].mxu1 }
  0xe6   :  { %v293_v15 = vadd.f32 %v3409_v13, %v4490_v56  ;;  %v284_v16 = vpop.f32.mrb[5].mxu0  ;;  %v424_v20 = vadd.f32 %v3429_v17, %v4490_v56  ;;  %v415_v21 = vpop.f32.mrb[5].mxu1 }
  0xe7   :  { %v285_v18 = vadd.f32 %v284_v16, %v4480_v51  ;;  %v3410_v19 = vpop.f32.mrb[6].mxu0  ;;  %v416_v24 = vadd.f32 %v415_v21, %v4480_v51  ;;  %v3430_v25 = vpop.f32.mrb[6].mxu1 }
  0xe8   :  { %338 = vst.msk [vmem:[#allocation2 + $0x30] sm:$0xff] %vm331_vm1, %v293_v15  ;;  %v296_v22 = vadd.f32 %v3410_v19, %v4492_v57  ;;  %v287_v23 = vpop.f32.mrb[7].mxu0  ;;  %469 = vst.msk [vmem:[#allocation2 + $0xb0] sm:$0xff] %vm331_vm1, %v424_v20  ;;  %v427_v27 = vadd.f32 %v3430_v25, %v4492_v57  ;;  %v418_v28 = vpop.f32.mrb[7].mxu1 }
  0xe9   :  { %336 = vst.msk [vmem:[#allocation2 + $0x20] sm:$0xff] %vm331_vm1, %v285_v18  ;;  %v288_v26 = vadd.f32 %v287_v23, %v4484_v53  ;;  %467 = vst.msk [vmem:[#allocation2 + $0xa0] sm:$0xff] %vm331_vm1, %v416_v24  ;;  %v419_v29 = vadd.f32 %v418_v28, %v4484_v53 }
  0xea   :  { %339 = vst.msk [vmem:[#allocation2 + $0x38] sm:$0xff] %vm331_vm1, %v296_v22  ;;  %470 = vst.msk [vmem:[#allocation2 + $0xb8] sm:$0xff] %vm331_vm1, %v427_v27 }
  0xeb   :  { %337 = vst.msk [vmem:[#allocation2 + $0x28] sm:$0xff] %vm331_vm1, %v288_v26  ;;  %468 = vst.msk [vmem:[#allocation2 + $0xa8] sm:$0xff] %vm331_vm1, %v419_v29 }
  0xed   :  { %v3413_v31 = vpop.f32.mrb[8].mxu0  ;;  %v3433_v35 = vpop.f32.mrb[8].mxu1 }
  0xee   :  { %v309_v33 = vadd.f32 %v3413_v31, %v4513_v12  ;;  %v300_v34 = vpop.f32.mrb[9].mxu0  ;;  %v440_v38 = vadd.f32 %v3433_v35, %v4513_v12  ;;  %v431_v39 = vpop.f32.mrb[9].mxu1 }
  0xef   :  { %v301_v36 = vadd.f32 %v300_v34, %v4494_v58  ;;  %v3414_v37 = vpop.f32.mrb[10].mxu0  ;;  %v432_v42 = vadd.f32 %v431_v39, %v4494_v58  ;;  %v3434_v43 = vpop.f32.mrb[10].mxu1 }
  0xf0   :  { %342 = vst.msk [vmem:[#allocation2 + $0x50] sm:$0xff] %vm331_vm1, %v309_v33  ;;  %v312_v40 = vadd.f32 %v3414_v37, %v4516_v14  ;;  %v303_v41 = vpop.f32.mrb[11].mxu0  ;;  %473 = vst.msk [vmem:[#allocation2 + $0xd0] sm:$0xff] %vm331_vm1, %v440_v38  ;;  %v443_v45 = vadd.f32 %v3434_v43, %v4516_v14  ;;  %v434_v46 = vpop.f32.mrb[11].mxu1 }
  0xf1   :  { %340 = vst.msk [vmem:[#allocation2 + $0x40] sm:$0xff] %vm331_vm1, %v301_v36  ;;  %v304_v44 = vadd.f32 %v303_v41, %v4496_v60  ;;  %471 = vst.msk [vmem:[#allocation2 + $0xc0] sm:$0xff] %vm331_vm1, %v432_v42  ;;  %v435_v47 = vadd.f32 %v434_v46, %v4496_v60 }
  0xf2   :  { %343 = vst.msk [vmem:[#allocation2 + $0x58] sm:$0xff] %vm331_vm1, %v312_v40  ;;  %474 = vst.msk [vmem:[#allocation2 + $0xd8] sm:$0xff] %vm331_vm1, %v443_v45 }
  0xf3   :  { %341 = vst.msk [vmem:[#allocation2 + $0x48] sm:$0xff] %vm331_vm1, %v304_v44  ;;  %472 = vst.msk [vmem:[#allocation2 + $0xc8] sm:$0xff] %vm331_vm1, %v435_v47 }
  0xf5   :  { %v3417_v49 = vpop.f32.mrb[12].mxu0  ;;  %v3437_v63 = vpop.f32.mrb[12].mxu1 }
  0xf6   :  { %v325_v61 = vadd.f32 %v3417_v49, %v4552_v48  ;;  %v316_v62 = vpop.f32.mrb[13].mxu0  ;;  %v456_v2 = vadd.f32 %v3437_v63, %v4552_v48  ;;  %v447_v3 = vpop.f32.mrb[13].mxu1 }
  0xf7   :  { %v317_v0 = vadd.f32 %v316_v62, %v4533_v30  ;;  %v3418_v1 = vpop.f32.mrb[14].mxu0  ;;  %v448_v6 = vadd.f32 %v447_v3, %v4533_v30  ;;  %v3438_v7 = vpop.f32.mrb[14].mxu1 }
  0xf8   :  { %346 = vst.msk [vmem:[#allocation2 + $0x70] sm:$0xff] %vm331_vm1, %v325_v61  ;;  %v328_v4 = vadd.f32 %v3418_v1, %v4556_v59  ;;  %v319_v5 = vpop.f32.mrb[15].mxu0  ;;  %477 = vst.msk [vmem:[#allocation2 + $0xf0] sm:$0xff] %vm331_vm1, %v456_v2  ;;  %v459_v9 = vadd.f32 %v3438_v7, %v4556_v59  ;;  %v450_v10 = vpop.f32.mrb[15].mxu1 }
  0xf9   :  { %344 = vst.msk [vmem:[#allocation2 + $0x60] sm:$0xff] %vm331_vm1, %v317_v0  ;;  %v320_v8 = vadd.f32 %v319_v5, %v4536_v32  ;;  %475 = vst.msk [vmem:[#allocation2 + $0xe0] sm:$0xff] %vm331_vm1, %v448_v6  ;;  %v451_v11 = vadd.f32 %v450_v10, %v4536_v32 }
  0xfa   :  { %347 = vst.msk [vmem:[#allocation2 + $0x78] sm:$0xff] %vm331_vm1, %v328_v4  ;;  %478 = vst.msk [vmem:[#allocation2 + $0xf8] sm:$0xff] %vm331_vm1, %v459_v9 }
  0xfb   :  { %345 = vst.msk [vmem:[#allocation2 + $0x68] sm:$0xff] %vm331_vm1, %v320_v8  ;;  %476 = vst.msk [vmem:[#allocation2 + $0xe8] sm:$0xff] %vm331_vm1, %v451_v11 }
  0xfd   :  { %v3445_v13 = vpop.f32.mrb[16].mxu0  ;;  %v3465_v17 = vpop.f32.mrb[16].mxu1 }
  0xfe   :  { %v539_v15 = vadd.f32 %v3445_v13, %v4486_v54  ;;  %v530_v16 = vpop.f32.mrb[17].mxu0  ;;  %v670_v20 = vadd.f32 %v3465_v17, %v4486_v54  ;;  %v661_v21 = vpop.f32.mrb[17].mxu1 }
  0xff   :  { %v531_v18 = vadd.f32 %v530_v16, %v4478_v50  ;;  %v3446_v19 = vpop.f32.mrb[18].mxu0  ;;  %v662_v24 = vadd.f32 %v661_v21, %v4478_v50  ;;  %v3466_v25 = vpop.f32.mrb[18].mxu1 }
 0x100   :  { %596 = vst.msk [vmem:[#allocation2 + $0x110] sm:$0xff] %vm331_vm1, %v539_v15  ;;  %v542_v22 = vadd.f32 %v3446_v19, %v4488_v55  ;;  %v533_v23 = vpop.f32.mrb[19].mxu0  ;;  %727 = vst.msk [vmem:[#allocation2 + $0x190] sm:$0xff] %vm331_vm1, %v670_v20  ;;  %v673_v27 = vadd.f32 %v3466_v25, %v4488_v55  ;;  %v664_v28 = vpop.f32.mrb[19].mxu1 }
 0x101   :  { %594 = vst.msk [vmem:[#allocation2 + $0x100] sm:$0xff] %vm331_vm1, %v531_v18  ;;  %v534_v26 = vadd.f32 %v533_v23, %v4482_v52  ;;  %725 = vst.msk [vmem:[#allocation2 + $0x180] sm:$0xff] %vm331_vm1, %v662_v24  ;;  %v665_v29 = vadd.f32 %v664_v28, %v4482_v52 }
 0x102   :  { %597 = vst.msk [vmem:[#allocation2 + $0x118] sm:$0xff] %vm331_vm1, %v542_v22  ;;  %728 = vst.msk [vmem:[#allocation2 + $0x198] sm:$0xff] %vm331_vm1, %v673_v27 }
 0x103   :  { %595 = vst.msk [vmem:[#allocation2 + $0x108] sm:$0xff] %vm331_vm1, %v534_v26  ;;  %726 = vst.msk [vmem:[#allocation2 + $0x188] sm:$0xff] %vm331_vm1, %v665_v29 }
 0x105   :  { %v3449_v31 = vpop.f32.mrb[20].mxu0  ;;  %v3469_v35 = vpop.f32.mrb[20].mxu1 }
 0x106   :  { %v555_v33 = vadd.f32 %v3449_v31, %v4490_v56  ;;  %v546_v34 = vpop.f32.mrb[21].mxu0  ;;  %v686_v38 = vadd.f32 %v3469_v35, %v4490_v56  ;;  %v677_v39 = vpop.f32.mrb[21].mxu1 }
 0x107   :  { %v547_v36 = vadd.f32 %v546_v34, %v4480_v51  ;;  %v3450_v37 = vpop.f32.mrb[22].mxu0  ;;  %v678_v42 = vadd.f32 %v677_v39, %v4480_v51  ;;  %v3470_v43 = vpop.f32.mrb[22].mxu1 }
 0x108   :  { %600 = vst.msk [vmem:[#allocation2 + $0x130] sm:$0xff] %vm331_vm1, %v555_v33  ;;  %v558_v40 = vadd.f32 %v3450_v37, %v4492_v57  ;;  %v549_v41 = vpop.f32.mrb[23].mxu0  ;;  %731 = vst.msk [vmem:[#allocation2 + $0x1b0] sm:$0xff] %vm331_vm1, %v686_v38  ;;  %v689_v45 = vadd.f32 %v3470_v43, %v4492_v57  ;;  %v680_v46 = vpop.f32.mrb[23].mxu1 }
 0x109   :  { %598 = vst.msk [vmem:[#allocation2 + $0x120] sm:$0xff] %vm331_vm1, %v547_v36  ;;  %v550_v44 = vadd.f32 %v549_v41, %v4484_v53  ;;  %729 = vst.msk [vmem:[#allocation2 + $0x1a0] sm:$0xff] %vm331_vm1, %v678_v42  ;;  %v681_v47 = vadd.f32 %v680_v46, %v4484_v53 }
 0x10a   :  { %601 = vst.msk [vmem:[#allocation2 + $0x138] sm:$0xff] %vm331_vm1, %v558_v40  ;;  %732 = vst.msk [vmem:[#allocation2 + $0x1b8] sm:$0xff] %vm331_vm1, %v689_v45 }
 0x10b   :  { %599 = vst.msk [vmem:[#allocation2 + $0x128] sm:$0xff] %vm331_vm1, %v550_v44  ;;  %730 = vst.msk [vmem:[#allocation2 + $0x1a8] sm:$0xff] %vm331_vm1, %v681_v47 }
 0x10d   :  { %v3453_v49 = vpop.f32.mrb[24].mxu0  ;;  %v3473_v63 = vpop.f32.mrb[24].mxu1 }
 0x10e   :  { %v571_v61 = vadd.f32 %v3453_v49, %v4513_v12  ;;  %v562_v62 = vpop.f32.mrb[25].mxu0  ;;  %v702_v2 = vadd.f32 %v3473_v63, %v4513_v12  ;;  %v693_v3 = vpop.f32.mrb[25].mxu1 }
 0x10f   :  { %v563_v0 = vadd.f32 %v562_v62, %v4494_v58  ;;  %v3454_v1 = vpop.f32.mrb[26].mxu0  ;;  %v694_v6 = vadd.f32 %v693_v3, %v4494_v58  ;;  %v3474_v7 = vpop.f32.mrb[26].mxu1 }
 0x110   :  { %604 = vst.msk [vmem:[#allocation2 + $0x150] sm:$0xff] %vm331_vm1, %v571_v61  ;;  %v574_v4 = vadd.f32 %v3454_v1, %v4516_v14  ;;  %v565_v5 = vpop.f32.mrb[27].mxu0  ;;  %735 = vst.msk [vmem:[#allocation2 + $0x1d0] sm:$0xff] %vm331_vm1, %v702_v2  ;;  %v705_v9 = vadd.f32 %v3474_v7, %v4516_v14  ;;  %v696_v10 = vpop.f32.mrb[27].mxu1 }
 0x111   :  { %602 = vst.msk [vmem:[#allocation2 + $0x140] sm:$0xff] %vm331_vm1, %v563_v0  ;;  %v566_v8 = vadd.f32 %v565_v5, %v4496_v60  ;;  %733 = vst.msk [vmem:[#allocation2 + $0x1c0] sm:$0xff] %vm331_vm1, %v694_v6  ;;  %v697_v11 = vadd.f32 %v696_v10, %v4496_v60 }
 0x112   :  { %605 = vst.msk [vmem:[#allocation2 + $0x158] sm:$0xff] %vm331_vm1, %v574_v4  ;;  %736 = vst.msk [vmem:[#allocation2 + $0x1d8] sm:$0xff] %vm331_vm1, %v705_v9 }
 0x113   :  { %603 = vst.msk [vmem:[#allocation2 + $0x148] sm:$0xff] %vm331_vm1, %v566_v8  ;;  %734 = vst.msk [vmem:[#allocation2 + $0x1c8] sm:$0xff] %vm331_vm1, %v697_v11 }
 0x115   :  { %v3457_v13 = vpop.f32.mrb[28].mxu0  ;;  %v3477_v17 = vpop.f32.mrb[28].mxu1 }
 0x116   :  { %v587_v15 = vadd.f32 %v3457_v13, %v4552_v48  ;;  %v578_v16 = vpop.f32.mrb[29].mxu0  ;;  %v718_v20 = vadd.f32 %v3477_v17, %v4552_v48  ;;  %v709_v21 = vpop.f32.mrb[29].mxu1 }
 0x117   :  { %v579_v18 = vadd.f32 %v578_v16, %v4533_v30  ;;  %v3458_v19 = vpop.f32.mrb[30].mxu0  ;;  %v710_v24 = vadd.f32 %v709_v21, %v4533_v30  ;;  %v3478_v25 = vpop.f32.mrb[30].mxu1 }
 0x118   :  { %608 = vst.msk [vmem:[#allocation2 + $0x170] sm:$0xff] %vm331_vm1, %v587_v15  ;;  %v590_v22 = vadd.f32 %v3458_v19, %v4556_v59  ;;  %v581_v23 = vpop.f32.mrb[31].mxu0  ;;  %739 = vst.msk [vmem:[#allocation2 + $0x1f0] sm:$0xff] %vm331_vm1, %v718_v20  ;;  %v721_v27 = vadd.f32 %v3478_v25, %v4556_v59  ;;  %v712_v28 = vpop.f32.mrb[31].mxu1 }
 0x119   :  { %606 = vst.msk [vmem:[#allocation2 + $0x160] sm:$0xff] %vm331_vm1, %v579_v18  ;;  %v582_v26 = vadd.f32 %v581_v23, %v4536_v32  ;;  %737 = vst.msk [vmem:[#allocation2 + $0x1e0] sm:$0xff] %vm331_vm1, %v710_v24  ;;  %v713_v29 = vadd.f32 %v712_v28, %v4536_v32 }
 0x11a   :  { %609 = vst.msk [vmem:[#allocation2 + $0x178] sm:$0xff] %vm331_vm1, %v590_v22  ;;  %740 = vst.msk [vmem:[#allocation2 + $0x1f8] sm:$0xff] %vm331_vm1, %v721_v27 }
 0x11b   :  { %607 = vst.msk [vmem:[#allocation2 + $0x168] sm:$0xff] %vm331_vm1, %v582_v26  ;;  %738 = vst.msk [vmem:[#allocation2 + $0x1e8] sm:$0xff] %vm331_vm1, %v713_v29 }
 0x11d   :  { %v3485_v31 = vpop.f32.mrb[32].mxu0  ;;  %v3505_v35 = vpop.f32.mrb[32].mxu1 }
 0x11e   :  { %v801_v33 = vadd.f32 %v3485_v31, %v4486_v54  ;;  %v792_v34 = vpop.f32.mrb[33].mxu0  ;;  %v932_v38 = vadd.f32 %v3505_v35, %v4486_v54  ;;  %v923_v39 = vpop.f32.mrb[33].mxu1 }
 0x11f   :  { %v793_v36 = vadd.f32 %v792_v34, %v4478_v50  ;;  %v3486_v37 = vpop.f32.mrb[34].mxu0  ;;  %v924_v42 = vadd.f32 %v923_v39, %v4478_v50  ;;  %v3506_v43 = vpop.f32.mrb[34].mxu1 }
 0x120   :  { %858 = vst.msk [vmem:[#allocation2 + $0x210] sm:$0xff] %vm331_vm1, %v801_v33  ;;  %v804_v40 = vadd.f32 %v3486_v37, %v4488_v55  ;;  %v795_v41 = vpop.f32.mrb[35].mxu0  ;;  %989 = vst.msk [vmem:[#allocation2 + $0x290] sm:$0xff] %vm331_vm1, %v932_v38  ;;  %v935_v45 = vadd.f32 %v3506_v43, %v4488_v55  ;;  %v926_v46 = vpop.f32.mrb[35].mxu1 }
 0x121   :  { %856 = vst.msk [vmem:[#allocation2 + $0x200] sm:$0xff] %vm331_vm1, %v793_v36  ;;  %v796_v44 = vadd.f32 %v795_v41, %v4482_v52  ;;  %987 = vst.msk [vmem:[#allocation2 + $0x280] sm:$0xff] %vm331_vm1, %v924_v42  ;;  %v927_v47 = vadd.f32 %v926_v46, %v4482_v52 }
 0x122   :  { %859 = vst.msk [vmem:[#allocation2 + $0x218] sm:$0xff] %vm331_vm1, %v804_v40  ;;  %990 = vst.msk [vmem:[#allocation2 + $0x298] sm:$0xff] %vm331_vm1, %v935_v45 }
 0x123   :  { %857 = vst.msk [vmem:[#allocation2 + $0x208] sm:$0xff] %vm331_vm1, %v796_v44  ;;  %988 = vst.msk [vmem:[#allocation2 + $0x288] sm:$0xff] %vm331_vm1, %v927_v47 }
 0x125   :  { %v3489_v49 = vpop.f32.mrb[36].mxu0  ;;  %v3509_v63 = vpop.f32.mrb[36].mxu1 }
 0x126   :  { %v817_v61 = vadd.f32 %v3489_v49, %v4490_v56  ;;  %v808_v62 = vpop.f32.mrb[37].mxu0  ;;  %v948_v2 = vadd.f32 %v3509_v63, %v4490_v56  ;;  %v939_v3 = vpop.f32.mrb[37].mxu1 }
 0x127   :  { %v809_v0 = vadd.f32 %v808_v62, %v4480_v51  ;;  %v3490_v1 = vpop.f32.mrb[38].mxu0  ;;  %v940_v6 = vadd.f32 %v939_v3, %v4480_v51  ;;  %v3510_v7 = vpop.f32.mrb[38].mxu1 }
 0x128   :  { %862 = vst.msk [vmem:[#allocation2 + $0x230] sm:$0xff] %vm331_vm1, %v817_v61  ;;  %v820_v4 = vadd.f32 %v3490_v1, %v4492_v57  ;;  %v811_v5 = vpop.f32.mrb[39].mxu0  ;;  %993 = vst.msk [vmem:[#allocation2 + $0x2b0] sm:$0xff] %vm331_vm1, %v948_v2  ;;  %v951_v9 = vadd.f32 %v3510_v7, %v4492_v57  ;;  %v942_v10 = vpop.f32.mrb[39].mxu1 }
 0x129   :  { %860 = vst.msk [vmem:[#allocation2 + $0x220] sm:$0xff] %vm331_vm1, %v809_v0  ;;  %v812_v8 = vadd.f32 %v811_v5, %v4484_v53  ;;  %991 = vst.msk [vmem:[#allocation2 + $0x2a0] sm:$0xff] %vm331_vm1, %v940_v6  ;;  %v943_v11 = vadd.f32 %v942_v10, %v4484_v53 }
 0x12a   :  { %863 = vst.msk [vmem:[#allocation2 + $0x238] sm:$0xff] %vm331_vm1, %v820_v4  ;;  %994 = vst.msk [vmem:[#allocation2 + $0x2b8] sm:$0xff] %vm331_vm1, %v951_v9 }
 0x12b   :  { %861 = vst.msk [vmem:[#allocation2 + $0x228] sm:$0xff] %vm331_vm1, %v812_v8  ;;  %992 = vst.msk [vmem:[#allocation2 + $0x2a8] sm:$0xff] %vm331_vm1, %v943_v11 }
 0x12d   :  { %v3493_v13 = vpop.f32.mrb[40].mxu0  ;;  %v3513_v17 = vpop.f32.mrb[40].mxu1 }
 0x12e   :  { %v833_v15 = vadd.f32 %v3493_v13, %v4513_v12  ;;  %v824_v16 = vpop.f32.mrb[41].mxu0  ;;  %v964_v20 = vadd.f32 %v3513_v17, %v4513_v12  ;;  %v955_v21 = vpop.f32.mrb[41].mxu1 }
 0x12f   :  { %v825_v18 = vadd.f32 %v824_v16, %v4494_v58  ;;  %v3494_v19 = vpop.f32.mrb[42].mxu0  ;;  %v956_v24 = vadd.f32 %v955_v21, %v4494_v58  ;;  %v3514_v25 = vpop.f32.mrb[42].mxu1 }
 0x130   :  { %866 = vst.msk [vmem:[#allocation2 + $0x250] sm:$0xff] %vm331_vm1, %v833_v15  ;;  %v836_v22 = vadd.f32 %v3494_v19, %v4516_v14  ;;  %v827_v23 = vpop.f32.mrb[43].mxu0  ;;  %997 = vst.msk [vmem:[#allocation2 + $0x2d0] sm:$0xff] %vm331_vm1, %v964_v20  ;;  %v967_v27 = vadd.f32 %v3514_v25, %v4516_v14  ;;  %v958_v28 = vpop.f32.mrb[43].mxu1 }
 0x131   :  { %864 = vst.msk [vmem:[#allocation2 + $0x240] sm:$0xff] %vm331_vm1, %v825_v18  ;;  %v828_v26 = vadd.f32 %v827_v23, %v4496_v60  ;;  %995 = vst.msk [vmem:[#allocation2 + $0x2c0] sm:$0xff] %vm331_vm1, %v956_v24  ;;  %v959_v29 = vadd.f32 %v958_v28, %v4496_v60 }
 0x132   :  { %867 = vst.msk [vmem:[#allocation2 + $0x258] sm:$0xff] %vm331_vm1, %v836_v22  ;;  %998 = vst.msk [vmem:[#allocation2 + $0x2d8] sm:$0xff] %vm331_vm1, %v967_v27 }
 0x133   :  { %865 = vst.msk [vmem:[#allocation2 + $0x248] sm:$0xff] %vm331_vm1, %v828_v26  ;;  %996 = vst.msk [vmem:[#allocation2 + $0x2c8] sm:$0xff] %vm331_vm1, %v959_v29 }
 0x135   :  { %v3497_v31 = vpop.f32.mrb[44].mxu0  ;;  %v3517_v35 = vpop.f32.mrb[44].mxu1 }
 0x136   :  { %v849_v33 = vadd.f32 %v3497_v31, %v4552_v48  ;;  %v840_v34 = vpop.f32.mrb[45].mxu0  ;;  %v980_v38 = vadd.f32 %v3517_v35, %v4552_v48  ;;  %v971_v39 = vpop.f32.mrb[45].mxu1 }
 0x137   :  { %v841_v36 = vadd.f32 %v840_v34, %v4533_v30  ;;  %v3498_v37 = vpop.f32.mrb[46].mxu0  ;;  %v972_v42 = vadd.f32 %v971_v39, %v4533_v30  ;;  %v3518_v43 = vpop.f32.mrb[46].mxu1 }
 0x138   :  { %870 = vst.msk [vmem:[#allocation2 + $0x270] sm:$0xff] %vm331_vm1, %v849_v33  ;;  %v852_v40 = vadd.f32 %v3498_v37, %v4556_v59  ;;  %v843_v41 = vpop.f32.mrb[47].mxu0  ;;  %1001 = vst.msk [vmem:[#allocation2 + $0x2f0] sm:$0xff] %vm331_vm1, %v980_v38  ;;  %v983_v45 = vadd.f32 %v3518_v43, %v4556_v59  ;;  %v974_v46 = vpop.f32.mrb[47].mxu1 }
 0x139   :  { %868 = vst.msk [vmem:[#allocation2 + $0x260] sm:$0xff] %vm331_vm1, %v841_v36  ;;  %v844_v44 = vadd.f32 %v843_v41, %v4536_v32  ;;  %999 = vst.msk [vmem:[#allocation2 + $0x2e0] sm:$0xff] %vm331_vm1, %v972_v42  ;;  %v975_v47 = vadd.f32 %v974_v46, %v4536_v32 }
 0x13a   :  { %871 = vst.msk [vmem:[#allocation2 + $0x278] sm:$0xff] %vm331_vm1, %v852_v40  ;;  %1002 = vst.msk [vmem:[#allocation2 + $0x2f8] sm:$0xff] %vm331_vm1, %v983_v45 }
 0x13b   :  { %869 = vst.msk [vmem:[#allocation2 + $0x268] sm:$0xff] %vm331_vm1, %v844_v44  ;;  %1000 = vst.msk [vmem:[#allocation2 + $0x2e8] sm:$0xff] %vm331_vm1, %v975_v47 }
 0x13d   :  { %v3525_v49 = vpop.f32.mrb[48].mxu0  ;;  %v3545_v63 = vpop.f32.mrb[48].mxu1 }
 0x13e   :  { %v1063_v61 = vadd.f32 %v3525_v49, %v4486_v54  ;;  %v1054_v62 = vpop.f32.mrb[49].mxu0  ;;  %v1194_v2 = vadd.f32 %v3545_v63, %v4486_v54  ;;  %v1185_v3 = vpop.f32.mrb[49].mxu1 }
 0x13f   :  { %v1055_v0 = vadd.f32 %v1054_v62, %v4478_v50  ;;  %v3526_v1 = vpop.f32.mrb[50].mxu0  ;;  %v1186_v6 = vadd.f32 %v1185_v3, %v4478_v50  ;;  %v3546_v7 = vpop.f32.mrb[50].mxu1  ;;  %v1268_v3 = vld [vmem:[#allocation2 + $0x18] sm:$0xff] }
 0x140   :  { %1120 = vst.msk [vmem:[#allocation2 + $0x310] sm:$0xff] %vm331_vm1, %v1063_v61  ;;  %v1066_v4 = vadd.f32 %v3526_v1, %v4488_v55  ;;  %v1057_v5 = vpop.f32.mrb[51].mxu0  ;;  %1251 = vst.msk [vmem:[#allocation2 + $0x390] sm:$0xff] %vm331_vm1, %v1194_v2  ;;  %v1197_v9 = vadd.f32 %v3546_v7, %v4488_v55  ;;  %v1188_v10 = vpop.f32.mrb[51].mxu1  ;;  %v1265_v1 = vld [vmem:[#allocation2] sm:$0xff] }
 0x141   :  { %1118 = vst.msk [vmem:[#allocation2 + $0x300] sm:$0xff] %vm331_vm1, %v1055_v0  ;;  %v1058_v8 = vadd.f32 %v1057_v5, %v4482_v52  ;;  %1249 = vst.msk [vmem:[#allocation2 + $0x380] sm:$0xff] %vm331_vm1, %v1186_v6  ;;  %v1189_v54 = vadd.f32 %v1188_v10, %v4482_v52  ;;  %v1266_v6 = vld [vmem:[#allocation2 + $0x8] sm:$0xff] }
 0x142   :  { %1121 = vst.msk [vmem:[#allocation2 + $0x318] sm:$0xff] %vm331_vm1, %v1066_v4  ;;  %1252 = vst.msk [vmem:[#allocation2 + $0x398] sm:$0xff] %vm331_vm1, %v1197_v9 }
 0x143   :  { %1119 = vst.msk [vmem:[#allocation2 + $0x308] sm:$0xff] %vm331_vm1, %v1058_v8  ;;  %1250 = vst.msk [vmem:[#allocation2 + $0x388] sm:$0xff] %vm331_vm1, %v1189_v54 }
 0x145   :  { %v3529_v50 = vpop.f32.mrb[52].mxu0  ;;  %v3549_v15 = vpop.f32.mrb[52].mxu1 }
 0x146   :  { %v1079_v11 = vadd.f32 %v3529_v50, %v4490_v56  ;;  %v1070_v13 = vpop.f32.mrb[53].mxu0  ;;  %v1210_v17 = vadd.f32 %v3549_v15, %v4490_v56  ;;  %v1201_v18 = vpop.f32.mrb[53].mxu1  ;;  %v1271_v50 = vld [vmem:[#allocation2 + $0x30] sm:$0xff]  ;;  %v1269_v15 = vld [vmem:[#allocation2 + $0x20] sm:$0xff] }
 0x147   :  { %v1071_v55 = vadd.f32 %v1070_v13, %v4480_v51  ;;  %v3530_v16 = vpop.f32.mrb[54].mxu0  ;;  %v1202_v20 = vadd.f32 %v1201_v18, %v4480_v51  ;;  %v3550_v21 = vpop.f32.mrb[54].mxu1 }
 0x148   :  { %1124 = vst.msk [vmem:[#allocation2 + $0x330] sm:$0xff] %vm331_vm1, %v1079_v11  ;;  %v1082_v52 = vadd.f32 %v3530_v16, %v4492_v57  ;;  %v1073_v19 = vpop.f32.mrb[55].mxu0  ;;  %1255 = vst.msk [vmem:[#allocation2 + $0x3b0] sm:$0xff] %vm331_vm1, %v1210_v17  ;;  %v1213_v23 = vadd.f32 %v3550_v21, %v4492_v57  ;;  %v1204_v24 = vpop.f32.mrb[55].mxu1  ;;  %v1272_v17 = vld [vmem:[#allocation2 + $0x38] sm:$0xff] }
 0x149   :  { %1122 = vst.msk [vmem:[#allocation2 + $0x320] sm:$0xff] %vm331_vm1, %v1071_v55  ;;  %v1074_v22 = vadd.f32 %v1073_v19, %v4484_v53  ;;  %1253 = vst.msk [vmem:[#allocation2 + $0x3a0] sm:$0xff] %vm331_vm1, %v1202_v20  ;;  %v1205_v56 = vadd.f32 %v1204_v24, %v4484_v53  ;;  %v1270_v20 = vld [vmem:[#allocation2 + $0x28] sm:$0xff] }
 0x14a   :  { %1125 = vst.msk [vmem:[#allocation2 + $0x338] sm:$0xff] %vm331_vm1, %v1082_v52  ;;  %1256 = vst.msk [vmem:[#allocation2 + $0x3b8] sm:$0xff] %vm331_vm1, %v1213_v23 }
 0x14b   :  { %1123 = vst.msk [vmem:[#allocation2 + $0x328] sm:$0xff] %vm331_vm1, %v1074_v22  ;;  %1254 = vst.msk [vmem:[#allocation2 + $0x3a8] sm:$0xff] %vm331_vm1, %v1205_v56 }
 0x14d   :  { %v3533_v51 = vpop.f32.mrb[56].mxu0  ;;  %v3553_v27 = vpop.f32.mrb[56].mxu1 }
 0x14e   :  { %v1095_v25 = vadd.f32 %v3533_v51, %v4513_v12  ;;  %v1086_v26 = vpop.f32.mrb[57].mxu0  ;;  %v1226_v29 = vadd.f32 %v3553_v27, %v4513_v12  ;;  %v1217_v31 = vpop.f32.mrb[57].mxu1  ;;  %v1275_v51 = vld [vmem:[#allocation2 + $0x50] sm:$0xff]  ;;  %v1273_v27 = vld [vmem:[#allocation2 + $0x40] sm:$0xff] }
 0x14f   :  { %v1087_v57 = vadd.f32 %v1086_v26, %v4494_v58  ;;  %v3534_v28 = vpop.f32.mrb[58].mxu0  ;;  %v1218_v34 = vadd.f32 %v1217_v31, %v4494_v58  ;;  %v3554_v35 = vpop.f32.mrb[58].mxu1  ;;  %v1276_v31 = vld [vmem:[#allocation2 + $0x58] sm:$0xff] }
 0x150   :  { %1128 = vst.msk [vmem:[#allocation2 + $0x350] sm:$0xff] %vm331_vm1, %v1095_v25  ;;  %v1098_v53 = vadd.f32 %v3534_v28, %v4516_v14  ;;  %v1089_v33 = vpop.f32.mrb[59].mxu0  ;;  %1259 = vst.msk [vmem:[#allocation2 + $0x3d0] sm:$0xff] %vm331_vm1, %v1226_v29  ;;  %v1229_v37 = vadd.f32 %v3554_v35, %v4516_v14  ;;  %v1220_v38 = vpop.f32.mrb[59].mxu1 }
 0x151   :  { %1126 = vst.msk [vmem:[#allocation2 + $0x340] sm:$0xff] %vm331_vm1, %v1087_v57  ;;  %v1090_v36 = vadd.f32 %v1089_v33, %v4496_v60  ;;  %1257 = vst.msk [vmem:[#allocation2 + $0x3c0] sm:$0xff] %vm331_vm1, %v1218_v34  ;;  %v1221_v12 = vadd.f32 %v1220_v38, %v4496_v60  ;;  %v1274_v34 = vld [vmem:[#allocation2 + $0x48] sm:$0xff] }
 0x152   :  { %1129 = vst.msk [vmem:[#allocation2 + $0x358] sm:$0xff] %vm331_vm1, %v1098_v53  ;;  %1260 = vst.msk [vmem:[#allocation2 + $0x3d8] sm:$0xff] %vm331_vm1, %v1229_v37 }
 0x153   :  { %1127 = vst.msk [vmem:[#allocation2 + $0x348] sm:$0xff] %vm331_vm1, %v1090_v36  ;;  %1258 = vst.msk [vmem:[#allocation2 + $0x3c8] sm:$0xff] %vm331_vm1, %v1221_v12 }
 0x155   :  { %v3537_v58 = vpop.f32.mrb[60].mxu0  ;;  %v3557_v40 = vpop.f32.mrb[60].mxu1 }
 0x156   :  { %v1111_v39 = vadd.f32 %v3537_v58, %v4552_v48  ;;  %v1102_v41 = vpop.f32.mrb[61].mxu0  ;;  %v1242_v14 = vadd.f32 %v3557_v40, %v4552_v48  ;;  %v1233_v43 = vpop.f32.mrb[61].mxu1 }
 0x157   :  { %v1103_v42 = vadd.f32 %v1102_v41, %v4533_v30  ;;  %v3538_v44 = vpop.f32.mrb[62].mxu0  ;;  %v1234_v60 = vadd.f32 %v1233_v43, %v4533_v30  ;;  %v3558_v46 = vpop.f32.mrb[62].mxu1  ;;  %v1267_v30 = vld [vmem:[#allocation2 + $0x10] sm:$0xff] }
 0x158   :  { %1132 = vst.msk [vmem:[#allocation2 + $0x370] sm:$0xff] %vm331_vm1, %v1111_v39  ;;  %v1114_v45 = vadd.f32 %v3538_v44, %v4556_v59  ;;  %v1105_v47 = vpop.f32.mrb[63].mxu0  ;;  %1263 = vst.msk [vmem:[#allocation2 + $0x3f0] sm:$0xff] %vm331_vm1, %v1242_v14  ;;  %v1245_v49 = vadd.f32 %v3558_v46, %v4556_v59  ;;  %v1236_v61 = vpop.f32.mrb[63].mxu1 }
 0x159   :  { %1130 = vst.msk [vmem:[#allocation2 + $0x360] sm:$0xff] %vm331_vm1, %v1103_v42  ;;  %v1106_v48 = vadd.f32 %v1105_v47, %v4536_v32  ;;  %1261 = vst.msk [vmem:[#allocation2 + $0x3e0] sm:$0xff] %vm331_vm1, %v1234_v60  ;;  %v1237_v62 = vadd.f32 %v1236_v61, %v4536_v32  ;;  %v1279_v42 = vld [vmem:[#allocation2 + $0x70] sm:$0xff] }
 0x15a   :  { %1133 = vst.msk [vmem:[#allocation2 + $0x378] sm:$0xff] %vm331_vm1, %v1114_v45  ;;  %1264 = vst.msk [vmem:[#allocation2 + $0x3f8] sm:$0xff] %vm331_vm1, %v1245_v49  ;;  %v1277_v49 = vld [vmem:[#allocation2 + $0x60] sm:$0xff] }
 0x15b   :  { %1131 = vst.msk [vmem:[#allocation2 + $0x368] sm:$0xff] %vm331_vm1, %v1106_v48  ;;  %1262 = vst.msk [vmem:[#allocation2 + $0x3e8] sm:$0xff] %vm331_vm1, %v1237_v62 }
 0x15d   :  { %v3563_v63 = vpop.f32.mrb[64].mxu0 }
 0x15e   :  { %v1444_v0 = vadd.f32 %v3563_v63, %v1267_v30  ;;  %v1379_v59 = vpop.f32.mrb[65].mxu0 }
 0x15f   :  { %v1442_v2 = vadd.f32 %v1379_v59, %v1265_v1  ;;  %v3564_v4 = vpop.f32.mrb[66].mxu0  ;;  %v1280_v1 = vld [vmem:[#allocation2 + $0x78] sm:$0xff] }
 0x160   :  { %v1445_v5 = vadd.f32 %v3564_v4, %v1268_v3  ;;  %v1382_v7 = vpop.f32.mrb[67].mxu0  ;;  %v1460_v8 = vmul.f32 0.5, %v1444_v0 }
 0x161   :  { %v1443_v9 = vadd.f32 %v1382_v7, %v1266_v6  ;;  %v1458_v32 = vmul.f32 0.5, %v1442_v2  ;;  %v1278_v6 = vld [vmem:[#allocation2 + $0x68] sm:$0xff] }
 0x162   :  { %v1461_v10 = vmul.f32 0.5, %v1445_v5  ;;  %3773 = vtanh.f32 %v1460_v8 }
 0x163   :  { %v1459_v54 = vmul.f32 0.5, %v1443_v9  ;;  %3775 = vtanh.f32 %v1458_v32 }
 0x164   :  { %3777 = vtanh.f32 %v1461_v10 }
 0x165   :  { %v3567_v11 = vpop.f32.mrb[68].mxu0  ;;  %3779 = vtanh.f32 %v1459_v54 }
 0x166   :  { %v1448_v13 = vadd.f32 %v3567_v11, %v1271_v50  ;;  %v1395_v55 = vpop.f32.mrb[69].mxu0 }
 0x167   :  { %v1446_v16 = vadd.f32 %v1395_v55, %v1269_v15  ;;  %v3568_v18 = vpop.f32.mrb[70].mxu0 }
 0x168   :  { %v1476_v52 = vmul.f32 0.5, %v1448_v13  ;;  %v1449_v19 = vadd.f32 %v3568_v18, %v1272_v17  ;;  %v1398_v21 = vpop.f32.mrb[71].mxu0 }
 0x169   :  { %v1474_v22 = vmul.f32 0.5, %v1446_v16  ;;  %v1447_v23 = vadd.f32 %v1398_v21, %v1270_v20 }
 0x16a   :  { %3781 = vtanh.f32 %v1476_v52  ;;  %v1477_v24 = vmul.f32 0.5, %v1449_v19 }
 0x16b   :  { %3783 = vtanh.f32 %v1474_v22  ;;  %v1475_v56 = vmul.f32 0.5, %v1447_v23 }
 0x16c   :  { %3785 = vtanh.f32 %v1477_v24  ;;  %v3774_v28 = vpop.eup %3773 }
 0x16d   :  { %3787 = vtanh.f32 %v1475_v56  ;;  %v3571_v25 = vpop.f32.mrb[72].mxu0  ;;  %v3776_v36 = vpop.eup %3775  ;;  %v1468_v12 = vmul.f32 0.5, %v3774_v28 }
 0x16e   :  { %v1452_v26 = vadd.f32 %v3571_v25, %v1275_v51  ;;  %v1411_v57 = vpop.f32.mrb[73].mxu0  ;;  %v3778_v38 = vpop.eup %3777  ;;  %v1466_v41 = vmul.f32 0.5, %v3776_v36 }
 0x16f   :  { %v1450_v29 = vadd.f32 %v1411_v57, %v1273_v27  ;;  %v3572_v53 = vpop.f32.mrb[74].mxu0  ;;  %v3780_v58 = vpop.eup %3779  ;;  %v1472_v60 = vadd.f32 0.5, %v1468_v12  ;;  %v1469_v45 = vmul.f32 0.5, %v3778_v38 }
 0x170   :  { %3789 = vtanh.f32 %v1452_v26  ;;  %v1453_v33 = vadd.f32 %v3572_v53, %v1276_v31  ;;  %v1414_v35 = vpop.f32.mrb[75].mxu0  ;;  %v1467_v62 = vmul.f32 0.5, %v3780_v58  ;;  %v1470_v8 = vadd.f32 0.5, %v1466_v41 }
 0x171   :  { %3791 = vtanh.f32 %v1450_v29  ;;  %v1451_v37 = vadd.f32 %v1414_v35, %v1274_v34  ;;  %v1473_v50 = vadd.f32 0.5, %v1469_v45 }
 0x172   :  { %3793 = vtanh.f32 %v1453_v33  ;;  %v1471_v52 = vadd.f32 0.5, %v1467_v62  ;;  %v4816_v62 = vld [vmem:[%s5084_s2 + $0x30] sm:$0xff]  }
 0x173   :  { %3795 = vtanh.f32 %v1451_v37 }
 0x174   :  { %v3782_v39 = vpop.eup %3781 }
 0x175   :  { %v3784_v40 = vpop.eup %3783  ;;  %v1484_v14 = vmul.f32 0.5, %v3782_v39  ;;  %v3575_v43 = vpop.f32.mrb[76].mxu0 }
 0x176   :  { %v3786_v44 = vpop.eup %3785  ;;  %v1482_v46 = vmul.f32 0.5, %v3784_v40  ;;  %v1456_v47 = vadd.f32 %v3575_v43, %v1279_v42  ;;  %v1427_v48 = vpop.f32.mrb[77].mxu0 }
 0x177   :  { %v3788_v61 = vpop.eup %3787  ;;  %v1488_v30 = vadd.f32 0.5, %v1484_v14  ;;  %v1485_v63 = vmul.f32 0.5, %v3786_v44  ;;  %v1454_v0 = vadd.f32 %v1427_v48, %v1277_v49  ;;  %v3576_v59 = vpop.f32.mrb[78].mxu0  ;;  %v4795_v49 = vld [vmem:[%s5084_s2 + $0x18] sm:$0xff]   ;;  %v4802_v48 = vld [vmem:[%s5084_s2 + $0x20] sm:$0xff]  }
 0x178   :  { %v1486_v2 = vadd.f32 0.5, %v1482_v46  ;;  %v1483_v3 = vmul.f32 0.5, %v3788_v61  ;;  %v1496_v4 = vmul.f32 0.5, %v1456_v47  ;;  %v1457_v5 = vadd.f32 %v3576_v59, %v1280_v1  ;;  %v1430_v7 = vpop.f32.mrb[79].mxu0  ;;  %v4781_v46 = vld [vmem:[%s5084_s2 + $0x8] sm:$0xff]   ;;  %v4788_v47 = vld [vmem:[%s5084_s2 + $0x10] sm:$0xff]  }
 0x179   :  { %v1489_v9 = vadd.f32 0.5, %v1485_v63  ;;  %v1494_v32 = vmul.f32 0.5, %v1454_v0  ;;  %v1455_v10 = vadd.f32 %v1430_v7, %v1278_v6  ;;  %v1512_v55 = vmul.f32 0.0, %v1488_v30  ;;  %v4809_v61 = vld [vmem:[%s5084_s2 + $0x28] sm:$0xff]   ;;  %v4823_v30 = vld [vmem:[%s5084_s2 + $0x38] sm:$0xff]   ;;  %v4830_v63 = vld [vmem:[%s5084_s2] sm:$0xff]  }
 0x17a   :  { %v3790_v54 = vpop.eup %3789  ;;  %v1487_v11 = vadd.f32 0.5, %v1483_v3  ;;  %3797 = vtanh.f32 %v1496_v4  ;;  %v1497_v13 = vmul.f32 0.5, %v1457_v5  ;;  %v1510_v19 = vmul.f32 0.0, %v1486_v2  ;;  %v1532_v0 = vld [vmem:[#allocation2 + $0x90] sm:$0xff]  ;;  %v1530_v2 = vld [vmem:[#allocation2 + $0x80] sm:$0xff]  ;;  %v1533_v5 = vld [vmem:[#allocation2 + $0x98] sm:$0xff] }
 0x17b   :  { %v3792_v15 = vpop.eup %3791  ;;  %v1516_v16 = vmul.f32 %v3790_v54, %v1472_v60  ;;  %3799 = vtanh.f32 %v1494_v32  ;;  %v1495_v17 = vmul.f32 0.5, %v1455_v10  ;;  %v1513_v22 = vmul.f32 0.0, %v1489_v9 }
 0x17c   :  { %v3794_v18 = vpop.eup %3793  ;;  %v1514_v20 = vmul.f32 %v3792_v15, %v1470_v8  ;;  %3801 = vtanh.f32 %v1497_v13  ;;  %v1511_v56 = vmul.f32 0.0, %v1487_v11  ;;  %v1531_v8 = vld [vmem:[#allocation2 + $0x88] sm:$0xff]  ;;  %v1536_v13 = vld [vmem:[#allocation2 + $0xb0] sm:$0xff] }
 0x17d   :  { %v3796_v21 = vpop.eup %3795  ;;  %v4766_v23 = vadd.f32 %v1516_v16, %v1512_v55  ;;  %v1517_v24 = vmul.f32 %v3794_v18, %v1473_v50  ;;  %3803 = vtanh.f32 %v1495_v17  ;;  %v1534_v16 = vld [vmem:[#allocation2 + $0xa0] sm:$0xff] }
 0x17e   :  { %v4768_v51 = vadd.f32 %v1514_v20, %v1510_v19  ;;  %v1515_v25 = vmul.f32 %v3796_v21, %v1471_v52  ;;  %v1537_v52 = vld [vmem:[#allocation2 + $0xb8] sm:$0xff] }
 0x17f   :  { %3805 = vtanh.f32 %v4766_v23  ;;  %v4771_v26 = vadd.f32 %v1517_v24, %v1513_v22  ;;  %v1535_v22 = vld [vmem:[#allocation2 + $0xa8] sm:$0xff] }
 0x180   :  { %3807 = vtanh.f32 %v4768_v51  ;;  %v4774_v27 = vadd.f32 %v1515_v25, %v1511_v56 }
 0x181   :  { %3809 = vtanh.f32 %v4771_v26 }
 0x182   :  { %3811 = vtanh.f32 %v4774_v27 }
 0x184   :  { %v3798_v57 = vpop.eup %3797 }
 0x185   :  { %v3800_v28 = vpop.eup %3799  ;;  %v1504_v29 = vmul.f32 0.5, %v3798_v57 }
 0x186   :  { %v3802_v31 = vpop.eup %3801  ;;  %v1502_v53 = vmul.f32 0.5, %v3800_v28 }
 0x187   :  { %v3804_v33 = vpop.eup %3803  ;;  %v1505_v34 = vmul.f32 0.5, %v3802_v31  ;;  %v1508_v35 = vadd.f32 0.5, %v1504_v29  ;;  %v1540_v29 = vld [vmem:[#allocation2 + $0xd0] sm:$0xff] }
 0x188   :  { %v1503_v36 = vmul.f32 0.5, %v3804_v33  ;;  %v1506_v38 = vadd.f32 0.5, %v1502_v53  ;;  %v1538_v33 = vld [vmem:[#allocation2 + $0xc0] sm:$0xff] }
 0x189   :  { %v3806_v37 = vpop.eup %3805  ;;  %v1509_v12 = vadd.f32 0.5, %v1505_v34 }
 0x18a   :  { %v3808_v58 = vpop.eup %3807  ;;  %v1507_v39 = vadd.f32 0.5, %v1503_v36  ;;  %v1528_v14 = vmul.f32 %v3806_v37, %v1508_v35  ;;  %v1541_v37 = vld [vmem:[#allocation2 + $0xd8] sm:$0xff] }
 0x18b   :  { %v3810_v40 = vpop.eup %3809  ;;  %v1526_v43 = vmul.f32 %v3808_v58, %v1506_v38  ;;  %v1539_v58 = vld [vmem:[#allocation2 + $0xc8] sm:$0xff] }
 0x18c   :  { %v3812_v41 = vpop.eup %3811  ;;  %v1529_v42 = vmul.f32 %v3810_v40, %v1509_v12 }
 0x18d   :  { %v1527_v44 = vmul.f32 %v3812_v41, %v1507_v39 }
 0x18e   :  { %v1547_v60 = vpack.c.bf16 %v1529_v42, %v1528_v14 }
 0x18f   :  { %v1546_v45 = vpack.c.bf16 %v1527_v44, %v1526_v43 }
 0x191   :  { %3577 = vmatprep.subr.bf16.mxu1 %v1546_v45 }
 0x192   :  { %3578 = vmatpush3.bf16.msra.mxu1 %v1546_v45 }
 0x193   :  { %3579 = vmatprep.subr.bf16.mxu1 %v1547_v60 }
 0x196   :  { %3580 = vmatpush3.bf16.msra.mxu1 %v1547_v60 }
 0x199   :  { %3582 = vmatmul.mubr.msk.bf16.vlgmr.msra.gmra.mrb[64].mxu1 %vm209_vm0, %v4781_v46 }
 0x19a   :  { %3585 = vmatprep.mubr.msk.bf16.mxu1 %vm209_vm0, %v4788_v47 }
 0x1a1   :  { %3586 = vmatmul.mubr.msk.bf16.gmra.mrb[68].mxu1 %vm209_vm0, %v4795_v49 }
 0x1a2   :  { %3589 = vmatprep.mubr.msk.bf16.mxu1 %vm209_vm0, %v4802_v48 }
 0x1a9   :  { %3590 = vmatmul.mubr.msk.bf16.gmra.mrb[72].mxu1 %vm209_vm0, %v4809_v61 }
 0x1aa   :  { %3593 = vmatprep.mubr.msk.bf16.mxu1 %vm209_vm0, %v4816_v62 }
 0x1b1   :  { %3594 = vmatmul.mubr.msk.bf16.gmra.mrb[76].mxu1 %vm209_vm0, %v4823_v30 }
 0x1b2   :  { %3621 = vmatprep.mubr.msk.bf16.mxu1 %vm209_vm0, %v4830_v63 }
 0x26c   :  { %v3583_v1 = vpop.f32.mrb[64].mxu1 }
 0x26d   :  { %v1647_v59 = vadd.f32 %v3583_v1, %v1532_v0  ;;  %v1582_v3 = vpop.f32.mrb[65].mxu1  ;;  %v1544_v1 = vld [vmem:[#allocation2 + $0xf0] sm:$0xff] }
 0x26e   :  { %v1645_v4 = vadd.f32 %v1582_v3, %v1530_v2  ;;  %v3584_v6 = vpop.f32.mrb[66].mxu1 }
 0x26f   :  { %v1648_v7 = vadd.f32 %v3584_v6, %v1533_v5  ;;  %v1585_v9 = vpop.f32.mrb[67].mxu1  ;;  %v1663_v32 = vmul.f32 0.5, %v1647_v59 }
 0x270   :  { %v1646_v10 = vadd.f32 %v1585_v9, %v1531_v8  ;;  %v1661_v54 = vmul.f32 0.5, %v1645_v4 }
 0x271   :  { %v1664_v50 = vmul.f32 0.5, %v1648_v7  ;;  %3813 = vtanh.f32 %v1663_v32  ;;  %v1542_v7 = vld [vmem:[#allocation2 + $0xe0] sm:$0xff] }
 0x272   :  { %v1662_v11 = vmul.f32 0.5, %v1646_v10  ;;  %3815 = vtanh.f32 %v1661_v54 }
 0x273   :  { %3817 = vtanh.f32 %v1664_v50 }
 0x274   :  { %v3587_v15 = vpop.f32.mrb[68].mxu1  ;;  %3819 = vtanh.f32 %v1662_v11  ;;  %v1545_v11 = vld [vmem:[#allocation2 + $0xf8] sm:$0xff] }
 0x275   :  { %v1651_v55 = vadd.f32 %v3587_v15, %v1536_v13  ;;  %v1598_v17 = vpop.f32.mrb[69].mxu1 }
 0x276   :  { %v1649_v18 = vadd.f32 %v1598_v17, %v1534_v16  ;;  %v3588_v19 = vpop.f32.mrb[70].mxu1 }
 0x277   :  { %v1679_v20 = vmul.f32 0.5, %v1651_v55  ;;  %v1652_v21 = vadd.f32 %v3588_v19, %v1537_v52  ;;  %v1601_v24 = vpop.f32.mrb[71].mxu1 }
 0x278   :  { %v1677_v56 = vmul.f32 0.5, %v1649_v18  ;;  %v1650_v25 = vadd.f32 %v1601_v24, %v1535_v22  ;;  %v1543_v18 = vld [vmem:[#allocation2 + $0xe8] sm:$0xff] }
 0x279   :  { %3821 = vtanh.f32 %v1679_v20  ;;  %v1680_v57 = vmul.f32 0.5, %v1652_v21 }
 0x27a   :  { %3823 = vtanh.f32 %v1677_v56  ;;  %v1678_v28 = vmul.f32 0.5, %v1650_v25 }
 0x27b   :  { %3825 = vtanh.f32 %v1680_v57  ;;  %v3814_v35 = vpop.eup %3813 }
 0x27c   :  { %3827 = vtanh.f32 %v1678_v28  ;;  %v3591_v31 = vpop.f32.mrb[72].mxu1  ;;  %v3816_v40 = vpop.eup %3815  ;;  %v1671_v42 = vmul.f32 0.5, %v3814_v35 }
 0x27d   :  { %v1655_v53 = vadd.f32 %v3591_v31, %v1540_v29  ;;  %v1614_v34 = vpop.f32.mrb[73].mxu1  ;;  %v3818_v14 = vpop.eup %3817  ;;  %v1669_v45 = vmul.f32 0.5, %v3816_v40 }
 0x27e   :  { %v1653_v36 = vadd.f32 %v1614_v34, %v1538_v33  ;;  %v3592_v38 = vpop.f32.mrb[74].mxu1  ;;  %v3820_v43 = vpop.eup %3819  ;;  %v1675_v3 = vadd.f32 0.5, %v1671_v42  ;;  %v1672_v4 = vmul.f32 0.5, %v3818_v14 }
 0x27f   :  { %3829 = vtanh.f32 %v1655_v53  ;;  %v1656_v12 = vadd.f32 %v3592_v38, %v1541_v37  ;;  %v1617_v39 = vpop.f32.mrb[75].mxu1  ;;  %v1670_v32 = vmul.f32 0.5, %v3820_v43  ;;  %v1673_v19 = vadd.f32 0.5, %v1669_v45 }
 0x280   :  { %3831 = vtanh.f32 %v1653_v36  ;;  %v1654_v41 = vadd.f32 %v1617_v39, %v1539_v58  ;;  %v1676_v56 = vadd.f32 0.5, %v1672_v4 }
 0x281   :  { %3833 = vtanh.f32 %v1656_v12  ;;  %v1674_v34 = vadd.f32 0.5, %v1670_v32 }
 0x282   :  { %3835 = vtanh.f32 %v1654_v41 }
 0x283   :  { %v3822_v44 = vpop.eup %3821 }
 0x284   :  { %v3824_v60 = vpop.eup %3823  ;;  %v1687_v0 = vmul.f32 0.5, %v3822_v44  ;;  %v3595_v59 = vpop.f32.mrb[76].mxu1 }
 0x285   :  { %v3826_v2 = vpop.eup %3825  ;;  %v1685_v5 = vmul.f32 0.5, %v3824_v60  ;;  %v1659_v6 = vadd.f32 %v3595_v59, %v1544_v1  ;;  %v1630_v8 = vpop.f32.mrb[77].mxu1 }
 0x286   :  { %v3828_v9 = vpop.eup %3827  ;;  %v1691_v10 = vadd.f32 0.5, %v1687_v0  ;;  %v1688_v54 = vmul.f32 0.5, %v3826_v2  ;;  %v1657_v50 = vadd.f32 %v1630_v8, %v1542_v7  ;;  %v3596_v13 = vpop.f32.mrb[78].mxu1 }
 0x287   :  { %v1689_v15 = vadd.f32 0.5, %v1685_v5  ;;  %v1686_v55 = vmul.f32 0.5, %v3828_v9  ;;  %v1699_v16 = vmul.f32 0.5, %v1659_v6  ;;  %v1660_v17 = vadd.f32 %v3596_v13, %v1545_v11  ;;  %v1633_v52 = vpop.f32.mrb[79].mxu1 }
 0x288   :  { %v1692_v20 = vadd.f32 0.5, %v1688_v54  ;;  %v1697_v21 = vmul.f32 0.5, %v1657_v50  ;;  %v1658_v22 = vadd.f32 %v1633_v52, %v1543_v18  ;;  %v1715_v29 = vmul.f32 %v1691_v10, %v4766_v23  ;;  %v1735_v50 = vld [vmem:[#allocation2 + $0x110] sm:$0xff] }
 0x289   :  { %v3830_v24 = vpop.eup %3829  ;;  %v1690_v25 = vadd.f32 0.5, %v1686_v55  ;;  %3837 = vtanh.f32 %v1699_v16  ;;  %v1700_v57 = vmul.f32 0.5, %v1660_v17  ;;  %v1713_v35 = vmul.f32 %v1689_v15, %v4768_v51  ;;  %v1733_v15 = vld [vmem:[#allocation2 + $0x100] sm:$0xff]  ;;  %v1736_v17 = vld [vmem:[#allocation2 + $0x118] sm:$0xff] }
 0x28a   :  { %v3832_v28 = vpop.eup %3831  ;;  %v1719_v31 = vmul.f32 %v3830_v24, %v1675_v3  ;;  %3839 = vtanh.f32 %v1697_v21  ;;  %v1698_v53 = vmul.f32 0.5, %v1658_v22  ;;  %v1716_v38 = vmul.f32 %v1692_v20, %v4771_v26 }
 0x28b   :  { %v3834_v33 = vpop.eup %3833  ;;  %v1717_v36 = vmul.f32 %v3832_v28, %v1673_v19  ;;  %3841 = vtanh.f32 %v1700_v57  ;;  %v1714_v39 = vmul.f32 %v1690_v25, %v4774_v27  ;;  %v1734_v19 = vld [vmem:[#allocation2 + $0x108] sm:$0xff]  ;;  %v1739_v57 = vld [vmem:[#allocation2 + $0x130] sm:$0xff] }
 0x28c   :  { %v3836_v37 = vpop.eup %3835  ;;  %v4837_v12 = vadd.f32 %v1719_v31, %v1715_v29  ;;  %v1720_v58 = vmul.f32 %v3834_v33, %v1676_v56  ;;  %3843 = vtanh.f32 %v1698_v53  ;;  %v1737_v31 = vld [vmem:[#allocation2 + $0x120] sm:$0xff] }
 0x28d   :  { %v4840_v40 = vadd.f32 %v1717_v36, %v1713_v35  ;;  %v1718_v23 = vmul.f32 %v3836_v37, %v1674_v34  ;;  %v1740_v34 = vld [vmem:[#allocation2 + $0x138] sm:$0xff] }
 0x28e   :  { %3845 = vtanh.f32 %v4837_v12  ;;  %v4843_v41 = vadd.f32 %v1720_v58, %v1716_v38  ;;  %v1738_v38 = vld [vmem:[#allocation2 + $0x128] sm:$0xff] }
 0x28f   :  { %3847 = vtanh.f32 %v4840_v40  ;;  %v4846_v51 = vadd.f32 %v1718_v23, %v1714_v39 }
 0x290   :  { %3849 = vtanh.f32 %v4843_v41 }
 0x291   :  { %3851 = vtanh.f32 %v4846_v51 }
 0x293   :  { %v3838_v26 = vpop.eup %3837 }
 0x294   :  { %v3840_v14 = vpop.eup %3839  ;;  %v1707_v42 = vmul.f32 0.5, %v3838_v26 }
 0x295   :  { %v3842_v43 = vpop.eup %3841  ;;  %v1705_v27 = vmul.f32 0.5, %v3840_v14 }
 0x296   :  { %v3844_v44 = vpop.eup %3843  ;;  %v1708_v60 = vmul.f32 0.5, %v3842_v43  ;;  %v1711_v45 = vadd.f32 0.5, %v1707_v42  ;;  %v1743_v42 = vld [vmem:[#allocation2 + $0x150] sm:$0xff] }
 0x297   :  { %v1706_v0 = vmul.f32 0.5, %v3844_v44  ;;  %v1709_v59 = vadd.f32 0.5, %v1705_v27  ;;  %v1741_v44 = vld [vmem:[#allocation2 + $0x140] sm:$0xff] }
 0x298   :  { %v3846_v1 = vpop.eup %3845  ;;  %v1712_v2 = vadd.f32 0.5, %v1708_v60 }
 0x299   :  { %v3848_v3 = vpop.eup %3847  ;;  %v1710_v4 = vadd.f32 0.5, %v1706_v0  ;;  %v1731_v7 = vmul.f32 %v3846_v1, %v1711_v45  ;;  %v1744_v1 = vld [vmem:[#allocation2 + $0x158] sm:$0xff] }
 0x29a   :  { %v3850_v5 = vpop.eup %3849  ;;  %v1729_v9 = vmul.f32 %v3848_v3, %v1709_v59  ;;  %v1742_v3 = vld [vmem:[#allocation2 + $0x148] sm:$0xff] }
 0x29b   :  { %v3852_v6 = vpop.eup %3851  ;;  %v1732_v8 = vmul.f32 %v3850_v5, %v1712_v2 }
 0x29c   :  { %v1730_v32 = vmul.f32 %v3852_v6, %v1710_v4 }
 0x29d   :  { %v1750_v10 = vpack.c.bf16 %v1732_v8, %v1731_v7 }
 0x29e   :  { %v1749_v54 = vpack.c.bf16 %v1730_v32, %v1729_v9 }
 0x2a0   :  { %3597 = vmatprep.subr.bf16.mxu0 %v1749_v54 }
 0x2a1   :  { %3598 = vmatpush3.bf16.msra.mxu0 %v1749_v54 }
 0x2a2   :  { %3599 = vmatprep.subr.bf16.mxu0 %v1750_v10 }
 0x2a5   :  { %3600 = vmatpush3.bf16.msra.mxu0 %v1750_v10 }
 0x2a8   :  { %3602 = vmatmul.mubr.msk.bf16.vlgmr.msra.gmra.mrb[80].mxu0 %vm209_vm0, %v4781_v46 }
 0x2a9   :  { %3605 = vmatprep.mubr.msk.bf16.mxu0 %vm209_vm0, %v4788_v47 }
 0x2b0   :  { %3606 = vmatmul.mubr.msk.bf16.gmra.mrb[84].mxu0 %vm209_vm0, %v4795_v49 }
 0x2b1   :  { %3609 = vmatprep.mubr.msk.bf16.mxu0 %vm209_vm0, %v4802_v48 }
 0x2b8   :  { %3610 = vmatmul.mubr.msk.bf16.gmra.mrb[88].mxu0 %vm209_vm0, %v4809_v61 }
 0x2b9   :  { %3613 = vmatprep.mubr.msk.bf16.mxu0 %vm209_vm0, %v4816_v62 }
 0x2c0   :  { %3614 = vmatmul.mubr.msk.bf16.gmra.mrb[92].mxu0 %vm209_vm0, %v4823_v30 }
 0x2c1   :  { %3641 = vmatprep.mubr.msk.bf16.mxu0 %vm209_vm0, %v4830_v63 }
 0x37b   :  { %v3603_v11 = vpop.f32.mrb[80].mxu0 }
 0x37c   :  { %v1850_v13 = vadd.f32 %v3603_v11, %v1735_v50  ;;  %v1785_v55 = vpop.f32.mrb[81].mxu0  ;;  %v1747_v11 = vld [vmem:[#allocation2 + $0x170] sm:$0xff] }
 0x37d   :  { %v1848_v16 = vadd.f32 %v1785_v55, %v1733_v15  ;;  %v3604_v18 = vpop.f32.mrb[82].mxu0 }
 0x37e   :  { %v1851_v52 = vadd.f32 %v3604_v18, %v1736_v17  ;;  %v1788_v20 = vpop.f32.mrb[83].mxu0  ;;  %v1866_v21 = vmul.f32 0.5, %v1850_v13 }
 0x37f   :  { %v1849_v22 = vadd.f32 %v1788_v20, %v1734_v19  ;;  %v1864_v24 = vmul.f32 0.5, %v1848_v16 }
 0x380   :  { %v1867_v56 = vmul.f32 0.5, %v1851_v52  ;;  %3853 = vtanh.f32 %v1866_v21  ;;  %v1745_v52 = vld [vmem:[#allocation2 + $0x160] sm:$0xff] }
 0x381   :  { %v1865_v25 = vmul.f32 0.5, %v1849_v22  ;;  %3855 = vtanh.f32 %v1864_v24 }
 0x382   :  { %3857 = vtanh.f32 %v1867_v56 }
 0x383   :  { %v3607_v28 = vpop.f32.mrb[84].mxu0  ;;  %3859 = vtanh.f32 %v1865_v25  ;;  %v1748_v25 = vld [vmem:[#allocation2 + $0x178] sm:$0xff] }
 0x384   :  { %v1854_v29 = vadd.f32 %v3607_v28, %v1739_v57  ;;  %v1801_v53 = vpop.f32.mrb[85].mxu0 }
 0x385   :  { %v1852_v33 = vadd.f32 %v1801_v53, %v1737_v31  ;;  %v3608_v35 = vpop.f32.mrb[86].mxu0 }
 0x386   :  { %v1882_v36 = vmul.f32 0.5, %v1854_v29  ;;  %v1855_v37 = vadd.f32 %v3608_v35, %v1740_v34  ;;  %v1804_v58 = vpop.f32.mrb[87].mxu0 }
 0x387   :  { %v1880_v39 = vmul.f32 0.5, %v1852_v33  ;;  %v1853_v23 = vadd.f32 %v1804_v58, %v1738_v38  ;;  %v1746_v33 = vld [vmem:[#allocation2 + $0x168] sm:$0xff] }
 0x388   :  { %3861 = vtanh.f32 %v1882_v36  ;;  %v1883_v26 = vmul.f32 0.5, %v1855_v37 }
 0x389   :  { %3863 = vtanh.f32 %v1880_v39  ;;  %v1881_v14 = vmul.f32 0.5, %v1853_v23 }
 0x38a   :  { %3865 = vtanh.f32 %v1883_v26  ;;  %v3854_v45 = vpop.eup %3853 }
 0x38b   :  { %3867 = vtanh.f32 %v1881_v14  ;;  %v3611_v43 = vpop.f32.mrb[88].mxu0  ;;  %v3856_v5 = vpop.eup %3855  ;;  %v1874_v8 = vmul.f32 0.5, %v3854_v45 }
 0x38c   :  { %v1858_v27 = vadd.f32 %v3611_v43, %v1743_v42  ;;  %v1817_v60 = vpop.f32.mrb[89].mxu0  ;;  %v3858_v7 = vpop.eup %3857  ;;  %v1872_v54 = vmul.f32 0.5, %v3856_v5 }
 0x38d   :  { %v1856_v0 = vadd.f32 %v1817_v60, %v1741_v44  ;;  %v3612_v59 = vpop.f32.mrb[90].mxu0  ;;  %v3860_v9 = vpop.eup %3859  ;;  %v1878_v55 = vadd.f32 0.5, %v1874_v8  ;;  %v1875_v16 = vmul.f32 0.5, %v3858_v7 }
 0x38e   :  { %3869 = vtanh.f32 %v1858_v27  ;;  %v1859_v2 = vadd.f32 %v3612_v59, %v1744_v1  ;;  %v1820_v4 = vpop.f32.mrb[91].mxu0  ;;  %v1873_v21 = vmul.f32 0.5, %v3860_v9  ;;  %v1876_v35 = vadd.f32 0.5, %v1872_v54 }
 0x38f   :  { %3871 = vtanh.f32 %v1856_v0  ;;  %v1857_v6 = vadd.f32 %v1820_v4, %v1742_v3  ;;  %v1879_v39 = vadd.f32 0.5, %v1875_v16 }
 0x390   :  { %3873 = vtanh.f32 %v1859_v2  ;;  %v1877_v60 = vadd.f32 0.5, %v1873_v21 }
 0x391   :  { %3875 = vtanh.f32 %v1857_v6 }
 0x392   :  { %v3862_v32 = vpop.eup %3861 }
 0x393   :  { %v3864_v10 = vpop.eup %3863  ;;  %v1890_v50 = vmul.f32 0.5, %v3862_v32  ;;  %v3615_v13 = vpop.f32.mrb[92].mxu0 }
 0x394   :  { %v3866_v15 = vpop.eup %3865  ;;  %v1888_v17 = vmul.f32 0.5, %v3864_v10  ;;  %v1862_v18 = vadd.f32 %v3615_v13, %v1747_v11  ;;  %v1833_v19 = vpop.f32.mrb[93].mxu0 }
 0x395   :  { %v3868_v20 = vpop.eup %3867  ;;  %v1894_v22 = vadd.f32 0.5, %v1890_v50  ;;  %v1891_v24 = vmul.f32 0.5, %v3866_v15  ;;  %v1860_v56 = vadd.f32 %v1833_v19, %v1745_v52  ;;  %v3616_v57 = vpop.f32.mrb[94].mxu0 }
 0x396   :  { %v1892_v28 = vadd.f32 0.5, %v1888_v17  ;;  %v1889_v29 = vmul.f32 0.5, %v3868_v20  ;;  %v1902_v31 = vmul.f32 0.5, %v1862_v18  ;;  %v1863_v53 = vadd.f32 %v3616_v57, %v1748_v25  ;;  %v1836_v34 = vpop.f32.mrb[95].mxu0 }
 0x397   :  { %v1895_v36 = vadd.f32 0.5, %v1891_v24  ;;  %v1900_v37 = vmul.f32 0.5, %v1860_v56  ;;  %v1861_v38 = vadd.f32 %v1836_v34, %v1746_v33  ;;  %v1918_v42 = vmul.f32 %v1894_v22, %v4837_v12  ;;  %v1938_v56 = vld [vmem:[#allocation2 + $0x190] sm:$0xff] }
 0x398   :  { %v3870_v58 = vpop.eup %3869  ;;  %v1893_v23 = vadd.f32 0.5, %v1889_v29  ;;  %3877 = vtanh.f32 %v1902_v31  ;;  %v1903_v26 = vmul.f32 0.5, %v1863_v53  ;;  %v1916_v45 = vmul.f32 %v1892_v28, %v4840_v40  ;;  %v1936_v28 = vld [vmem:[#allocation2 + $0x180] sm:$0xff]  ;;  %v1939_v53 = vld [vmem:[#allocation2 + $0x198] sm:$0xff] }
 0x399   :  { %v3872_v14 = vpop.eup %3871  ;;  %v1922_v43 = vmul.f32 %v3870_v58, %v1878_v55  ;;  %3879 = vtanh.f32 %v1900_v37  ;;  %v1901_v27 = vmul.f32 0.5, %v1861_v38  ;;  %v1919_v59 = vmul.f32 %v1895_v36, %v4843_v41 }
 0x39a   :  { %v3874_v44 = vpop.eup %3873  ;;  %v1920_v0 = vmul.f32 %v3872_v14, %v1876_v35  ;;  %3881 = vtanh.f32 %v1903_v26  ;;  %v1917_v4 = vmul.f32 %v1893_v23, %v4846_v51  ;;  %v1937_v35 = vld [vmem:[#allocation2 + $0x188] sm:$0xff]  ;;  %v1942_v26 = vld [vmem:[#allocation2 + $0x1b0] sm:$0xff] }
 0x39b   :  { %v3876_v1 = vpop.eup %3875  ;;  %v4869_v2 = vadd.f32 %v1922_v43, %v1918_v42  ;;  %v1923_v3 = vmul.f32 %v3874_v44, %v1879_v39  ;;  %3883 = vtanh.f32 %v1901_v27  ;;  %v1940_v43 = vld [vmem:[#allocation2 + $0x1a0] sm:$0xff] }
 0x39c   :  { %v4872_v5 = vadd.f32 %v1920_v0, %v1916_v45  ;;  %v1921_v12 = vmul.f32 %v3876_v1, %v1877_v60  ;;  %v1943_v60 = vld [vmem:[#allocation2 + $0x1b8] sm:$0xff] }
 0x39d   :  { %3885 = vtanh.f32 %v4869_v2  ;;  %v4875_v6 = vadd.f32 %v1923_v3, %v1919_v59  ;;  %v1941_v59 = vld [vmem:[#allocation2 + $0x1a8] sm:$0xff] }
 0x39e   :  { %3887 = vtanh.f32 %v4872_v5  ;;  %v4878_v40 = vadd.f32 %v1921_v12, %v1917_v4 }
 0x39f   :  { %3889 = vtanh.f32 %v4875_v6 }
 0x3a0   :  { %3891 = vtanh.f32 %v4878_v40 }
 0x3a2   :  { %v3878_v41 = vpop.eup %3877 }
 0x3a3   :  { %v3880_v7 = vpop.eup %3879  ;;  %v1910_v8 = vmul.f32 0.5, %v3878_v41 }
 0x3a4   :  { %v3882_v9 = vpop.eup %3881  ;;  %v1908_v51 = vmul.f32 0.5, %v3880_v7 }
 0x3a5   :  { %v3884_v32 = vpop.eup %3883  ;;  %v1911_v10 = vmul.f32 0.5, %v3882_v9  ;;  %v1914_v54 = vadd.f32 0.5, %v1910_v8  ;;  %v1946_v8 = vld [vmem:[#allocation2 + $0x1d0] sm:$0xff] }
 0x3a6   :  { %v1909_v50 = vmul.f32 0.5, %v3884_v32  ;;  %v1912_v13 = vadd.f32 0.5, %v1908_v51  ;;  %v1944_v32 = vld [vmem:[#allocation2 + $0x1c0] sm:$0xff] }
 0x3a7   :  { %v3886_v11 = vpop.eup %3885  ;;  %v1915_v15 = vadd.f32 0.5, %v1911_v10 }
 0x3a8   :  { %v3888_v55 = vpop.eup %3887  ;;  %v1913_v16 = vadd.f32 0.5, %v1909_v50  ;;  %v1934_v52 = vmul.f32 %v3886_v11, %v1914_v54  ;;  %v1947_v11 = vld [vmem:[#allocation2 + $0x1d8] sm:$0xff] }
 0x3a9   :  { %v3890_v17 = vpop.eup %3889  ;;  %v1932_v20 = vmul.f32 %v3888_v55, %v1912_v13  ;;  %v1945_v55 = vld [vmem:[#allocation2 + $0x1c8] sm:$0xff] }
 0x3aa   :  { %v3892_v18 = vpop.eup %3891  ;;  %v1935_v19 = vmul.f32 %v3890_v17, %v1915_v15 }
 0x3ab   :  { %v1933_v21 = vmul.f32 %v3892_v18, %v1913_v16 }
 0x3ac   :  { %v1953_v22 = vpack.c.bf16 %v1935_v19, %v1934_v52 }
 0x3ad   :  { %v1952_v24 = vpack.c.bf16 %v1933_v21, %v1932_v20 }
 0x3af   :  { %3617 = vmatprep.subr.bf16.mxu1 %v1952_v24 }
 0x3b0   :  { %3618 = vmatpush3.bf16.msra.mxu1 %v1952_v24 }
 0x3b1   :  { %3619 = vmatprep.subr.bf16.mxu1 %v1953_v22 }
 0x3b4   :  { %3620 = vmatpush3.bf16.msra.mxu1 %v1953_v22 }
 0x3b7   :  { %3622 = vmatmul.mubr.msk.bf16.vlgmr.msra.gmra.mrb[80].mxu1 %vm209_vm0, %v4781_v46 }
 0x3b8   :  { %3625 = vmatprep.mubr.msk.bf16.mxu1 %vm209_vm0, %v4788_v47 }
 0x3bf   :  { %3626 = vmatmul.mubr.msk.bf16.gmra.mrb[84].mxu1 %vm209_vm0, %v4795_v49 }
 0x3c0   :  { %3629 = vmatprep.mubr.msk.bf16.mxu1 %vm209_vm0, %v4802_v48 }
 0x3c7   :  { %3630 = vmatmul.mubr.msk.bf16.gmra.mrb[88].mxu1 %vm209_vm0, %v4809_v61 }
 0x3c8   :  { %3633 = vmatprep.mubr.msk.bf16.mxu1 %vm209_vm0, %v4816_v62 }
 0x3cf   :  { %3634 = vmatmul.mubr.msk.bf16.gmra.mrb[92].mxu1 %vm209_vm0, %v4823_v30 }
 0x3d0   :  { %3661 = vmatprep.mubr.msk.bf16.mxu1 %vm209_vm0, %v4830_v63 }
 0x48a   :  { %v3623_v25 = vpop.f32.mrb[80].mxu1 }
 0x48b   :  { %v2053_v57 = vadd.f32 %v3623_v25, %v1938_v56  ;;  %v1988_v29 = vpop.f32.mrb[81].mxu1  ;;  %v1950_v25 = vld [vmem:[#allocation2 + $0x1f0] sm:$0xff] }
 0x48c   :  { %v2051_v31 = vadd.f32 %v1988_v29, %v1936_v28  ;;  %v3624_v33 = vpop.f32.mrb[82].mxu1 }
 0x48d   :  { %v2054_v34 = vadd.f32 %v3624_v33, %v1939_v53  ;;  %v1991_v36 = vpop.f32.mrb[83].mxu1  ;;  %v2069_v37 = vmul.f32 0.5, %v2053_v57 }
 0x48e   :  { %v2052_v38 = vadd.f32 %v1991_v36, %v1937_v35  ;;  %v2067_v58 = vmul.f32 0.5, %v2051_v31 }
 0x48f   :  { %v2070_v39 = vmul.f32 0.5, %v2054_v34  ;;  %3893 = vtanh.f32 %v2069_v37  ;;  %v1948_v34 = vld [vmem:[#allocation2 + $0x1e0] sm:$0xff] }
 0x490   :  { %v2068_v23 = vmul.f32 0.5, %v2052_v38  ;;  %3895 = vtanh.f32 %v2067_v58 }
 0x491   :  { %3897 = vtanh.f32 %v2070_v39 }
 0x492   :  { %v3627_v14 = vpop.f32.mrb[84].mxu1  ;;  %3899 = vtanh.f32 %v2068_v23  ;;  %v1951_v23 = vld [vmem:[#allocation2 + $0x1f8] sm:$0xff] }
 0x493   :  { %v2057_v42 = vadd.f32 %v3627_v14, %v1942_v26  ;;  %v2004_v27 = vpop.f32.mrb[85].mxu1 }
 0x494   :  { %v2055_v44 = vadd.f32 %v2004_v27, %v1940_v43  ;;  %v3628_v45 = vpop.f32.mrb[86].mxu1 }
 0x495   :  { %v2085_v0 = vmul.f32 0.5, %v2057_v42  ;;  %v2058_v1 = vadd.f32 %v3628_v45, %v1943_v60  ;;  %v2007_v3 = vpop.f32.mrb[87].mxu1 }
 0x496   :  { %v2083_v4 = vmul.f32 0.5, %v2055_v44  ;;  %v2056_v12 = vadd.f32 %v2007_v3, %v1941_v59  ;;  %v1949_v44 = vld [vmem:[#allocation2 + $0x1e8] sm:$0xff] }
 0x497   :  { %3901 = vtanh.f32 %v2085_v0  ;;  %v2086_v41 = vmul.f32 0.5, %v2058_v1 }
 0x498   :  { %3903 = vtanh.f32 %v2083_v4  ;;  %v2084_v7 = vmul.f32 0.5, %v2056_v12 }
 0x499   :  { %3905 = vtanh.f32 %v2086_v41  ;;  %v3894_v54 = vpop.eup %3893 }
 0x49a   :  { %3907 = vtanh.f32 %v2084_v7  ;;  %v3631_v9 = vpop.f32.mrb[88].mxu1  ;;  %v3896_v17 = vpop.eup %3895  ;;  %v2077_v19 = vmul.f32 0.5, %v3894_v54 }
 0x49b   :  { %v2061_v51 = vadd.f32 %v3631_v9, %v1946_v8  ;;  %v2020_v10 = vpop.f32.mrb[89].mxu1  ;;  %v3898_v52 = vpop.eup %3897  ;;  %v2075_v24 = vmul.f32 0.5, %v3896_v17 }
 0x49c   :  { %v2059_v50 = vadd.f32 %v2020_v10, %v1944_v32  ;;  %v3632_v13 = vpop.f32.mrb[90].mxu1  ;;  %v3900_v20 = vpop.eup %3899  ;;  %v2081_v29 = vadd.f32 0.5, %v2077_v19  ;;  %v2078_v31 = vmul.f32 0.5, %v3898_v52 }
 0x49d   :  { %3909 = vtanh.f32 %v2061_v51  ;;  %v2062_v15 = vadd.f32 %v3632_v13, %v1947_v11  ;;  %v2023_v16 = vpop.f32.mrb[91].mxu1  ;;  %v2076_v37 = vmul.f32 0.5, %v3900_v20  ;;  %v2079_v45 = vadd.f32 0.5, %v2075_v24 }
 0x49e   :  { %3911 = vtanh.f32 %v2059_v50  ;;  %v2060_v18 = vadd.f32 %v2023_v16, %v1945_v55  ;;  %v2082_v4 = vadd.f32 0.5, %v2078_v31 }
 0x49f   :  { %3913 = vtanh.f32 %v2062_v15  ;;  %v2080_v10 = vadd.f32 0.5, %v2076_v37 }
 0x4a0   :  { %3915 = vtanh.f32 %v2060_v18 }
 0x4a1   :  { %v3902_v21 = vpop.eup %3901 }
 0x4a2   :  { %v3904_v22 = vpop.eup %3903  ;;  %v2093_v56 = vmul.f32 0.5, %v3902_v21  ;;  %v3635_v57 = vpop.f32.mrb[92].mxu1 }
 0x4a3   :  { %v3906_v28 = vpop.eup %3905  ;;  %v2091_v53 = vmul.f32 0.5, %v3904_v22  ;;  %v2065_v33 = vadd.f32 %v3635_v57, %v1950_v25  ;;  %v2036_v35 = vpop.f32.mrb[93].mxu1 }
 0x4a4   :  { %v3908_v36 = vpop.eup %3907  ;;  %v2097_v38 = vadd.f32 0.5, %v2093_v56  ;;  %v2094_v58 = vmul.f32 0.5, %v3906_v28  ;;  %v2063_v39 = vadd.f32 %v2036_v35, %v1948_v34  ;;  %v3636_v26 = vpop.f32.mrb[94].mxu1 }
 0x4a5   :  { %v2095_v14 = vadd.f32 0.5, %v2091_v53  ;;  %v2092_v42 = vmul.f32 0.5, %v3908_v36  ;;  %v2105_v43 = vmul.f32 0.5, %v2065_v33  ;;  %v2066_v27 = vadd.f32 %v3636_v26, %v1951_v23  ;;  %v2039_v60 = vpop.f32.mrb[95].mxu1  ;;  %v2139_v23 = vld [vmem:[#allocation2 + $0x200] sm:$0xff] }
 0x4a6   :  { %v2098_v0 = vadd.f32 0.5, %v2094_v58  ;;  %v2103_v1 = vmul.f32 0.5, %v2063_v39  ;;  %v2064_v59 = vadd.f32 %v2039_v60, %v1949_v44  ;;  %v2121_v8 = vmul.f32 %v2097_v38, %v4869_v2 }
 0x4a7   :  { %v3910_v3 = vpop.eup %3909  ;;  %v2096_v12 = vadd.f32 0.5, %v2092_v42  ;;  %3917 = vtanh.f32 %v2105_v43  ;;  %v2106_v41 = vmul.f32 0.5, %v2066_v27  ;;  %v2119_v54 = vmul.f32 %v2095_v14, %v4872_v5  ;;  %v2142_v14 = vld [vmem:[#allocation2 + $0x218] sm:$0xff]  ;;  %v2140_v43 = vld [vmem:[#allocation2 + $0x208] sm:$0xff] }
 0x4a8   :  { %v3912_v7 = vpop.eup %3911  ;;  %v2125_v9 = vmul.f32 %v3910_v3, %v2081_v29  ;;  %3919 = vtanh.f32 %v2103_v1  ;;  %v2104_v51 = vmul.f32 0.5, %v2064_v59  ;;  %v2122_v13 = vmul.f32 %v2098_v0, %v4875_v6  ;;  %v2143_v1 = vld [vmem:[#allocation2 + $0x220] sm:$0xff] }
 0x4a9   :  { %v3914_v32 = vpop.eup %3913  ;;  %v2123_v50 = vmul.f32 %v3912_v7, %v2079_v45  ;;  %3921 = vtanh.f32 %v2106_v41  ;;  %v2120_v16 = vmul.f32 %v2096_v12, %v4878_v40  ;;  %v2145_v45 = vld [vmem:[#allocation2 + $0x230] sm:$0xff] }
 0x4aa   :  { %v3916_v11 = vpop.eup %3915  ;;  %v4901_v15 = vadd.f32 %v2125_v9, %v2121_v8  ;;  %v2126_v55 = vmul.f32 %v3914_v32, %v2082_v4  ;;  %3923 = vtanh.f32 %v2104_v51  ;;  %v2146_v4 = vld [vmem:[#allocation2 + $0x238] sm:$0xff]  ;;  %v2144_v8 = vld [vmem:[#allocation2 + $0x228] sm:$0xff] }
 0x4ab   :  { %v4904_v17 = vadd.f32 %v2123_v50, %v2119_v54  ;;  %v2124_v2 = vmul.f32 %v3916_v11, %v2080_v10  ;;  %v2149_v50 = vld [vmem:[#allocation2 + $0x250] sm:$0xff] }
 0x4ac   :  { %3925 = vtanh.f32 %v4901_v15  ;;  %v4907_v18 = vadd.f32 %v2126_v55, %v2122_v13  ;;  %v2147_v55 = vld [vmem:[#allocation2 + $0x240] sm:$0xff] }
 0x4ad   :  { %3927 = vtanh.f32 %v4904_v17  ;;  %v4910_v5 = vadd.f32 %v2124_v2, %v2120_v16 }
 0x4ae   :  { %3929 = vtanh.f32 %v4907_v18 }
 0x4af   :  { %3931 = vtanh.f32 %v4910_v5 }
 0x4b1   :  { %v3918_v6 = vpop.eup %3917 }
 0x4b2   :  { %v3920_v52 = vpop.eup %3919  ;;  %v2113_v19 = vmul.f32 0.5, %v3918_v6 }
 0x4b3   :  { %v3922_v20 = vpop.eup %3921  ;;  %v2111_v40 = vmul.f32 0.5, %v3920_v52  ;;  %v2150_v52 = vld [vmem:[#allocation2 + $0x258] sm:$0xff] }
 0x4b4   :  { %v3924_v21 = vpop.eup %3923  ;;  %v2114_v22 = vmul.f32 0.5, %v3922_v20  ;;  %v2117_v24 = vadd.f32 0.5, %v2113_v19 }
 0x4b5   :  { %v2112_v56 = vmul.f32 0.5, %v3924_v21  ;;  %v2115_v57 = vadd.f32 0.5, %v2111_v40  ;;  %v2148_v40 = vld [vmem:[#allocation2 + $0x248] sm:$0xff] }
 0x4b6   :  { %v3926_v25 = vpop.eup %3925  ;;  %v2118_v28 = vadd.f32 0.5, %v2114_v22 }
 0x4b7   :  { %v3928_v29 = vpop.eup %3927  ;;  %v2116_v31 = vadd.f32 0.5, %v2112_v56  ;;  %v2137_v34 = vmul.f32 %v3926_v25, %v2117_v24 }
 0x4b8   :  { %v3930_v53 = vpop.eup %3929  ;;  %v2135_v36 = vmul.f32 %v3928_v29, %v2115_v57 }
 0x4b9   :  { %v3932_v33 = vpop.eup %3931  ;;  %v2138_v35 = vmul.f32 %v3930_v53, %v2118_v28 }
 0x4ba   :  { %v2136_v37 = vmul.f32 %v3932_v33, %v2116_v31  ;;  %v2153_v33 = vld [vmem:[#allocation2 + $0x270] sm:$0xff] }
 0x4bb   :  { %v2156_v38 = vpack.c.bf16 %v2138_v35, %v2137_v34 }
 0x4bc   :  { %v2155_v58 = vpack.c.bf16 %v2136_v37, %v2135_v36 }
 0x4be   :  { %3637 = vmatprep.subr.bf16.mxu0 %v2155_v58 }
 0x4bf   :  { %3638 = vmatpush3.bf16.msra.mxu0 %v2155_v58 }
 0x4c0   :  { %3639 = vmatprep.subr.bf16.mxu0 %v2156_v38 }
 0x4c3   :  { %3640 = vmatpush3.bf16.msra.mxu0 %v2156_v38 }
 0x4c6   :  { %3642 = vmatmul.mubr.msk.bf16.vlgmr.msra.gmra.mrb[96].mxu0 %vm209_vm0, %v4781_v46  ;;  %v2141_v46 = vld [vmem:[#allocation2 + $0x210] sm:$0xff] }
 0x4c7   :  { %3645 = vmatprep.mubr.msk.bf16.mxu0 %vm209_vm0, %v4788_v47 }
 0x4ce   :  { %3646 = vmatmul.mubr.msk.bf16.gmra.mrb[100].mxu0 %vm209_vm0, %v4795_v49 }
 0x4cf   :  { %3649 = vmatprep.mubr.msk.bf16.mxu0 %vm209_vm0, %v4802_v48 }
 0x4d6   :  { %3650 = vmatmul.mubr.msk.bf16.gmra.mrb[104].mxu0 %vm209_vm0, %v4809_v61 }
 0x4d7   :  { %3653 = vmatprep.mubr.msk.bf16.mxu0 %vm209_vm0, %v4816_v62 }
 0x4de   :  { %3654 = vmatmul.mubr.msk.bf16.gmra.mrb[108].mxu0 %vm209_vm0, %v4823_v30 }
 0x4df   :  { %3681 = vmatprep.mubr.msk.bf16.mxu0 %vm209_vm0, %v4830_v63 }
 0x599   :  { %v3643_v47 = vpop.f32.mrb[96].mxu0 }
 0x59a   :  { %v2256_v39 = vadd.f32 %v3643_v47, %v2141_v46  ;;  %v2191_v49 = vpop.f32.mrb[97].mxu0  ;;  %v2151_v46 = vld [vmem:[#allocation2 + $0x260] sm:$0xff] }
 0x59b   :  { %v2254_v26 = vadd.f32 %v2191_v49, %v2139_v23  ;;  %v3644_v48 = vpop.f32.mrb[98].mxu0 }
 0x59c   :  { %v2257_v42 = vadd.f32 %v3644_v48, %v2142_v14  ;;  %v2194_v61 = vpop.f32.mrb[99].mxu0  ;;  %v2272_v27 = vmul.f32 0.5, %v2256_v39  ;;  %v2154_v48 = vld [vmem:[#allocation2 + $0x278] sm:$0xff] }
 0x59d   :  { %v2255_v44 = vadd.f32 %v2194_v61, %v2140_v43  ;;  %v2270_v62 = vmul.f32 0.5, %v2254_v26 }
 0x59e   :  { %v2273_v60 = vmul.f32 0.5, %v2257_v42  ;;  %3933 = vtanh.f32 %v2272_v27 }
 0x59f   :  { %v2271_v30 = vmul.f32 0.5, %v2255_v44  ;;  %3935 = vtanh.f32 %v2270_v62  ;;  %v2152_v62 = vld [vmem:[#allocation2 + $0x268] sm:$0xff] }
 0x5a0   :  { %3937 = vtanh.f32 %v2273_v60 }
 0x5a1   :  { %v3647_v0 = vpop.f32.mrb[100].mxu0  ;;  %3939 = vtanh.f32 %v2271_v30 }
 0x5a2   :  { %v2260_v63 = vadd.f32 %v3647_v0, %v2145_v45  ;;  %v2207_v59 = vpop.f32.mrb[101].mxu0 }
 0x5a3   :  { %v2258_v3 = vadd.f32 %v2207_v59, %v2143_v1  ;;  %v3648_v12 = vpop.f32.mrb[102].mxu0 }
 0x5a4   :  { %v2288_v41 = vmul.f32 0.5, %v2260_v63  ;;  %v2261_v7 = vadd.f32 %v3648_v12, %v2146_v4  ;;  %v2210_v9 = vpop.f32.mrb[103].mxu0 }
 0x5a5   :  { %v2286_v51 = vmul.f32 0.5, %v2258_v3  ;;  %v2259_v32 = vadd.f32 %v2210_v9, %v2144_v8 }
 0x5a6   :  { %3941 = vtanh.f32 %v2288_v41  ;;  %v2289_v10 = vmul.f32 0.5, %v2261_v7 }
 0x5a7   :  { %3943 = vtanh.f32 %v2286_v51  ;;  %v2287_v54 = vmul.f32 0.5, %v2259_v32 }
 0x5a8   :  { %3945 = vtanh.f32 %v2289_v10  ;;  %v3934_v2 = vpop.eup %3933 }
 0x5a9   :  { %3947 = vtanh.f32 %v2287_v54  ;;  %v3651_v11 = vpop.f32.mrb[104].mxu0  ;;  %v3936_v22 = vpop.eup %3935  ;;  %v2280_v25 = vmul.f32 0.5, %v3934_v2 }
 0x5aa   :  { %v2264_v13 = vadd.f32 %v3651_v11, %v2149_v50  ;;  %v2223_v16 = vpop.f32.mrb[105].mxu0  ;;  %v3938_v56 = vpop.eup %3937  ;;  %v2278_v31 = vmul.f32 0.5, %v3936_v22 }
 0x5ab   :  { %v2262_v6 = vadd.f32 %v2223_v16, %v2147_v55  ;;  %v3652_v19 = vpop.f32.mrb[106].mxu0  ;;  %v3940_v57 = vpop.eup %3939  ;;  %v2284_v36 = vadd.f32 0.5, %v2280_v25  ;;  %v2281_v37 = vmul.f32 0.5, %v3938_v56 }
 0x5ac   :  { %3949 = vtanh.f32 %v2264_v13  ;;  %v2265_v20 = vadd.f32 %v3652_v19, %v2150_v52  ;;  %v2226_v21 = vpop.f32.mrb[107].mxu0  ;;  %v2279_v23 = vmul.f32 0.5, %v3940_v57  ;;  %v2282_v30 = vadd.f32 0.5, %v2278_v31 }
 0x5ad   :  { %3951 = vtanh.f32 %v2262_v6  ;;  %v2263_v24 = vadd.f32 %v2226_v21, %v2148_v40  ;;  %v2285_v59 = vadd.f32 0.5, %v2281_v37 }
 0x5ae   :  { %3953 = vtanh.f32 %v2265_v20  ;;  %v2283_v51 = vadd.f32 0.5, %v2279_v23  ;;  %v4984_v23 = vld [vmem:[%s5084_s2 + $0x30] sm:$0xff]  }
 0x5af   :  { %3955 = vtanh.f32 %v2263_v24 }
 0x5b0   :  { %v3942_v28 = vpop.eup %3941 }
 0x5b1   :  { %v3944_v29 = vpop.eup %3943  ;;  %v2296_v53 = vmul.f32 0.5, %v3942_v28  ;;  %v3655_v34 = vpop.f32.mrb[108].mxu0 }
 0x5b2   :  { %v3946_v35 = vpop.eup %3945  ;;  %v2294_v38 = vmul.f32 0.5, %v3944_v29  ;;  %v2268_v58 = vadd.f32 %v3655_v34, %v2153_v33  ;;  %v2239_v47 = vpop.f32.mrb[109].mxu0 }
 0x5b3   :  { %v3948_v39 = vpop.eup %3947  ;;  %v2300_v49 = vadd.f32 0.5, %v2296_v53  ;;  %v2297_v26 = vmul.f32 0.5, %v3946_v35  ;;  %v2266_v14 = vadd.f32 %v2239_v47, %v2151_v46  ;;  %v3656_v42 = vpop.f32.mrb[110].mxu0  ;;  %v4963_v46 = vld [vmem:[%s5084_s2 + $0x18] sm:$0xff]   ;;  %v4970_v47 = vld [vmem:[%s5084_s2 + $0x20] sm:$0xff]  }
 0x5b4   :  { %v2298_v43 = vadd.f32 0.5, %v2294_v38  ;;  %v2295_v61 = vmul.f32 0.5, %v3948_v39  ;;  %v2308_v27 = vmul.f32 0.5, %v2268_v58  ;;  %v2269_v44 = vadd.f32 %v3656_v42, %v2154_v48  ;;  %v2242_v60 = vpop.f32.mrb[111].mxu0  ;;  %v4949_v38 = vld [vmem:[%s5084_s2 + $0x8] sm:$0xff]   ;;  %v4956_v58 = vld [vmem:[%s5084_s2 + $0x10] sm:$0xff]  }
 0x5b5   :  { %v2301_v45 = vadd.f32 0.5, %v2297_v26  ;;  %v2306_v0 = vmul.f32 0.5, %v2266_v14  ;;  %v2267_v63 = vadd.f32 %v2242_v60, %v2152_v62  ;;  %v2324_v41 = vmul.f32 %v2300_v49, %v4901_v15  ;;  %v4977_v39 = vld [vmem:[%s5084_s2 + $0x28] sm:$0xff]   ;;  %v4991_v49 = vld [vmem:[%s5084_s2 + $0x38] sm:$0xff]   ;;  %v4108_v26 = vld [vmem:[%s5084_s2] sm:$0xff]  }
 0x5b6   :  { %v3950_v1 = vpop.eup %3949  ;;  %v2299_v3 = vadd.f32 0.5, %v2295_v61  ;;  %3957 = vtanh.f32 %v2308_v27  ;;  %v2309_v4 = vmul.f32 0.5, %v2269_v44  ;;  %v2322_v32 = vmul.f32 %v2298_v43, %v4904_v17  ;;  %v2344_v14 = vld [vmem:[#allocation2 + $0x290] sm:$0xff]  ;;  %v2342_v43 = vld [vmem:[#allocation2 + $0x280] sm:$0xff]  ;;  %v2345_v44 = vld [vmem:[#allocation2 + $0x298] sm:$0xff] }
 0x5b7   :  { %v3952_v12 = vpop.eup %3951  ;;  %v2328_v7 = vmul.f32 %v3950_v1, %v2284_v36  ;;  %3959 = vtanh.f32 %v2306_v0  ;;  %v2307_v8 = vmul.f32 0.5, %v2267_v63  ;;  %v2325_v50 = vmul.f32 %v2301_v45, %v4907_v18 }
 0x5b8   :  { %v3954_v9 = vpop.eup %3953  ;;  %v2326_v10 = vmul.f32 %v3952_v12, %v2282_v30  ;;  %3961 = vtanh.f32 %v2309_v4  ;;  %v2323_v55 = vmul.f32 %v2299_v3, %v4910_v5  ;;  %v2343_v30 = vld [vmem:[#allocation2 + $0x288] sm:$0xff]  ;;  %v2348_v4 = vld [vmem:[#allocation2 + $0x2b0] sm:$0xff] }
 0x5b9   :  { %v3956_v54 = vpop.eup %3955  ;;  %v4933_v11 = vadd.f32 %v2328_v7, %v2324_v41  ;;  %v2329_v13 = vmul.f32 %v3954_v9, %v2285_v59  ;;  %3963 = vtanh.f32 %v2307_v8  ;;  %v2346_v7 = vld [vmem:[#allocation2 + $0x2a0] sm:$0xff] }
 0x5ba   :  { %v4936_v16 = vadd.f32 %v2326_v10, %v2322_v32  ;;  %v2327_v15 = vmul.f32 %v3956_v54, %v2283_v51  ;;  %v2349_v51 = vld [vmem:[#allocation2 + $0x2b8] sm:$0xff] }
 0x5bb   :  { %3965 = vtanh.f32 %v4933_v11  ;;  %v4939_v2 = vadd.f32 %v2329_v13, %v2325_v50  ;;  %v2347_v50 = vld [vmem:[#allocation2 + $0x2a8] sm:$0xff] }
 0x5bc   :  { %3967 = vtanh.f32 %v4936_v16  ;;  %v4942_v17 = vadd.f32 %v2327_v15, %v2323_v55 }
 0x5bd   :  { %3969 = vtanh.f32 %v4939_v2 }
 0x5be   :  { %3971 = vtanh.f32 %v4942_v17 }
 0x5c0   :  { %v3958_v18 = vpop.eup %3957 }
 0x5c1   :  { %v3960_v6 = vpop.eup %3959  ;;  %v2316_v52 = vmul.f32 0.5, %v3958_v18 }
 0x5c2   :  { %v3962_v19 = vpop.eup %3961  ;;  %v2314_v5 = vmul.f32 0.5, %v3960_v6 }
 0x5c3   :  { %v3964_v20 = vpop.eup %3963  ;;  %v2317_v40 = vmul.f32 0.5, %v3962_v19  ;;  %v2320_v21 = vadd.f32 0.5, %v2316_v52  ;;  %v2352_v52 = vld [vmem:[#allocation2 + $0x2d0] sm:$0xff] }
 0x5c4   :  { %v2315_v22 = vmul.f32 0.5, %v3964_v20  ;;  %v2318_v56 = vadd.f32 0.5, %v2314_v5  ;;  %v2350_v20 = vld [vmem:[#allocation2 + $0x2c0] sm:$0xff] }
 0x5c5   :  { %v3966_v24 = vpop.eup %3965  ;;  %v2321_v25 = vadd.f32 0.5, %v2317_v40 }
 0x5c6   :  { %v3968_v57 = vpop.eup %3967  ;;  %v2319_v28 = vadd.f32 0.5, %v2315_v22  ;;  %v2340_v53 = vmul.f32 %v3966_v24, %v2320_v21  ;;  %v2353_v24 = vld [vmem:[#allocation2 + $0x2d8] sm:$0xff] }
 0x5c7   :  { %v3970_v29 = vpop.eup %3969  ;;  %v2338_v34 = vmul.f32 %v3968_v57, %v2318_v56  ;;  %v2351_v57 = vld [vmem:[#allocation2 + $0x2c8] sm:$0xff] }
 0x5c8   :  { %v3972_v31 = vpop.eup %3971  ;;  %v2341_v33 = vmul.f32 %v3970_v29, %v2321_v25 }
 0x5c9   :  { %v2339_v35 = vmul.f32 %v3972_v31, %v2319_v28 }
 0x5ca   :  { %v2359_v36 = vpack.c.bf16 %v2341_v33, %v2340_v53 }
 0x5cb   :  { %v2358_v37 = vpack.c.bf16 %v2339_v35, %v2338_v34 }
 0x5cd   :  { %3657 = vmatprep.subr.bf16.mxu1 %v2358_v37 }
 0x5ce   :  { %3658 = vmatpush3.bf16.msra.mxu1 %v2358_v37 }
 0x5cf   :  { %3659 = vmatprep.subr.bf16.mxu1 %v2359_v36 }
 0x5d2   :  { %3660 = vmatpush3.bf16.msra.mxu1 %v2359_v36 }
 0x5d5   :  { %3662 = vmatmul.mubr.msk.bf16.vlgmr.msra.gmra.mrb[96].mxu1 %vm209_vm0, %v4949_v38 }
 0x5d6   :  { %3665 = vmatprep.mubr.msk.bf16.mxu1 %vm209_vm0, %v4956_v58 }
 0x5dd   :  { %3666 = vmatmul.mubr.msk.bf16.gmra.mrb[100].mxu1 %vm209_vm0, %v4963_v46 }
 0x5de   :  { %3669 = vmatprep.mubr.msk.bf16.mxu1 %vm209_vm0, %v4970_v47 }
 0x5e5   :  { %3670 = vmatmul.mubr.msk.bf16.gmra.mrb[104].mxu1 %vm209_vm0, %v4977_v39 }
 0x5e6   :  { %3673 = vmatprep.mubr.msk.bf16.mxu1 %vm209_vm0, %v4984_v23 }
 0x5ed   :  { %3674 = vmatmul.mubr.msk.bf16.gmra.mrb[108].mxu1 %vm209_vm0, %v4991_v49 }
 0x5ee   :  { %3701 = vmatprep.mubr.msk.bf16.mxu1 %vm209_vm0, %v4108_v26 }
 0x6a8   :  { %v3663_v48 = vpop.f32.mrb[96].mxu1 }
 0x6a9   :  { %v2459_v42 = vadd.f32 %v3663_v48, %v2344_v14  ;;  %v2394_v61 = vpop.f32.mrb[97].mxu1  ;;  %v2356_v14 = vld [vmem:[#allocation2 + $0x2f0] sm:$0xff] }
 0x6aa   :  { %v2457_v27 = vadd.f32 %v2394_v61, %v2342_v43  ;;  %v3664_v62 = vpop.f32.mrb[98].mxu1 }
 0x6ab   :  { %v2460_v60 = vadd.f32 %v3664_v62, %v2345_v44  ;;  %v2397_v45 = vpop.f32.mrb[99].mxu1  ;;  %v2475_v0 = vmul.f32 0.5, %v2459_v42  ;;  %v2354_v62 = vld [vmem:[#allocation2 + $0x2e0] sm:$0xff] }
 0x6ac   :  { %v2458_v63 = vadd.f32 %v2397_v45, %v2343_v30  ;;  %v2473_v1 = vmul.f32 0.5, %v2457_v27 }
 0x6ad   :  { %v2476_v59 = vmul.f32 0.5, %v2460_v60  ;;  %3973 = vtanh.f32 %v2475_v0 }
 0x6ae   :  { %v2474_v3 = vmul.f32 0.5, %v2458_v63  ;;  %3975 = vtanh.f32 %v2473_v1 }
 0x6af   :  { %3977 = vtanh.f32 %v2476_v59  ;;  %v2357_v59 = vld [vmem:[#allocation2 + $0x2f8] sm:$0xff] }
 0x6b0   :  { %v3667_v12 = vpop.f32.mrb[100].mxu1  ;;  %3979 = vtanh.f32 %v2474_v3 }
 0x6b1   :  { %v2463_v41 = vadd.f32 %v3667_v12, %v2348_v4  ;;  %v2410_v8 = vpop.f32.mrb[101].mxu1 }
 0x6b2   :  { %v2461_v9 = vadd.f32 %v2410_v8, %v2346_v7  ;;  %v3668_v32 = vpop.f32.mrb[102].mxu1  ;;  %v2355_v8 = vld [vmem:[#allocation2 + $0x2e8] sm:$0xff] }
 0x6b3   :  { %v2491_v10 = vmul.f32 0.5, %v2463_v41  ;;  %v2464_v54 = vadd.f32 %v3668_v32, %v2349_v51  ;;  %v2413_v13 = vpop.f32.mrb[103].mxu1 }
 0x6b4   :  { %v2489_v55 = vmul.f32 0.5, %v2461_v9  ;;  %v2462_v15 = vadd.f32 %v2413_v13, %v2347_v50 }
 0x6b5   :  { %3981 = vtanh.f32 %v2491_v10  ;;  %v2492_v18 = vmul.f32 0.5, %v2464_v54 }
 0x6b6   :  { %3983 = vtanh.f32 %v2489_v55  ;;  %v2490_v6 = vmul.f32 0.5, %v2462_v15 }
 0x6b7   :  { %3985 = vtanh.f32 %v2492_v18  ;;  %v3974_v21 = vpop.eup %3973 }
 0x6b8   :  { %3987 = vtanh.f32 %v2490_v6  ;;  %v3671_v19 = vpop.f32.mrb[104].mxu1  ;;  %v3976_v29 = vpop.eup %3975  ;;  %v2483_v33 = vmul.f32 0.5, %v3974_v21 }
 0x6b9   :  { %v2467_v5 = vadd.f32 %v3671_v19, %v2352_v52  ;;  %v2426_v40 = vpop.f32.mrb[105].mxu1  ;;  %v3978_v53 = vpop.eup %3977  ;;  %v2481_v37 = vmul.f32 0.5, %v3976_v29 }
 0x6ba   :  { %v2465_v22 = vadd.f32 %v2426_v40, %v2350_v20  ;;  %v3672_v56 = vpop.f32.mrb[106].mxu1  ;;  %v3980_v34 = vpop.eup %3979  ;;  %v2487_v43 = vadd.f32 0.5, %v2483_v33  ;;  %v2484_v61 = vmul.f32 0.5, %v3978_v53 }
 0x6bb   :  { %3989 = vtanh.f32 %v2467_v5  ;;  %v2468_v25 = vadd.f32 %v3672_v56, %v2353_v24  ;;  %v2429_v28 = vpop.f32.mrb[107].mxu1  ;;  %v2482_v45 = vmul.f32 0.5, %v3980_v34  ;;  %v2485_v51 = vadd.f32 0.5, %v2481_v37 }
 0x6bc   :  { %3991 = vtanh.f32 %v2465_v22  ;;  %v2466_v31 = vadd.f32 %v2429_v28, %v2351_v57  ;;  %v2488_v13 = vadd.f32 0.5, %v2484_v61 }
 0x6bd   :  { %3993 = vtanh.f32 %v2468_v25  ;;  %v2486_v20 = vadd.f32 0.5, %v2482_v45 }
 0x6be   :  { %3995 = vtanh.f32 %v2466_v31 }
 0x6bf   :  { %v3982_v35 = vpop.eup %3981 }
 0x6c0   :  { %v3984_v36 = vpop.eup %3983  ;;  %v2499_v26 = vmul.f32 0.5, %v3982_v35  ;;  %v3675_v48 = vpop.f32.mrb[108].mxu1 }
 0x6c1   :  { %v3986_v42 = vpop.eup %3985  ;;  %v2497_v27 = vmul.f32 0.5, %v3984_v36  ;;  %v2471_v44 = vadd.f32 %v3675_v48, %v2356_v14  ;;  %v2442_v60 = vpop.f32.mrb[109].mxu1 }
 0x6c2   :  { %v3988_v30 = vpop.eup %3987  ;;  %v2503_v0 = vadd.f32 0.5, %v2499_v26  ;;  %v2500_v63 = vmul.f32 0.5, %v3986_v42  ;;  %v2469_v1 = vadd.f32 %v2442_v60, %v2354_v62  ;;  %v3676_v3 = vpop.f32.mrb[110].mxu1 }
 0x6c3   :  { %v2501_v4 = vadd.f32 0.5, %v2497_v27  ;;  %v2498_v12 = vmul.f32 0.5, %v3988_v30  ;;  %v2511_v41 = vmul.f32 0.5, %v2471_v44  ;;  %v2472_v7 = vadd.f32 %v3676_v3, %v2357_v59  ;;  %v2445_v9 = vpop.f32.mrb[111].mxu1  ;;  %v2545_v3 = vld [vmem:[#allocation2 + $0x300] sm:$0xff] }
 0x6c4   :  { %v2504_v32 = vadd.f32 0.5, %v2500_v63  ;;  %v2509_v10 = vmul.f32 0.5, %v2469_v1  ;;  %v2470_v54 = vadd.f32 %v2445_v9, %v2355_v8  ;;  %v2527_v6 = vmul.f32 %v2503_v0, %v4933_v11  ;;  %v2547_v63 = vld [vmem:[#allocation2 + $0x310] sm:$0xff]  ;;  %v2546_v9 = vld [vmem:[#allocation2 + $0x308] sm:$0xff] }
 0x6c5   :  { %v3990_v50 = vpop.eup %3989  ;;  %v2502_v55 = vadd.f32 0.5, %v2498_v12  ;;  %3997 = vtanh.f32 %v2511_v41  ;;  %v2512_v15 = vmul.f32 0.5, %v2472_v7  ;;  %v2525_v40 = vmul.f32 %v2501_v4, %v4936_v16  ;;  %v2548_v41 = vld [vmem:[#allocation2 + $0x318] sm:$0xff] }
 0x6c6   :  { %v3992_v18 = vpop.eup %3991  ;;  %v2531_v52 = vmul.f32 %v3990_v50, %v2487_v43  ;;  %3999 = vtanh.f32 %v2509_v10  ;;  %v2510_v19 = vmul.f32 0.5, %v2470_v54  ;;  %v2528_v24 = vmul.f32 %v2504_v32, %v4939_v2 }
 0x6c7   :  { %v3994_v5 = vpop.eup %3993  ;;  %v2529_v21 = vmul.f32 %v3992_v18, %v2485_v51  ;;  %4001 = vtanh.f32 %v2512_v15  ;;  %v2526_v57 = vmul.f32 %v2502_v55, %v4942_v17  ;;  %v2551_v55 = vld [vmem:[#allocation2 + $0x330] sm:$0xff] }
 0x6c8   :  { %v3996_v22 = vpop.eup %3995  ;;  %v5002_v56 = vadd.f32 %v2531_v52, %v2527_v6  ;;  %v2532_v25 = vmul.f32 %v3994_v5, %v2488_v13  ;;  %4003 = vtanh.f32 %v2510_v19  ;;  %v2549_v6 = vld [vmem:[#allocation2 + $0x320] sm:$0xff]  ;;  %v2552_v5 = vld [vmem:[#allocation2 + $0x338] sm:$0xff] }
 0x6c9   :  { %v5005_v28 = vadd.f32 %v2529_v21, %v2525_v40  ;;  %v2530_v11 = vmul.f32 %v3996_v22, %v2486_v20  ;;  %v2550_v22 = vld [vmem:[#allocation2 + $0x328] sm:$0xff] }
 0x6ca   :  { %4005 = vtanh.f32 %v5002_v56  ;;  %v5008_v29 = vadd.f32 %v2532_v25, %v2528_v24 }
 0x6cb   :  { %4007 = vtanh.f32 %v5005_v28  ;;  %v5011_v16 = vadd.f32 %v2530_v11, %v2526_v57 }
 0x6cc   :  { %4009 = vtanh.f32 %v5008_v29 }
 0x6cd   :  { %4011 = vtanh.f32 %v5011_v16 }
 0x6cf   :  { %v3998_v2 = vpop.eup %3997 }
 0x6d0   :  { %v4000_v31 = vpop.eup %3999  ;;  %v2519_v53 = vmul.f32 0.5, %v3998_v2 }
 0x6d1   :  { %v4002_v33 = vpop.eup %4001  ;;  %v2517_v17 = vmul.f32 0.5, %v4000_v31  ;;  %v2555_v31 = vld [vmem:[#allocation2 + $0x350] sm:$0xff] }
 0x6d2   :  { %v4004_v34 = vpop.eup %4003  ;;  %v2520_v35 = vmul.f32 0.5, %v4002_v33  ;;  %v2523_v36 = vadd.f32 0.5, %v2519_v53 }
 0x6d3   :  { %v2518_v37 = vmul.f32 0.5, %v4004_v34  ;;  %v2521_v14 = vadd.f32 0.5, %v2517_v17  ;;  %v2553_v17 = vld [vmem:[#allocation2 + $0x340] sm:$0xff] }
 0x6d4   :  { %v4006_v26 = vpop.eup %4005  ;;  %v2524_v48 = vadd.f32 0.5, %v2520_v35 }
 0x6d5   :  { %v4008_v42 = vpop.eup %4007  ;;  %v2522_v43 = vadd.f32 0.5, %v2518_v37  ;;  %v2543_v44 = vmul.f32 %v4006_v26, %v2523_v36  ;;  %v2556_v37 = vld [vmem:[#allocation2 + $0x358] sm:$0xff] }
 0x6d6   :  { %v4010_v61 = vpop.eup %4009  ;;  %v2541_v60 = vmul.f32 %v4008_v42, %v2521_v14 }
 0x6d7   :  { %v4012_v27 = vpop.eup %4011  ;;  %v2544_v62 = vmul.f32 %v4010_v61, %v2524_v48  ;;  %v2554_v48 = vld [vmem:[#allocation2 + $0x348] sm:$0xff] }
 0x6d8   :  { %v2542_v30 = vmul.f32 %v4012_v27, %v2522_v43 }
 0x6d9   :  { %v2562_v45 = vpack.c.bf16 %v2544_v62, %v2543_v44 }
 0x6da   :  { %v2561_v0 = vpack.c.bf16 %v2542_v30, %v2541_v60 }
 0x6dc   :  { %3677 = vmatprep.subr.bf16.mxu0 %v2561_v0 }
 0x6dd   :  { %3678 = vmatpush3.bf16.msra.mxu0 %v2561_v0 }
 0x6de   :  { %3679 = vmatprep.subr.bf16.mxu0 %v2562_v45 }
 0x6e1   :  { %3680 = vmatpush3.bf16.msra.mxu0 %v2562_v45 }
 0x6e4   :  { %3682 = vmatmul.mubr.msk.bf16.vlgmr.msra.gmra.mrb[112].mxu0 %vm209_vm0, %v4949_v38 }
 0x6e5   :  { %3685 = vmatprep.mubr.msk.bf16.mxu0 %vm209_vm0, %v4956_v58 }
 0x6ec   :  { %3686 = vmatmul.mubr.msk.bf16.gmra.mrb[116].mxu0 %vm209_vm0, %v4963_v46 }
 0x6ed   :  { %3689 = vmatprep.mubr.msk.bf16.mxu0 %vm209_vm0, %v4970_v47 }
 0x6f4   :  { %3690 = vmatmul.mubr.msk.bf16.gmra.mrb[120].mxu0 %vm209_vm0, %v4977_v39 }
 0x6f5   :  { %3693 = vmatprep.mubr.msk.bf16.mxu0 %vm209_vm0, %v4984_v23 }
 0x6fc   :  { %3694 = vmatmul.mubr.msk.bf16.gmra.mrb[124].mxu0 %vm209_vm0, %v4991_v49 }
 0x7b7   :  { %v3683_v1 = vpop.f32.mrb[112].mxu0 }
 0x7b8   :  { %v2662_v59 = vadd.f32 %v3683_v1, %v2547_v63  ;;  %v2597_v4 = vpop.f32.mrb[113].mxu0  ;;  %v2559_v63 = vld [vmem:[#allocation2 + $0x370] sm:$0xff] }
 0x7b9   :  { %v2660_v12 = vadd.f32 %v2597_v4, %v2545_v3  ;;  %v3684_v7 = vpop.f32.mrb[114].mxu0 }
 0x7ba   :  { %v2663_v8 = vadd.f32 %v3684_v7, %v2548_v41  ;;  %v2600_v51 = vpop.f32.mrb[115].mxu0  ;;  %v2678_v32 = vmul.f32 0.5, %v2662_v59  ;;  %v2557_v7 = vld [vmem:[#allocation2 + $0x360] sm:$0xff] }
 0x7bb   :  { %v2661_v10 = vadd.f32 %v2600_v51, %v2546_v9  ;;  %v2676_v54 = vmul.f32 0.5, %v2660_v12 }
 0x7bc   :  { %v2679_v50 = vmul.f32 0.5, %v2663_v8  ;;  %4013 = vtanh.f32 %v2678_v32 }
 0x7bd   :  { %v2677_v13 = vmul.f32 0.5, %v2661_v10  ;;  %4015 = vtanh.f32 %v2676_v54 }
 0x7be   :  { %4017 = vtanh.f32 %v2679_v50  ;;  %v2560_v50 = vld [vmem:[#allocation2 + $0x378] sm:$0xff] }
 0x7bf   :  { %v3687_v15 = vpop.f32.mrb[116].mxu0  ;;  %4019 = vtanh.f32 %v2677_v13 }
 0x7c0   :  { %v2666_v18 = vadd.f32 %v3687_v15, %v2551_v55  ;;  %v2613_v52 = vpop.f32.mrb[117].mxu0 }
 0x7c1   :  { %v2664_v19 = vadd.f32 %v2613_v52, %v2549_v6  ;;  %v3688_v20 = vpop.f32.mrb[118].mxu0  ;;  %v2558_v52 = vld [vmem:[#allocation2 + $0x368] sm:$0xff] }
 0x7c2   :  { %v2694_v40 = vmul.f32 0.5, %v2666_v18  ;;  %v2667_v21 = vadd.f32 %v3688_v20, %v2552_v5  ;;  %v2616_v24 = vpop.f32.mrb[119].mxu0 }
 0x7c3   :  { %v2692_v25 = vmul.f32 0.5, %v2664_v19  ;;  %v2665_v57 = vadd.f32 %v2616_v24, %v2550_v22 }
 0x7c4   :  { %4021 = vtanh.f32 %v2694_v40  ;;  %v2695_v11 = vmul.f32 0.5, %v2667_v21 }
 0x7c5   :  { %4023 = vtanh.f32 %v2692_v25  ;;  %v2693_v2 = vmul.f32 0.5, %v2665_v57 }
 0x7c6   :  { %4025 = vtanh.f32 %v2695_v11  ;;  %v4014_v35 = vpop.eup %4013 }
 0x7c7   :  { %4027 = vtanh.f32 %v2693_v2  ;;  %v3691_v53 = vpop.f32.mrb[120].mxu0  ;;  %v4016_v43 = vpop.eup %4015  ;;  %v2686_v44 = vmul.f32 0.5, %v4014_v35 }
 0x7c8   :  { %v2670_v33 = vadd.f32 %v3691_v53, %v2555_v31  ;;  %v2629_v34 = vpop.f32.mrb[121].mxu0  ;;  %v4018_v27 = vpop.eup %4017  ;;  %v2684_v45 = vmul.f32 0.5, %v4016_v43 }
 0x7c9   :  { %v2668_v36 = vadd.f32 %v2629_v34, %v2553_v17  ;;  %v3692_v26 = vpop.f32.mrb[122].mxu0  ;;  %v4020_v62 = vpop.eup %4019  ;;  %v2690_v3 = vadd.f32 0.5, %v2686_v44  ;;  %v2687_v4 = vmul.f32 0.5, %v4018_v27 }
 0x7ca   :  { %4029 = vtanh.f32 %v2670_v33  ;;  %v2671_v14 = vadd.f32 %v3692_v26, %v2556_v37  ;;  %v2632_v42 = vpop.f32.mrb[123].mxu0  ;;  %v2685_v51 = vmul.f32 0.5, %v4020_v62  ;;  %v2688_v5 = vadd.f32 0.5, %v2684_v45 }
 0x7cb   :  { %4031 = vtanh.f32 %v2668_v36  ;;  %v2669_v61 = vadd.f32 %v2632_v42, %v2554_v48  ;;  %v2691_v24 = vadd.f32 0.5, %v2687_v4 }
 0x7cc   :  { %4033 = vtanh.f32 %v2671_v14  ;;  %v2689_v17 = vadd.f32 0.5, %v2685_v51 }
 0x7cd   :  { %4035 = vtanh.f32 %v2669_v61 }
 0x7ce   :  { %v4022_v60 = vpop.eup %4021 }
 0x7cf   :  { %v4024_v30 = vpop.eup %4023  ;;  %v2702_v0 = vmul.f32 0.5, %v4022_v60  ;;  %v3695_v1 = vpop.f32.mrb[124].mxu0 }
 0x7d0   :  { %v4026_v59 = vpop.eup %4025  ;;  %v2700_v12 = vmul.f32 0.5, %v4024_v30  ;;  %v2674_v41 = vadd.f32 %v3695_v1, %v2559_v63  ;;  %v2645_v8 = vpop.f32.mrb[125].mxu0 }
 0x7d1   :  { %v4028_v9 = vpop.eup %4027  ;;  %v2706_v32 = vadd.f32 0.5, %v2702_v0  ;;  %v2703_v10 = vmul.f32 0.5, %v4026_v59  ;;  %v2672_v54 = vadd.f32 %v2645_v8, %v2557_v7  ;;  %v3696_v13 = vpop.f32.mrb[126].mxu0 }
 0x7d2   :  { %v2704_v55 = vadd.f32 0.5, %v2700_v12  ;;  %v2701_v15 = vmul.f32 0.5, %v4028_v9  ;;  %v2714_v18 = vmul.f32 0.5, %v2674_v41  ;;  %v2675_v6 = vadd.f32 %v3696_v13, %v2560_v50  ;;  %v2648_v19 = vpop.f32.mrb[127].mxu0  ;;  %v2748_v50 = vld [vmem:[#allocation2 + $0x380] sm:$0xff] }
 0x7d3   :  { %v2707_v20 = vadd.f32 0.5, %v2703_v10  ;;  %v2712_v40 = vmul.f32 0.5, %v2672_v54  ;;  %v2673_v21 = vadd.f32 %v2648_v19, %v2558_v52  ;;  %v2730_v2 = vmul.f32 %v2706_v32, %v5002_v56 }
 0x7d4   :  { %v4030_v22 = vpop.eup %4029  ;;  %v2705_v25 = vadd.f32 0.5, %v2701_v15  ;;  %4037 = vtanh.f32 %v2714_v18  ;;  %v2715_v57 = vmul.f32 0.5, %v2675_v6  ;;  %v2728_v34 = vmul.f32 %v2704_v55, %v5005_v28  ;;  %v2751_v55 = vld [vmem:[#allocation2 + $0x398] sm:$0xff]  ;;  %v2749_v18 = vld [vmem:[#allocation2 + $0x388] sm:$0xff] }
 0x7d5   :  { %v4032_v11 = vpop.eup %4031  ;;  %v2734_v31 = vmul.f32 %v4030_v22, %v2690_v3  ;;  %4039 = vtanh.f32 %v2712_v40  ;;  %v2713_v53 = vmul.f32 0.5, %v2673_v21  ;;  %v2731_v37 = vmul.f32 %v2707_v20, %v5008_v29  ;;  %v2754_v20 = vld [vmem:[#allocation2 + $0x3b0] sm:$0xff]  ;;  %v2752_v22 = vld [vmem:[#allocation2 + $0x3a0] sm:$0xff] }
 0x7d6   :  { %v4034_v33 = vpop.eup %4033  ;;  %v2732_v35 = vmul.f32 %v4032_v11, %v2688_v5  ;;  %4041 = vtanh.f32 %v2715_v57  ;;  %v2729_v48 = vmul.f32 %v2705_v25, %v5011_v16  ;;  %v4134_v10 = vmov 0.0|0.0   ;;  %v2755_v57 = vld [vmem:[#allocation2 + $0x3b8] sm:$0xff] }
 0x7d7   :  { %v4036_v36 = vpop.eup %4035  ;;  %v5032_v26 = vadd.f32 %v2734_v31, %v2730_v2  ;;  %v2735_v14 = vmul.f32 %v4034_v33, %v2691_v24  ;;  %4043 = vtanh.f32 %v2713_v53  ;;  %3728 = vmatprep.subr.bf16.mxu0 %v4134_v10  ;;  %v2753_v53 = vld [vmem:[#allocation2 + $0x3a8] sm:$0xff] }
 0x7d8   :  { %v5035_v42 = vadd.f32 %v2732_v35, %v2728_v34  ;;  %v2733_v56 = vmul.f32 %v4036_v36, %v2689_v17 }
 0x7d9   :  { %4045 = vtanh.f32 %v5032_v26  ;;  %v5038_v43 = vadd.f32 %v2735_v14, %v2731_v37  ;;  %v2758_v37 = vld [vmem:[#allocation2 + $0x3d0] sm:$0xff] }
 0x7da   :  { %4047 = vtanh.f32 %v5035_v42  ;;  %v5041_v28 = vadd.f32 %v2733_v56, %v2729_v48  ;;  %v2756_v56 = vld [vmem:[#allocation2 + $0x3c0] sm:$0xff] }
 0x7db   :  { %4049 = vtanh.f32 %v5038_v43 }
 0x7dc   :  { %4051 = vtanh.f32 %v5041_v28 }
 0x7de   :  { %v4038_v29 = vpop.eup %4037 }
 0x7df   :  { %v4040_v61 = vpop.eup %4039  ;;  %v2722_v27 = vmul.f32 0.5, %v4038_v29 }
 0x7e0   :  { %v4042_v44 = vpop.eup %4041  ;;  %v2720_v16 = vmul.f32 0.5, %v4040_v61 }
 0x7e1   :  { %v4044_v62 = vpop.eup %4043  ;;  %v2723_v60 = vmul.f32 0.5, %v4042_v44  ;;  %v2726_v30 = vadd.f32 0.5, %v2722_v27  ;;  %v2759_v44 = vld [vmem:[#allocation2 + $0x3d8] sm:$0xff] }
 0x7e2   :  { %v2721_v45 = vmul.f32 0.5, %v4044_v62  ;;  %v2724_v63 = vadd.f32 0.5, %v2720_v16 }
 0x7e3   :  { %v4046_v0 = vpop.eup %4045  ;;  %v2727_v1 = vadd.f32 0.5, %v2723_v60  ;;  %v2757_v60 = vld [vmem:[#allocation2 + $0x3c8] sm:$0xff] }
 0x7e4   :  { %v4048_v59 = vpop.eup %4047  ;;  %v2725_v3 = vadd.f32 0.5, %v2721_v45  ;;  %v2746_v41 = vmul.f32 %v4046_v0, %v2726_v30 }
 0x7e5   :  { %v4050_v4 = vpop.eup %4049  ;;  %v2744_v8 = vmul.f32 %v4048_v59, %v2724_v63 }
 0x7e6   :  { %v4052_v12 = vpop.eup %4051  ;;  %v2747_v7 = vmul.f32 %v4050_v4, %v2727_v1 }
 0x7e7   :  { %v2745_v9 = vmul.f32 %v4052_v12, %v2725_v3 }
 0x7e8   :  { %v2765_v51 = vpack.c.bf16 %v2747_v7, %v2746_v41  ;;  %v2762_v7 = vld [vmem:[#allocation2 + $0x3f0] sm:$0xff] }
 0x7e9   :  { %v2764_v32 = vpack.c.bf16 %v2745_v9, %v2744_v8 }
 0x7eb   :  { %3697 = vmatprep.subr.bf16.mxu1 %v2764_v32 }
 0x7ec   :  { %3698 = vmatpush3.bf16.msra.mxu1 %v2764_v32 }
 0x7ed   :  { %3699 = vmatprep.subr.bf16.mxu1 %v2765_v51 }
 0x7f0   :  { %3700 = vmatpush3.bf16.msra.mxu1 %v2765_v51 }
 0x7f3   :  { %3702 = vmatmul.mubr.msk.bf16.vlgmr.msra.gmra.mrb[112].mxu1 %vm209_vm0, %v4949_v38  ;;  %v4136_v38 = vmov 0.0  }
 0x7f4   :  { %3705 = vmatprep.mubr.msk.bf16.mxu1 %vm209_vm0, %v4956_v58  ;;  %3725 = vmatprep.mubr.msk.f32.mxu0 %vm4135_vm2, %v4136_v38  ;;  %v2750_v58 = vld [vmem:[#allocation2 + $0x390] sm:$0xff] }
 0x7fb   :  { %3706 = vmatmul.mubr.msk.bf16.gmra.mrb[116].mxu1 %vm209_vm0, %v4963_v46 }
 0x7fc   :  { %3709 = vmatprep.mubr.msk.bf16.mxu1 %vm209_vm0, %v4970_v47 }
 0x803   :  { %3710 = vmatmul.mubr.msk.bf16.gmra.mrb[120].mxu1 %vm209_vm0, %v4977_v39 }
 0x804   :  { %3713 = vmatprep.mubr.msk.bf16.mxu1 %vm209_vm0, %v4984_v23 }
 0x80b   :  { %3714 = vmatmul.mubr.msk.bf16.gmra.mrb[124].mxu1 %vm209_vm0, %v4991_v49 }
 0x8c6   :  { %v3703_v46 = vpop.f32.mrb[112].mxu1 }
 0x8c7   :  { %v2865_v54 = vadd.f32 %v3703_v46, %v2750_v58  ;;  %v2800_v47 = vpop.f32.mrb[113].mxu1  ;;  %v2760_v46 = vld [vmem:[#allocation2 + $0x3e0] sm:$0xff] }
 0x8c8   :  { %v2863_v13 = vadd.f32 %v2800_v47, %v2748_v50  ;;  %v3704_v39 = vpop.f32.mrb[114].mxu1 }
 0x8c9   :  { %v2866_v15 = vadd.f32 %v3704_v39, %v2751_v55  ;;  %v2803_v23 = vpop.f32.mrb[115].mxu1  ;;  %v2881_v6 = vmul.f32 0.5, %v2865_v54 }
 0x8ca   :  { %v2864_v52 = vadd.f32 %v2803_v23, %v2749_v18  ;;  %v2879_v49 = vmul.f32 0.5, %v2863_v13 }
 0x8cb   :  { %v2882_v19 = vmul.f32 0.5, %v2866_v15  ;;  %4053 = vtanh.f32 %v2881_v6  ;;  %v2763_v15 = vld [vmem:[#allocation2 + $0x3f8] sm:$0xff] }
 0x8cc   :  { %v2880_v5 = vmul.f32 0.5, %v2864_v52  ;;  %4055 = vtanh.f32 %v2879_v49 }
 0x8cd   :  { %4057 = vtanh.f32 %v2882_v19  ;;  %v2761_v19 = vld [vmem:[#allocation2 + $0x3e8] sm:$0xff] }
 0x8ce   :  { %v3707_v40 = vpop.f32.mrb[116].mxu1  ;;  %4059 = vtanh.f32 %v2880_v5 }
 0x8cf   :  { %v2869_v21 = vadd.f32 %v3707_v40, %v2754_v20  ;;  %v2816_v24 = vpop.f32.mrb[117].mxu1 }
 0x8d0   :  { %v2867_v25 = vadd.f32 %v2816_v24, %v2752_v22  ;;  %v3708_v11 = vpop.f32.mrb[118].mxu1 }
 0x8d1   :  { %v2897_v2 = vmul.f32 0.5, %v2869_v21  ;;  %v2870_v31 = vadd.f32 %v3708_v11, %v2755_v57  ;;  %v2819_v33 = vpop.f32.mrb[119].mxu1 }
 0x8d2   :  { %v2895_v17 = vmul.f32 0.5, %v2867_v25  ;;  %v2868_v34 = vadd.f32 %v2819_v33, %v2753_v53 }
 0x8d3   :  { %4061 = vtanh.f32 %v2897_v2  ;;  %v2898_v35 = vmul.f32 0.5, %v2870_v31 }
 0x8d4   :  { %4063 = vtanh.f32 %v2895_v17  ;;  %v2896_v36 = vmul.f32 0.5, %v2868_v34 }
 0x8d5   :  { %4065 = vtanh.f32 %v2898_v35  ;;  %v4054_v61 = vpop.eup %4053 }
 0x8d6   :  { %4067 = vtanh.f32 %v2896_v36  ;;  %v3711_v14 = vpop.f32.mrb[120].mxu1  ;;  %v4056_v45 = vpop.eup %4055  ;;  %v2889_v1 = vmul.f32 0.5, %v4054_v61 }
 0x8d7   :  { %v2873_v48 = vadd.f32 %v3711_v14, %v2758_v37  ;;  %v2832_v29 = vpop.f32.mrb[121].mxu1  ;;  %v4058_v63 = vpop.eup %4057  ;;  %v2887_v12 = vmul.f32 0.5, %v4056_v45 }
 0x8d8   :  { %v2871_v27 = vadd.f32 %v2832_v29, %v2756_v56  ;;  %v3712_v16 = vpop.f32.mrb[122].mxu1  ;;  %v4060_v59 = vpop.eup %4059  ;;  %v2893_v51 = vadd.f32 0.5, %v2889_v1  ;;  %v2890_v32 = vmul.f32 0.5, %v4058_v63 }
 0x8d9   :  { %4069 = vtanh.f32 %v2873_v48  ;;  %v2874_v62 = vadd.f32 %v3712_v16, %v2759_v44  ;;  %v2835_v30 = vpop.f32.mrb[123].mxu1  ;;  %v2888_v47 = vmul.f32 0.5, %v4060_v59  ;;  %v2891_v20 = vadd.f32 0.5, %v2887_v12 }
 0x8da   :  { %4071 = vtanh.f32 %v2871_v27  ;;  %v2872_v0 = vadd.f32 %v2835_v30, %v2757_v60  ;;  %v2894_v25 = vadd.f32 0.5, %v2890_v32 }
 0x8db   :  { %4073 = vtanh.f32 %v2874_v62  ;;  %v2892_v34 = vadd.f32 0.5, %v2888_v47 }
 0x8dc   :  { %4075 = vtanh.f32 %v2872_v0 }
 0x8dd   :  { %v4062_v3 = vpop.eup %4061 }
 0x8de   :  { %v4064_v4 = vpop.eup %4063  ;;  %v2905_v41 = vmul.f32 0.5, %v4062_v3  ;;  %v3715_v8 = vpop.f32.mrb[124].mxu1 }
 0x8df   :  { %v4066_v9 = vpop.eup %4065  ;;  %v2903_v38 = vmul.f32 0.5, %v4064_v4  ;;  %v2877_v58 = vadd.f32 %v3715_v8, %v2762_v7  ;;  %v2848_v54 = vpop.f32.mrb[125].mxu1 }
 0x8e0   :  { %v4068_v50 = vpop.eup %4067  ;;  %v2909_v13 = vadd.f32 0.5, %v2905_v41  ;;  %v2906_v55 = vmul.f32 0.5, %v4066_v9  ;;  %v2875_v39 = vadd.f32 %v2848_v54, %v2760_v46  ;;  %v3716_v18 = vpop.f32.mrb[126].mxu1 }
 0x8e1   :  { %v2907_v23 = vadd.f32 0.5, %v2903_v38  ;;  %v2904_v6 = vmul.f32 0.5, %v4068_v50  ;;  %v2917_v52 = vmul.f32 0.5, %v2877_v58  ;;  %v2878_v49 = vadd.f32 %v3716_v18, %v2763_v15  ;;  %v2851_v5 = vpop.f32.mrb[127].mxu1  ;;  %v2951_v58 = vld [vmem:[%s5086_s4] sm:$0xff]  ;;  %v2956_v46 = vpop.permute.xlu0 %2955 }
 0x8e2   :  { %v2910_v40 = vadd.f32 0.5, %v2906_v55  ;;  %v2915_v21 = vmul.f32 0.5, %v2875_v39  ;;  %v2876_v22 = vadd.f32 %v2851_v5, %v2761_v19  ;;  %v2933_v31 = vmul.f32 %v2909_v13, %v5032_v26 }
 0x8e3   :  { %v4070_v24 = vpop.eup %4069  ;;  %v2908_v57 = vadd.f32 0.5, %v2904_v6  ;;  %4077 = vtanh.f32 %v2917_v52  ;;  %v2918_v11 = vmul.f32 0.5, %v2878_v49  ;;  %v2931_v35 = vmul.f32 %v2907_v23, %v5035_v42 }
 0x8e4   :  { %v4072_v2 = vpop.eup %4071  ;;  %v2937_v53 = vmul.f32 %v4070_v24, %v2893_v51  ;;  %4079 = vtanh.f32 %v2915_v21  ;;  %v2916_v33 = vmul.f32 0.5, %v2876_v22  ;;  %v2934_v14 = vmul.f32 %v2910_v40, %v5038_v43 }
 0x8e5   :  { %v4074_v17 = vpop.eup %4073  ;;  %v2935_v36 = vmul.f32 %v4072_v2, %v2891_v20  ;;  %4081 = vtanh.f32 %v2918_v11  ;;  %v2932_v29 = vmul.f32 %v2908_v57, %v5041_v28 }
 0x8e6   :  { %v4076_v37 = vpop.eup %4075  ;;  %v2941_v48 = vadd.f32 %v2937_v53, %v2933_v31  ;;  %v2938_v56 = vmul.f32 %v4074_v17, %v2894_v25  ;;  %4083 = vtanh.f32 %v2916_v33 }
 0x8e7   :  { %v2939_v61 = vadd.f32 %v2935_v36, %v2931_v35  ;;  %v2936_v27 = vmul.f32 %v4076_v37, %v2892_v34 }
 0x8e8   :  { %4085 = vtanh.f32 %v2941_v48  ;;  %v2942_v26 = vadd.f32 %v2938_v56, %v2934_v14 }
 0x8e9   :  { %4087 = vtanh.f32 %v2939_v61  ;;  %v2940_v44 = vadd.f32 %v2936_v27, %v2932_v29 }
 0x8ea   :  { %4089 = vtanh.f32 %v2942_v26 }
 0x8eb   :  { %4091 = vtanh.f32 %v2940_v44 }
 0x8ed   :  { %v4078_v16 = vpop.eup %4077 }
 0x8ee   :  { %v4080_v42 = vpop.eup %4079  ;;  %v2925_v62 = vmul.f32 0.5, %v4078_v16 }
 0x8ef   :  { %v4082_v60 = vpop.eup %4081  ;;  %v2923_v30 = vmul.f32 0.5, %v4080_v42 }
 0x8f0   :  { %v4084_v45 = vpop.eup %4083  ;;  %v2929_v43 = vadd.f32 0.5, %v2925_v62  ;;  %v2926_v0 = vmul.f32 0.5, %v4082_v60 }
 0x8f1   :  { %v2927_v63 = vadd.f32 0.5, %v2923_v30  ;;  %v2924_v1 = vmul.f32 0.5, %v4084_v45 }
 0x8f2   :  { %v4086_v59 = vpop.eup %4085  ;;  %v2930_v28 = vadd.f32 0.5, %v2926_v0 }
 0x8f3   :  { %v4088_v3 = vpop.eup %4087  ;;  %v2949_v4 = vmul.f32 %v4086_v59, %v2929_v43  ;;  %v2928_v12 = vadd.f32 0.5, %v2924_v1 }
 0x8f4   :  { %v4090_v41 = vpop.eup %4089  ;;  %v2947_v7 = vmul.f32 %v4088_v3, %v2927_v63 }
 0x8f5   :  { %v4092_v8 = vpop.eup %4091  ;;  %v2950_v9 = vmul.f32 %v4090_v41, %v2930_v28 }
 0x8f6   :  { %v2948_v51 = vmul.f32 %v4092_v8, %v2928_v12 }
 0x8f7   :  { %v3732_v32 = vpack.c.bf16 %v2950_v9, %v2949_v4 }
 0x8f8   :  { %v3729_v38 = vpack.c.bf16 %v2948_v51, %v2947_v7 }
 0x8fa   :  { %3730 = vmatpush3.bf16.msra.mxu0 %v3729_v38 }
 0x8fb   :  { %3731 = vmatprep.subr.bf16.mxu0 %v4134_v10 }
 0x8fe   :  { %3733 = vmatpush3.bf16.msra.mxu0 %v3732_v32 }
 0x901   :  { %3726 = vmatmul.mubr.msk.f32.vlgmr.msra.gmra.mrb[128].mxu0 %vm209_vm0, %v2951_v58 }
 0x9d4   :  { %v3027_v54 = vpop.f32.mrb[128].mxu0 }
 0x9d5   :  { %v3028_v50 = vadd.f32 %v3027_v54, %v2956_v46  ;;  %v3727_v47 = vpop.f32.mrb[129].mxu0 }
 0x9d7   :  { %3031 = vst.msk [vmem:[#allocation3] sm:$0xff] %vm331_vm1, %v3028_v50 }
 0x9d8   :  { %4120 = shalt.err (!%p4117_p4)
}
 0x9d9   :  { %s4121_s5 = scalar_lea.hbm %s5088_s6, 128 }
 0x9da   :  { %p4122_p5 = scmp.ne.s32.totalorder %s5088_s6, %s4121_s5  ;;  %p4125_p6 = scmp.lt.u32.totalorder %s4121_s5, %s5088_s6 }
 0x9dc   :  { %p4127_p7 = pnand %p4125_p6, %p4122_p5 }
 0x9de   :  { %4130 = shalt.err (!%p4127_p7)
}
 0x9df   :  { %3041 = dma.vmem_to_hbm [thread:$0]  %s3039_s24, 128, %s5088_s6, [#allocation4]  }
 0x9e0   :  { %4131 = dma.done.wait [#allocation4], 128  }
 0x9e1   :  { %4132 = vsyncadd [#allocation4], 4294967168 }
 0x9e2   :  { %3045 = vsyncpa [#allocation4], 1 }

</bundles_post_ra>
